<compile_context>
chip_gen: v7x
topology: tpu7x:2x2x1
jax: 0.10.0
libtpu: 0.0.40
codegen_flags: <defaults>
</compile_context>

<pallas_src>
import functools

import jax
import jax.numpy as jnp
import numpy as np
from jax.experimental import pallas as pl
from jax.experimental.pallas import tpu as pltpu

_LN_EPS = 1e-5   # torch.nn.LayerNorm default
_P = 128         # lane width / feature padding
_ROW = 16        # row padding granule (bf16 sublane packing; multiple of f32's 8)


def _round_up(x, m):
    return ((x + m - 1) // m) * m


# ---------------------------------------------------------------------------
# Parameter construction (deterministic, PyTorch-Linear-style init)
# ---------------------------------------------------------------------------
def init_mlp(key, in_dim, units, layers, out_dim):
    dims = [in_dim] + [units] * layers + [out_dim]
    weights = []
    for i in range(len(dims) - 1):
        key, k_w, k_b = jax.random.split(key, 3)
        bound = 1.0 / float(np.sqrt(dims[i]))
        w = jax.random.uniform(k_w, (dims[i], dims[i + 1]), jnp.float32, -bound, bound)
        b = jax.random.uniform(k_b, (dims[i + 1],), jnp.float32, -bound, bound)
        weights.append((w, b))
    params = {
        "weights": weights,
        "gamma": jnp.ones((out_dim,), jnp.float32),
        "beta": jnp.zeros((out_dim,), jnp.float32),
    }
    return params, key


def init_encode_process(key, node_dim, edge_dim, units, layers, latent_dim, mp_steps):
    params = {}
    params["encode_node"], key = init_mlp(key, node_dim, units, layers, latent_dim)
    params["encode_edge"], key = init_mlp(key, edge_dim, units, layers, latent_dim)
    inter = []
    for _ in range(mp_steps):
        e_p, key = init_mlp(key, latent_dim * 3, units, layers, latent_dim)
        n_p, key = init_mlp(key, latent_dim * 2, units, layers, latent_dim)
        inter.append({"edge": e_p, "node": n_p})
    params["interaction"] = inter
    return params


# ---------------------------------------------------------------------------
# Parameter packing: pad every weight to a [128,128] bf16 slab, biases/LN
# vectors to f32 [1,128] rows; record static slab indices per MLP.
# ---------------------------------------------------------------------------
def _pad_slab_bf16(w):
    r, c = w.shape
    return jnp.zeros((_P, _P), jnp.float32).at[:r, :c].set(w).astype(jnp.bfloat16)


def _pad_row(v):
    v = v.reshape(-1)
    return jnp.zeros((1, _P), jnp.float32).at[0, :v.shape[0]].set(v)


class _Packer:
    def __init__(self):
        self.w, self.b, self.g, self.bt = [], [], [], []

    def add_mlp(self, mlp, split_dims):
        """split_dims: true input widths of the concat parts feeding the first linear."""
        lins = []
        weights = mlp["weights"]
        w0, b0 = weights[0]
        slab_ids, off = [], 0
        for d in split_dims:                      # K-block split of the first linear
            slab_ids.append(len(self.w))
            self.w.append(_pad_slab_bf16(w0[off:off + d, :]))
            off += d
        assert off == w0.shape[0]
        b_id = len(self.b)
        self.b.append(_pad_row(b0))
        lins.append((tuple(slab_ids), b_id))
        for w, b in weights[1:]:
            sid = len(self.w)
            self.w.append(_pad_slab_bf16(w))
            bid = len(self.b)
            self.b.append(_pad_row(b))
            lins.append(((sid,), bid))
        ln_id = len(self.g)
        self.g.append(_pad_row(mlp["gamma"]))
        self.bt.append(_pad_row(mlp["beta"]))
        return {"linears": tuple(lins), "ln": ln_id,
                "out_dim": int(mlp["gamma"].shape[-1])}


# ---------------------------------------------------------------------------
# Fused Pallas kernel: encode + all message-passing steps, state in VMEM/vregs
# ---------------------------------------------------------------------------
def _fused_encode_process_kernel(meta, nodes_ref, edges_ref, r_ref, s_ref,
                                 w_ref, b_ref, g_ref, bt_ref,
                                 nodes_out_ref, edges_out_ref):

    def mlp_ln(parts, spec):
        lins = spec["linears"]
        n_lin = len(lins)
        h = None
        for l, (slab_ids, b_id) in enumerate(lins):
            if l == 0:
                acc = None
                for x, sid in zip(parts, slab_ids):   # concat -> K-split partial matmuls
                    p = jnp.dot(x.astype(jnp.bfloat16), w_ref[sid],
                                preferred_element_type=jnp.float32)
                    acc = p if acc is None else acc + p
                h = acc + b_ref[b_id]
            else:
                h = jnp.dot(h.astype(jnp.bfloat16), w_ref[slab_ids[0]],
                            preferred_element_type=jnp.float32) + b_ref[b_id]
            if l < n_lin - 1:                          # ReLU after all but last linear
                h = jnp.maximum(h, 0.0)
        # LayerNorm (f32).  Padded lanes of h are exactly zero, so no lane mask;
        # zero-padded gamma/beta keep padded output lanes at exactly zero.
        inv_d = 1.0 / spec["out_dim"]
        mean = jnp.sum(h, axis=-1, keepdims=True) * inv_d
        var = jnp.sum(h * h, axis=-1, keepdims=True) * inv_d - mean * mean
        var = jnp.maximum(var, 0.0)    # guard cancellation on padded (garbage) rows
        return ((h - mean) * jax.lax.rsqrt(var + _LN_EPS) * g_ref[spec["ln"]]
                + bt_ref[spec["ln"]])

    r_oh = r_ref[...]        # [E_pad, N_pad] one-hot receivers (bf16, exact 0/1)
    s_oh = s_ref[...]        # [E_pad, N_pad] one-hot senders

    # --- encode (GraphIndependent) ---
    nodes_l = mlp_ln([nodes_ref[...]], meta["enc_node"])
    edges_l = mlp_ln([edges_ref[...]], meta["enc_edge"])

    # --- message passing with residuals, fully on-chip ---
    for step in meta["steps"]:
        nodes_b = nodes_l.astype(jnp.bfloat16)
        recv = jnp.dot(r_oh, nodes_b, preferred_element_type=jnp.float32)   # gather
        send = jnp.dot(s_oh, nodes_b, preferred_element_type=jnp.float32)   # gather
        new_edges = mlp_ln([edges_l, recv, send], step["edge"])
        # scatter-add over receivers == contraction over the edge axis of R.
        agg = jax.lax.dot_general(r_oh, new_edges.astype(jnp.bfloat16),
                                  dimension_numbers=(((0,), (0,)), ((), ())),
                                  preferred_element_type=jnp.float32)
        new_nodes = mlp_ln([nodes_l, agg], step["node"])
        nodes_l = new_nodes + nodes_l      # residuals fused, f32
        edges_l = new_edges + edges_l

    nodes_out_ref[...] = nodes_l
    edges_out_ref[...] = edges_l


# ---------------------------------------------------------------------------
# Wrapper: pad/pack inputs once, one pallas_call for the whole forward
# ---------------------------------------------------------------------------
def encode_process_pallas(params, nodes, edges, senders, receivers,
                          globals_=None, n_node=None):
    nodes = nodes.astype(jnp.float32)
    edges = edges.astype(jnp.float32)
    if globals_ is not None:
        rep = jnp.repeat(globals_.astype(jnp.float32), n_node, axis=0,
                         total_repeat_length=nodes.shape[0])
        nodes = jnp.concatenate([nodes, rep], axis=1)

    n, node_dim = nodes.shape
    e, edge_dim = edges.shape
    latent = int(params["encode_node"]["gamma"].shape[-1])
    units = int(params["encode_node"]["weights"][0][0].shape[-1])
    assert max(node_dim, edge_dim, units, latent) <= _P

    n_pad = _round_up(n, _ROW)
    e_pad = _round_up(e, _ROW)

    nodes_p = jnp.zeros((n_pad, _P), jnp.float32).at[:n, :node_dim].set(nodes)
    edges_p = jnp.zeros((e_pad, _P), jnp.float32).at[:e, :edge_dim].set(edges)

    node_ids = jnp.arange(n_pad, dtype=jnp.int32)
    r_oh = (receivers.astype(jnp.int32)[:, None] == node_ids[None, :]).astype(jnp.float32)
    s_oh = (senders.astype(jnp.int32)[:, None] == node_ids[None, :]).astype(jnp.float32)
    r_full = jnp.zeros((e_pad, n_pad), jnp.float32).at[:e].set(r_oh).astype(jnp.bfloat16)
    s_full = jnp.zeros((e_pad, n_pad), jnp.float32).at[:e].set(s_oh).astype(jnp.bfloat16)

    packer = _Packer()
    meta = {
        "enc_node": packer.add_mlp(params["encode_node"], (node_dim,)),
        "enc_edge": packer.add_mlp(params["encode_edge"], (edge_dim,)),
        "steps": tuple(
            {"edge": packer.add_mlp(s["edge"], (latent, latent, latent)),
             "node": packer.add_mlp(s["node"], (latent, latent))}
            for s in params["interaction"]),
    }
    w_all = jnp.stack(packer.w)     # [n_slabs, 128, 128] bf16
    b_all = jnp.stack(packer.b)     # [n_linear, 1, 128] f32
    g_all = jnp.stack(packer.g)     # [n_mlps, 1, 128] f32
    bt_all = jnp.stack(packer.bt)   # [n_mlps, 1, 128] f32

    vmem = pl.BlockSpec(memory_space=pltpu.MemorySpace.VMEM)
    nodes_out, edges_out = pl.pallas_call(
        functools.partial(_fused_encode_process_kernel, meta),
        out_shape=(jax.ShapeDtypeStruct((n_pad, _P), jnp.float32),
                   jax.ShapeDtypeStruct((e_pad, _P), jnp.float32)),
        in_specs=[vmem] * 8,
        out_specs=(vmem, vmem),
    )(nodes_p, edges_p, r_full, s_full, w_all, b_all, g_all, bt_all)

    return nodes_out[:n, :latent], edges_out[:e, :latent]


# ---------------------------------------------------------------------------
# Pure-JAX references.
#  * f32 reference: exact module semantics (loose tolerance vs bf16-MXU kernel).
#  * bf16-matched reference: same bf16 operand rounding as the kernel's MXU dots
#    (tight tolerance — validates the kernel's graph/indexing/LN logic).
# ---------------------------------------------------------------------------
_HI = jax.lax.Precision.HIGHEST


def _rb(x):
    return x.astype(jnp.bfloat16).astype(jnp.float32)


def _mlp_ln_f32(x, mlp):
    h = x.astype(jnp.float32)
    n_lin = len(mlp["weights"])
    for l, (w, b) in enumerate(mlp["weights"]):
        h = jnp.dot(h, w, precision=_HI, preferred_element_type=jnp.float32) + b
        if l < n_lin - 1:
            h = jnp.maximum(h, 0.0)
    mean = jnp.mean(h, axis=-1, keepdims=True)
    var = jnp.mean((h - mean) ** 2, axis=-1, keepdims=True)
    return (h - mean) * jax.lax.rsqrt(var + _LN_EPS) * mlp["gamma"] + mlp["beta"]


def _mlp_ln_bf16(x, mlp):
    h = x.astype(jnp.float32)
    n_lin = len(mlp["weights"])
    for l, (w, b) in enumerate(mlp["weights"]):
        h = jnp.dot(_rb(h), _rb(w), precision=_HI,
                    preferred_element_type=jnp.float32) + b
        if l < n_lin - 1:
            h = jnp.maximum(h, 0.0)
    mean = jnp.mean(h, axis=-1, keepdims=True)
    var = jnp.maximum(jnp.mean(h * h, axis=-1, keepdims=True) - mean * mean, 0.0)
    return (h - mean) * jax.lax.rsqrt(var + _LN_EPS) * mlp["gamma"] + mlp["beta"]


def _encode_process_ref(params, nodes, edges, senders, receivers, mlp_fn,
                        round_scatter, globals_=None, n_node=None):
    if globals_ is not None:
        nodes = jnp.concatenate(
            [nodes, jnp.repeat(globals_, n_node, axis=0,
                               total_repeat_length=nodes.shape[0])], axis=1)
    nodes_l = mlp_fn(nodes, params["encode_node"])
    edges_l = mlp_fn(edges, params["encode_edge"])
    n = nodes_l.shape[0]
    for step in params["interaction"]:
        coll_e = jnp.concatenate([edges_l, nodes_l[receivers], nodes_l[senders]], axis=1)
        new_edges = mlp_fn(coll_e, step["edge"])
        vals = _rb(new_edges) if round_scatter else new_edges
        agg = jnp.zeros((n, new_edges.shape[1]), jnp.float32).at[receivers].add(vals)
        coll_n = jnp.concatenate([nodes_l, agg], axis=1)
        new_nodes = mlp_fn(coll_n, step["node"])
        nodes_l = new_nodes + nodes_l
        edges_l = new_edges + edges_l
    return nodes_l, edges_l


# ---------------------------------------------------------------------------
if __name__ == "__main__":
    node_dim, edge_dim = 16, 8
    units, layers, latent_dim, mp_steps = 32, 2, 32, 2
    N, E = 20, 50

    key = jax.random.PRNGKey(0)
    k_nodes, k_edges, k_snd, k_rcv, k_params = jax.random.split(key, 5)

    nodes = jax.random.normal(k_nodes, (N, node_dim), jnp.float32)
    edges = jax.random.normal(k_edges, (E, edge_dim), jnp.float32)
    senders = jax.random.randint(k_snd, (E,), 0, N, jnp.int32)
    receivers = jax.random.randint(k_rcv, (E,), 0, N, jnp.int32)

    params = init_encode_process(k_params, node_dim, edge_dim, units, layers,
                                 latent_dim, mp_steps)

    fwd = jax.jit(encode_process_pallas)
    out_nodes, out_edges = fwd(params, nodes, edges, senders, receivers)
    jax.block_until_ready((out_nodes, out_edges))

    # Tight check: reference with the same bf16 MXU-operand rounding as the kernel.
    mref_n, mref_e = _encode_process_ref(params, nodes, edges, senders, receivers,
                                         _mlp_ln_bf16, round_scatter=True)
    np.testing.assert_allclose(np.asarray(out_nodes), np.asarray(mref_n),
                               rtol=2e-3, atol=2e-3)
    np.testing.assert_allclose(np.asarray(out_edges), np.asarray(mref_e),
                               rtol=2e-3, atol=2e-3)

    # Loose check: full-f32 module semantics; gap is only bf16 matmul rounding.
    fref_n, fref_e = _encode_process_ref(params, nodes, edges, senders, receivers,
                                         _mlp_ln_f32, round_scatter=False)
    np.testing.assert_allclose(np.asarray(out_nodes), np.asarray(fref_n),
                               rtol=5e-2, atol=5e-2)
    np.testing.assert_allclose(np.asarray(out_edges), np.asarray(fref_e),
                               rtol=5e-2, atol=5e-2)

    assert out_nodes.shape == (N, latent_dim) and out_edges.shape == (E, latent_dim)
    print("KERNEL_OK")
</pallas_src>

<mosaic_0001>
module attributes {stable_mosaic.version = 11 : i64} {
  func.func @_fused_encode_process_kernel(%arg0: memref<32x128xf32, #tpu.memory_space<vmem>>, %arg1: memref<64x128xf32, #tpu.memory_space<vmem>>, %arg2: memref<64x32xbf16, #tpu.memory_space<vmem>>, %arg3: memref<64x32xbf16, #tpu.memory_space<vmem>>, %arg4: memref<24x128x128xbf16, #tpu.memory_space<vmem>>, %arg5: memref<18x1x128xf32, #tpu.memory_space<vmem>>, %arg6: memref<6x1x128xf32, #tpu.memory_space<vmem>>, %arg7: memref<6x1x128xf32, #tpu.memory_space<vmem>>, %arg8: memref<32x128xf32, #tpu.memory_space<vmem>>, %arg9: memref<64x128xf32, #tpu.memory_space<vmem>>) attributes {dimension_semantics = [], scalar_prefetch = 0 : i64, scratch_operands = 0 : i64, tpu.core_type = #tpu.core_type<tc>} {
    %c0 = arith.constant 0 : index
    %c0_0 = arith.constant 0 : index
    %0 = vector.load %arg2[%c0, %c0_0] : memref<64x32xbf16, #tpu.memory_space<vmem>>, vector<64x32xbf16>
    %c0_1 = arith.constant 0 : index
    %c0_2 = arith.constant 0 : index
    %1 = vector.load %arg3[%c0_1, %c0_2] : memref<64x32xbf16, #tpu.memory_space<vmem>>, vector<64x32xbf16>
    %c0_3 = arith.constant 0 : index
    %c0_4 = arith.constant 0 : index
    %2 = vector.load %arg0[%c0_3, %c0_4] : memref<32x128xf32, #tpu.memory_space<vmem>>, vector<32x128xf32>
    %3 = arith.truncf %2 : vector<32x128xf32> to vector<32x128xbf16>
    %c0_5 = arith.constant 0 : index
    %c0_6 = arith.constant 0 : index
    %c0_7 = arith.constant 0 : index
    %4 = vector.load %arg4[%c0_5, %c0_6, %c0_7] : memref<24x128x128xbf16, #tpu.memory_space<vmem>>, vector<1x128x128xbf16>
    %5 = vector.shape_cast %4 : vector<1x128x128xbf16> to vector<128x128xbf16>
    %cst = arith.constant dense<0.000000e+00> : vector<32x128xf32>
    %6 = tpu.matmul %3, %5, %cst {dimension_numbers = #tpu.dot_dimension_numbers<[1], [0], [0], [1], [0, 0, 1, 1], [], []>} : vector<32x128xbf16>, vector<128x128xbf16>, vector<32x128xf32> -> vector<32x128xf32>
    %c0_8 = arith.constant 0 : index
    %c0_9 = arith.constant 0 : index
    %c0_10 = arith.constant 0 : index
    %7 = vector.load %arg5[%c0_8, %c0_9, %c0_10] : memref<18x1x128xf32, #tpu.memory_space<vmem>>, vector<1x1x128xf32>
    %8 = vector.shape_cast %7 : vector<1x1x128xf32> to vector<1x128xf32>
    %9 = vector.broadcast %8 : vector<1x128xf32> to vector<32x128xf32>
    %10 = arith.addf %6, %9 : vector<32x128xf32>
    %cst_11 = arith.constant 0.000000e+00 : f32
    %11 = vector.broadcast %cst_11 : f32 to vector<32x128xf32>
    %12 = arith.maximumf %10, %11 : vector<32x128xf32>
    %13 = arith.truncf %12 : vector<32x128xf32> to vector<32x128xbf16>
    %c1 = arith.constant 1 : index
    %c0_12 = arith.constant 0 : index
    %c0_13 = arith.constant 0 : index
    %14 = vector.load %arg4[%c1, %c0_12, %c0_13] : memref<24x128x128xbf16, #tpu.memory_space<vmem>>, vector<1x128x128xbf16>
    %15 = vector.shape_cast %14 : vector<1x128x128xbf16> to vector<128x128xbf16>
    %cst_14 = arith.constant dense<0.000000e+00> : vector<32x128xf32>
    %16 = tpu.matmul %13, %15, %cst_14 {dimension_numbers = #tpu.dot_dimension_numbers<[1], [0], [0], [1], [0, 0, 1, 1], [], []>} : vector<32x128xbf16>, vector<128x128xbf16>, vector<32x128xf32> -> vector<32x128xf32>
    %c1_15 = arith.constant 1 : index
    %c0_16 = arith.constant 0 : index
    %c0_17 = arith.constant 0 : index
    %17 = vector.load %arg5[%c1_15, %c0_16, %c0_17] : memref<18x1x128xf32, #tpu.memory_space<vmem>>, vector<1x1x128xf32>
    %18 = vector.shape_cast %17 : vector<1x1x128xf32> to vector<1x128xf32>
    %19 = vector.broadcast %18 : vector<1x128xf32> to vector<32x128xf32>
    %20 = arith.addf %16, %19 : vector<32x128xf32>
    %cst_18 = arith.constant 0.000000e+00 : f32
    %21 = vector.broadcast %cst_18 : f32 to vector<32x128xf32>
    %22 = arith.maximumf %20, %21 : vector<32x128xf32>
    %23 = arith.truncf %22 : vector<32x128xf32> to vector<32x128xbf16>
    %c2 = arith.constant 2 : index
    %c0_19 = arith.constant 0 : index
    %c0_20 = arith.constant 0 : index
    %24 = vector.load %arg4[%c2, %c0_19, %c0_20] : memref<24x128x128xbf16, #tpu.memory_space<vmem>>, vector<1x128x128xbf16>
    %25 = vector.shape_cast %24 : vector<1x128x128xbf16> to vector<128x128xbf16>
    %cst_21 = arith.constant dense<0.000000e+00> : vector<32x128xf32>
    %26 = tpu.matmul %23, %25, %cst_21 {dimension_numbers = #tpu.dot_dimension_numbers<[1], [0], [0], [1], [0, 0, 1, 1], [], []>} : vector<32x128xbf16>, vector<128x128xbf16>, vector<32x128xf32> -> vector<32x128xf32>
    %c2_22 = arith.constant 2 : index
    %c0_23 = arith.constant 0 : index
    %c0_24 = arith.constant 0 : index
    %27 = vector.load %arg5[%c2_22, %c0_23, %c0_24] : memref<18x1x128xf32, #tpu.memory_space<vmem>>, vector<1x1x128xf32>
    %28 = vector.shape_cast %27 : vector<1x1x128xf32> to vector<1x128xf32>
    %29 = vector.broadcast %28 : vector<1x128xf32> to vector<32x128xf32>
    %30 = arith.addf %26, %29 : vector<32x128xf32>
    %cst_25 = arith.constant dense<0.000000e+00> : vector<32xf32>
    %31 = vector.multi_reduction <add>, %30, %cst_25 [1] : vector<32x128xf32> to vector<32xf32>
    %32 = vector.shape_cast %31 : vector<32xf32> to vector<32x1xf32>
    %cst_26 = arith.constant 3.125000e-02 : f32
    %33 = vector.broadcast %cst_26 : f32 to vector<32x1xf32>
    %34 = arith.mulf %32, %33 : vector<32x1xf32>
    %35 = arith.mulf %30, %30 : vector<32x128xf32>
    %cst_27 = arith.constant dense<0.000000e+00> : vector<32xf32>
    %36 = vector.multi_reduction <add>, %35, %cst_27 [1] : vector<32x128xf32> to vector<32xf32>
    %37 = vector.shape_cast %36 : vector<32xf32> to vector<32x1xf32>
    %cst_28 = arith.constant 3.125000e-02 : f32
    %38 = vector.broadcast %cst_28 : f32 to vector<32x1xf32>
    %39 = arith.mulf %37, %38 : vector<32x1xf32>
    %40 = arith.mulf %34, %34 : vector<32x1xf32>
    %41 = arith.subf %39, %40 : vector<32x1xf32>
    %cst_29 = arith.constant 0.000000e+00 : f32
    %42 = vector.broadcast %cst_29 : f32 to vector<32x1xf32>
    %43 = arith.maximumf %41, %42 : vector<32x1xf32>
    %44 = vector.broadcast %34 : vector<32x1xf32> to vector<32x128xf32>
    %45 = arith.subf %30, %44 : vector<32x128xf32>
    %cst_30 = arith.constant 9.99999974E-6 : f32
    %46 = vector.broadcast %cst_30 : f32 to vector<32x1xf32>
    %47 = arith.addf %43, %46 : vector<32x1xf32>
    %48 = math.rsqrt %47 : vector<32x1xf32>
    %49 = vector.broadcast %48 : vector<32x1xf32> to vector<32x128xf32>
    %50 = arith.mulf %45, %49 : vector<32x128xf32>
    %c0_31 = arith.constant 0 : index
    %c0_32 = arith.constant 0 : index
    %c0_33 = arith.constant 0 : index
    %51 = vector.load %arg6[%c0_31, %c0_32, %c0_33] : memref<6x1x128xf32, #tpu.memory_space<vmem>>, vector<1x1x128xf32>
    %52 = vector.shape_cast %51 : vector<1x1x128xf32> to vector<1x128xf32>
    %53 = vector.broadcast %52 : vector<1x128xf32> to vector<32x128xf32>
    %54 = arith.mulf %50, %53 : vector<32x128xf32>
    %c0_34 = arith.constant 0 : index
    %c0_35 = arith.constant 0 : index
    %c0_36 = arith.constant 0 : index
    %55 = vector.load %arg7[%c0_34, %c0_35, %c0_36] : memref<6x1x128xf32, #tpu.memory_space<vmem>>, vector<1x1x128xf32>
    %56 = vector.shape_cast %55 : vector<1x1x128xf32> to vector<1x128xf32>
    %57 = vector.broadcast %56 : vector<1x128xf32> to vector<32x128xf32>
    %58 = arith.addf %54, %57 : vector<32x128xf32>
    %c0_37 = arith.constant 0 : index
    %c0_38 = arith.constant 0 : index
    %59 = vector.load %arg1[%c0_37, %c0_38] : memref<64x128xf32, #tpu.memory_space<vmem>>, vector<64x128xf32>
    %60 = arith.truncf %59 : vector<64x128xf32> to vector<64x128xbf16>
    %c3 = arith.constant 3 : index
    %c0_39 = arith.constant 0 : index
    %c0_40 = arith.constant 0 : index
    %61 = vector.load %arg4[%c3, %c0_39, %c0_40] : memref<24x128x128xbf16, #tpu.memory_space<vmem>>, vector<1x128x128xbf16>
    %62 = vector.shape_cast %61 : vector<1x128x128xbf16> to vector<128x128xbf16>
    %cst_41 = arith.constant dense<0.000000e+00> : vector<64x128xf32>
    %63 = tpu.matmul %60, %62, %cst_41 {dimension_numbers = #tpu.dot_dimension_numbers<[1], [0], [0], [1], [0, 0, 1, 1], [], []>} : vector<64x128xbf16>, vector<128x128xbf16>, vector<64x128xf32> -> vector<64x128xf32>
    %c3_42 = arith.constant 3 : index
    %c0_43 = arith.constant 0 : index
    %c0_44 = arith.constant 0 : index
    %64 = vector.load %arg5[%c3_42, %c0_43, %c0_44] : memref<18x1x128xf32, #tpu.memory_space<vmem>>, vector<1x1x128xf32>
    %65 = vector.shape_cast %64 : vector<1x1x128xf32> to vector<1x128xf32>
    %66 = vector.broadcast %65 : vector<1x128xf32> to vector<64x128xf32>
    %67 = arith.addf %63, %66 : vector<64x128xf32>
    %cst_45 = arith.constant 0.000000e+00 : f32
    %68 = vector.broadcast %cst_45 : f32 to vector<64x128xf32>
    %69 = arith.maximumf %67, %68 : vector<64x128xf32>
    %70 = arith.truncf %69 : vector<64x128xf32> to vector<64x128xbf16>
    %c4 = arith.constant 4 : index
    %c0_46 = arith.constant 0 : index
    %c0_47 = arith.constant 0 : index
    %71 = vector.load %arg4[%c4, %c0_46, %c0_47] : memref<24x128x128xbf16, #tpu.memory_space<vmem>>, vector<1x128x128xbf16>
    %72 = vector.shape_cast %71 : vector<1x128x128xbf16> to vector<128x128xbf16>
    %cst_48 = arith.constant dense<0.000000e+00> : vector<64x128xf32>
    %73 = tpu.matmul %70, %72, %cst_48 {dimension_numbers = #tpu.dot_dimension_numbers<[1], [0], [0], [1], [0, 0, 1, 1], [], []>} : vector<64x128xbf16>, vector<128x128xbf16>, vector<64x128xf32> -> vector<64x128xf32>
    %c4_49 = arith.constant 4 : index
    %c0_50 = arith.constant 0 : index
    %c0_51 = arith.constant 0 : index
    %74 = vector.load %arg5[%c4_49, %c0_50, %c0_51] : memref<18x1x128xf32, #tpu.memory_space<vmem>>, vector<1x1x128xf32>
    %75 = vector.shape_cast %74 : vector<1x1x128xf32> to vector<1x128xf32>
    %76 = vector.broadcast %75 : vector<1x128xf32> to vector<64x128xf32>
    %77 = arith.addf %73, %76 : vector<64x128xf32>
    %cst_52 = arith.constant 0.000000e+00 : f32
    %78 = vector.broadcast %cst_52 : f32 to vector<64x128xf32>
    %79 = arith.maximumf %77, %78 : vector<64x128xf32>
    %80 = arith.truncf %79 : vector<64x128xf32> to vector<64x128xbf16>
    %c5 = arith.constant 5 : index
    %c0_53 = arith.constant 0 : index
    %c0_54 = arith.constant 0 : index
    %81 = vector.load %arg4[%c5, %c0_53, %c0_54] : memref<24x128x128xbf16, #tpu.memory_space<vmem>>, vector<1x128x128xbf16>
    %82 = vector.shape_cast %81 : vector<1x128x128xbf16> to vector<128x128xbf16>
    %cst_55 = arith.constant dense<0.000000e+00> : vector<64x128xf32>
    %83 = tpu.matmul %80, %82, %cst_55 {dimension_numbers = #tpu.dot_dimension_numbers<[1], [0], [0], [1], [0, 0, 1, 1], [], []>} : vector<64x128xbf16>, vector<128x128xbf16>, vector<64x128xf32> -> vector<64x128xf32>
    %c5_56 = arith.constant 5 : index
    %c0_57 = arith.constant 0 : index
    %c0_58 = arith.constant 0 : index
    %84 = vector.load %arg5[%c5_56, %c0_57, %c0_58] : memref<18x1x128xf32, #tpu.memory_space<vmem>>, vector<1x1x128xf32>
    %85 = vector.shape_cast %84 : vector<1x1x128xf32> to vector<1x128xf32>
    %86 = vector.broadcast %85 : vector<1x128xf32> to vector<64x128xf32>
    %87 = arith.addf %83, %86 : vector<64x128xf32>
    %cst_59 = arith.constant dense<0.000000e+00> : vector<64xf32>
    %88 = vector.multi_reduction <add>, %87, %cst_59 [1] : vector<64x128xf32> to vector<64xf32>
    %89 = vector.shape_cast %88 : vector<64xf32> to vector<64x1xf32>
    %cst_60 = arith.constant 3.125000e-02 : f32
    %90 = vector.broadcast %cst_60 : f32 to vector<64x1xf32>
    %91 = arith.mulf %89, %90 : vector<64x1xf32>
    %92 = arith.mulf %87, %87 : vector<64x128xf32>
    %cst_61 = arith.constant dense<0.000000e+00> : vector<64xf32>
    %93 = vector.multi_reduction <add>, %92, %cst_61 [1] : vector<64x128xf32> to vector<64xf32>
    %94 = vector.shape_cast %93 : vector<64xf32> to vector<64x1xf32>
    %cst_62 = arith.constant 3.125000e-02 : f32
    %95 = vector.broadcast %cst_62 : f32 to vector<64x1xf32>
    %96 = arith.mulf %94, %95 : vector<64x1xf32>
    %97 = arith.mulf %91, %91 : vector<64x1xf32>
    %98 = arith.subf %96, %97 : vector<64x1xf32>
    %cst_63 = arith.constant 0.000000e+00 : f32
    %99 = vector.broadcast %cst_63 : f32 to vector<64x1xf32>
    %100 = arith.maximumf %98, %99 : vector<64x1xf32>
    %101 = vector.broadcast %91 : vector<64x1xf32> to vector<64x128xf32>
    %102 = arith.subf %87, %101 : vector<64x128xf32>
    %cst_64 = arith.constant 9.99999974E-6 : f32
    %103 = vector.broadcast %cst_64 : f32 to vector<64x1xf32>
    %104 = arith.addf %100, %103 : vector<64x1xf32>
    %105 = math.rsqrt %104 : vector<64x1xf32>
    %106 = vector.broadcast %105 : vector<64x1xf32> to vector<64x128xf32>
    %107 = arith.mulf %102, %106 : vector<64x128xf32>
    %c1_65 = arith.constant 1 : index
    %c0_66 = arith.constant 0 : index
    %c0_67 = arith.constant 0 : index
    %108 = vector.load %arg6[%c1_65, %c0_66, %c0_67] : memref<6x1x128xf32, #tpu.memory_space<vmem>>, vector<1x1x128xf32>
    %109 = vector.shape_cast %108 : vector<1x1x128xf32> to vector<1x128xf32>
    %110 = vector.broadcast %109 : vector<1x128xf32> to vector<64x128xf32>
    %111 = arith.mulf %107, %110 : vector<64x128xf32>
    %c1_68 = arith.constant 1 : index
    %c0_69 = arith.constant 0 : index
    %c0_70 = arith.constant 0 : index
    %112 = vector.load %arg7[%c1_68, %c0_69, %c0_70] : memref<6x1x128xf32, #tpu.memory_space<vmem>>, vector<1x1x128xf32>
    %113 = vector.shape_cast %112 : vector<1x1x128xf32> to vector<1x128xf32>
    %114 = vector.broadcast %113 : vector<1x128xf32> to vector<64x128xf32>
    %115 = arith.addf %111, %114 : vector<64x128xf32>
    %116 = arith.truncf %58 : vector<32x128xf32> to vector<32x128xbf16>
    %cst_71 = arith.constant dense<0.000000e+00> : vector<64x128xf32>
    %117 = tpu.matmul %0, %116, %cst_71 {dimension_numbers = #tpu.dot_dimension_numbers<[1], [0], [0], [1], [0, 0, 1, 1], [], []>} : vector<64x32xbf16>, vector<32x128xbf16>, vector<64x128xf32> -> vector<64x128xf32>
    %cst_72 = arith.constant dense<0.000000e+00> : vector<64x128xf32>
    %118 = tpu.matmul %1, %116, %cst_72 {dimension_numbers = #tpu.dot_dimension_numbers<[1], [0], [0], [1], [0, 0, 1, 1], [], []>} : vector<64x32xbf16>, vector<32x128xbf16>, vector<64x128xf32> -> vector<64x128xf32>
    %119 = arith.truncf %115 : vector<64x128xf32> to vector<64x128xbf16>
    %c6 = arith.constant 6 : index
    %c0_73 = arith.constant 0 : index
    %c0_74 = arith.constant 0 : index
    %120 = vector.load %arg4[%c6, %c0_73, %c0_74] : memref<24x128x128xbf16, #tpu.memory_space<vmem>>, vector<1x128x128xbf16>
    %121 = vector.shape_cast %120 : vector<1x128x128xbf16> to vector<128x128xbf16>
    %cst_75 = arith.constant dense<0.000000e+00> : vector<64x128xf32>
    %122 = tpu.matmul %119, %121, %cst_75 {dimension_numbers = #tpu.dot_dimension_numbers<[1], [0], [0], [1], [0, 0, 1, 1], [], []>} : vector<64x128xbf16>, vector<128x128xbf16>, vector<64x128xf32> -> vector<64x128xf32>
    %123 = arith.truncf %117 : vector<64x128xf32> to vector<64x128xbf16>
    %c7 = arith.constant 7 : index
    %c0_76 = arith.constant 0 : index
    %c0_77 = arith.constant 0 : index
    %124 = vector.load %arg4[%c7, %c0_76, %c0_77] : memref<24x128x128xbf16, #tpu.memory_space<vmem>>, vector<1x128x128xbf16>
    %125 = vector.shape_cast %124 : vector<1x128x128xbf16> to vector<128x128xbf16>
    %cst_78 = arith.constant dense<0.000000e+00> : vector<64x128xf32>
    %126 = tpu.matmul %123, %125, %cst_78 {dimension_numbers = #tpu.dot_dimension_numbers<[1], [0], [0], [1], [0, 0, 1, 1], [], []>} : vector<64x128xbf16>, vector<128x128xbf16>, vector<64x128xf32> -> vector<64x128xf32>
    %127 = arith.addf %122, %126 : vector<64x128xf32>
    %128 = arith.truncf %118 : vector<64x128xf32> to vector<64x128xbf16>
    %c8 = arith.constant 8 : index
    %c0_79 = arith.constant 0 : index
    %c0_80 = arith.constant 0 : index
    %129 = vector.load %arg4[%c8, %c0_79, %c0_80] : memref<24x128x128xbf16, #tpu.memory_space<vmem>>, vector<1x128x128xbf16>
    %130 = vector.shape_cast %129 : vector<1x128x128xbf16> to vector<128x128xbf16>
    %cst_81 = arith.constant dense<0.000000e+00> : vector<64x128xf32>
    %131 = tpu.matmul %128, %130, %cst_81 {dimension_numbers = #tpu.dot_dimension_numbers<[1], [0], [0], [1], [0, 0, 1, 1], [], []>} : vector<64x128xbf16>, vector<128x128xbf16>, vector<64x128xf32> -> vector<64x128xf32>
    %132 = arith.addf %127, %131 : vector<64x128xf32>
    %c6_82 = arith.constant 6 : index
    %c0_83 = arith.constant 0 : index
    %c0_84 = arith.constant 0 : index
    %133 = vector.load %arg5[%c6_82, %c0_83, %c0_84] : memref<18x1x128xf32, #tpu.memory_space<vmem>>, vector<1x1x128xf32>
    %134 = vector.shape_cast %133 : vector<1x1x128xf32> to vector<1x128xf32>
    %135 = vector.broadcast %134 : vector<1x128xf32> to vector<64x128xf32>
    %136 = arith.addf %132, %135 : vector<64x128xf32>
    %cst_85 = arith.constant 0.000000e+00 : f32
    %137 = vector.broadcast %cst_85 : f32 to vector<64x128xf32>
    %138 = arith.maximumf %136, %137 : vector<64x128xf32>
    %139 = arith.truncf %138 : vector<64x128xf32> to vector<64x128xbf16>
    %c9 = arith.constant 9 : index
    %c0_86 = arith.constant 0 : index
    %c0_87 = arith.constant 0 : index
    %140 = vector.load %arg4[%c9, %c0_86, %c0_87] : memref<24x128x128xbf16, #tpu.memory_space<vmem>>, vector<1x128x128xbf16>
    %141 = vector.shape_cast %140 : vector<1x128x128xbf16> to vector<128x128xbf16>
    %cst_88 = arith.constant dense<0.000000e+00> : vector<64x128xf32>
    %142 = tpu.matmul %139, %141, %cst_88 {dimension_numbers = #tpu.dot_dimension_numbers<[1], [0], [0], [1], [0, 0, 1, 1], [], []>} : vector<64x128xbf16>, vector<128x128xbf16>, vector<64x128xf32> -> vector<64x128xf32>
    %c7_89 = arith.constant 7 : index
    %c0_90 = arith.constant 0 : index
    %c0_91 = arith.constant 0 : index
    %143 = vector.load %arg5[%c7_89, %c0_90, %c0_91] : memref<18x1x128xf32, #tpu.memory_space<vmem>>, vector<1x1x128xf32>
    %144 = vector.shape_cast %143 : vector<1x1x128xf32> to vector<1x128xf32>
    %145 = vector.broadcast %144 : vector<1x128xf32> to vector<64x128xf32>
    %146 = arith.addf %142, %145 : vector<64x128xf32>
    %cst_92 = arith.constant 0.000000e+00 : f32
    %147 = vector.broadcast %cst_92 : f32 to vector<64x128xf32>
    %148 = arith.maximumf %146, %147 : vector<64x128xf32>
    %149 = arith.truncf %148 : vector<64x128xf32> to vector<64x128xbf16>
    %c10 = arith.constant 10 : index
    %c0_93 = arith.constant 0 : index
    %c0_94 = arith.constant 0 : index
    %150 = vector.load %arg4[%c10, %c0_93, %c0_94] : memref<24x128x128xbf16, #tpu.memory_space<vmem>>, vector<1x128x128xbf16>
    %151 = vector.shape_cast %150 : vector<1x128x128xbf16> to vector<128x128xbf16>
    %cst_95 = arith.constant dense<0.000000e+00> : vector<64x128xf32>
    %152 = tpu.matmul %149, %151, %cst_95 {dimension_numbers = #tpu.dot_dimension_numbers<[1], [0], [0], [1], [0, 0, 1, 1], [], []>} : vector<64x128xbf16>, vector<128x128xbf16>, vector<64x128xf32> -> vector<64x128xf32>
    %c8_96 = arith.constant 8 : index
    %c0_97 = arith.constant 0 : index
    %c0_98 = arith.constant 0 : index
    %153 = vector.load %arg5[%c8_96, %c0_97, %c0_98] : memref<18x1x128xf32, #tpu.memory_space<vmem>>, vector<1x1x128xf32>
    %154 = vector.shape_cast %153 : vector<1x1x128xf32> to vector<1x128xf32>
    %155 = vector.broadcast %154 : vector<1x128xf32> to vector<64x128xf32>
    %156 = arith.addf %152, %155 : vector<64x128xf32>
    %cst_99 = arith.constant dense<0.000000e+00> : vector<64xf32>
    %157 = vector.multi_reduction <add>, %156, %cst_99 [1] : vector<64x128xf32> to vector<64xf32>
    %158 = vector.shape_cast %157 : vector<64xf32> to vector<64x1xf32>
    %cst_100 = arith.constant 3.125000e-02 : f32
    %159 = vector.broadcast %cst_100 : f32 to vector<64x1xf32>
    %160 = arith.mulf %158, %159 : vector<64x1xf32>
    %161 = arith.mulf %156, %156 : vector<64x128xf32>
    %cst_101 = arith.constant dense<0.000000e+00> : vector<64xf32>
    %162 = vector.multi_reduction <add>, %161, %cst_101 [1] : vector<64x128xf32> to vector<64xf32>
    %163 = vector.shape_cast %162 : vector<64xf32> to vector<64x1xf32>
    %cst_102 = arith.constant 3.125000e-02 : f32
    %164 = vector.broadcast %cst_102 : f32 to vector<64x1xf32>
    %165 = arith.mulf %163, %164 : vector<64x1xf32>
    %166 = arith.mulf %160, %160 : vector<64x1xf32>
    %167 = arith.subf %165, %166 : vector<64x1xf32>
    %cst_103 = arith.constant 0.000000e+00 : f32
    %168 = vector.broadcast %cst_103 : f32 to vector<64x1xf32>
    %169 = arith.maximumf %167, %168 : vector<64x1xf32>
    %170 = vector.broadcast %160 : vector<64x1xf32> to vector<64x128xf32>
    %171 = arith.subf %156, %170 : vector<64x128xf32>
    %cst_104 = arith.constant 9.99999974E-6 : f32
    %172 = vector.broadcast %cst_104 : f32 to vector<64x1xf32>
    %173 = arith.addf %169, %172 : vector<64x1xf32>
    %174 = math.rsqrt %173 : vector<64x1xf32>
    %175 = vector.broadcast %174 : vector<64x1xf32> to vector<64x128xf32>
    %176 = arith.mulf %171, %175 : vector<64x128xf32>
    %c2_105 = arith.constant 2 : index
    %c0_106 = arith.constant 0 : index
    %c0_107 = arith.constant 0 : index
    %177 = vector.load %arg6[%c2_105, %c0_106, %c0_107] : memref<6x1x128xf32, #tpu.memory_space<vmem>>, vector<1x1x128xf32>
    %178 = vector.shape_cast %177 : vector<1x1x128xf32> to vector<1x128xf32>
    %179 = vector.broadcast %178 : vector<1x128xf32> to vector<64x128xf32>
    %180 = arith.mulf %176, %179 : vector<64x128xf32>
    %c2_108 = arith.constant 2 : index
    %c0_109 = arith.constant 0 : index
    %c0_110 = arith.constant 0 : index
    %181 = vector.load %arg7[%c2_108, %c0_109, %c0_110] : memref<6x1x128xf32, #tpu.memory_space<vmem>>, vector<1x1x128xf32>
    %182 = vector.shape_cast %181 : vector<1x1x128xf32> to vector<1x128xf32>
    %183 = vector.broadcast %182 : vector<1x128xf32> to vector<64x128xf32>
    %184 = arith.addf %180, %183 : vector<64x128xf32>
    %185 = arith.truncf %184 : vector<64x128xf32> to vector<64x128xbf16>
    %cst_111 = arith.constant dense<0.000000e+00> : vector<32x128xf32>
    %186 = tpu.matmul %0, %185, %cst_111 {dimension_numbers = #tpu.dot_dimension_numbers<[0], [0], [1], [1], [0, 1, 1, 1], [], []>} : vector<64x32xbf16>, vector<64x128xbf16>, vector<32x128xf32> -> vector<32x128xf32>
    %187 = arith.truncf %58 : vector<32x128xf32> to vector<32x128xbf16>
    %c11 = arith.constant 11 : index
    %c0_112 = arith.constant 0 : index
    %c0_113 = arith.constant 0 : index
    %188 = vector.load %arg4[%c11, %c0_112, %c0_113] : memref<24x128x128xbf16, #tpu.memory_space<vmem>>, vector<1x128x128xbf16>
    %189 = vector.shape_cast %188 : vector<1x128x128xbf16> to vector<128x128xbf16>
    %cst_114 = arith.constant dense<0.000000e+00> : vector<32x128xf32>
    %190 = tpu.matmul %187, %189, %cst_114 {dimension_numbers = #tpu.dot_dimension_numbers<[1], [0], [0], [1], [0, 0, 1, 1], [], []>} : vector<32x128xbf16>, vector<128x128xbf16>, vector<32x128xf32> -> vector<32x128xf32>
    %191 = arith.truncf %186 : vector<32x128xf32> to vector<32x128xbf16>
    %c12 = arith.constant 12 : index
    %c0_115 = arith.constant 0 : index
    %c0_116 = arith.constant 0 : index
    %192 = vector.load %arg4[%c12, %c0_115, %c0_116] : memref<24x128x128xbf16, #tpu.memory_space<vmem>>, vector<1x128x128xbf16>
    %193 = vector.shape_cast %192 : vector<1x128x128xbf16> to vector<128x128xbf16>
    %cst_117 = arith.constant dense<0.000000e+00> : vector<32x128xf32>
    %194 = tpu.matmul %191, %193, %cst_117 {dimension_numbers = #tpu.dot_dimension_numbers<[1], [0], [0], [1], [0, 0, 1, 1], [], []>} : vector<32x128xbf16>, vector<128x128xbf16>, vector<32x128xf32> -> vector<32x128xf32>
    %195 = arith.addf %190, %194 : vector<32x128xf32>
    %c9_118 = arith.constant 9 : index
    %c0_119 = arith.constant 0 : index
    %c0_120 = arith.constant 0 : index
    %196 = vector.load %arg5[%c9_118, %c0_119, %c0_120] : memref<18x1x128xf32, #tpu.memory_space<vmem>>, vector<1x1x128xf32>
    %197 = vector.shape_cast %196 : vector<1x1x128xf32> to vector<1x128xf32>
    %198 = vector.broadcast %197 : vector<1x128xf32> to vector<32x128xf32>
    %199 = arith.addf %195, %198 : vector<32x128xf32>
    %cst_121 = arith.constant 0.000000e+00 : f32
    %200 = vector.broadcast %cst_121 : f32 to vector<32x128xf32>
    %201 = arith.maximumf %199, %200 : vector<32x128xf32>
    %202 = arith.truncf %201 : vector<32x128xf32> to vector<32x128xbf16>
    %c13 = arith.constant 13 : index
    %c0_122 = arith.constant 0 : index
    %c0_123 = arith.constant 0 : index
    %203 = vector.load %arg4[%c13, %c0_122, %c0_123] : memref<24x128x128xbf16, #tpu.memory_space<vmem>>, vector<1x128x128xbf16>
    %204 = vector.shape_cast %203 : vector<1x128x128xbf16> to vector<128x128xbf16>
    %cst_124 = arith.constant dense<0.000000e+00> : vector<32x128xf32>
    %205 = tpu.matmul %202, %204, %cst_124 {dimension_numbers = #tpu.dot_dimension_numbers<[1], [0], [0], [1], [0, 0, 1, 1], [], []>} : vector<32x128xbf16>, vector<128x128xbf16>, vector<32x128xf32> -> vector<32x128xf32>
    %c10_125 = arith.constant 10 : index
    %c0_126 = arith.constant 0 : index
    %c0_127 = arith.constant 0 : index
    %206 = vector.load %arg5[%c10_125, %c0_126, %c0_127] : memref<18x1x128xf32, #tpu.memory_space<vmem>>, vector<1x1x128xf32>
    %207 = vector.shape_cast %206 : vector<1x1x128xf32> to vector<1x128xf32>
    %208 = vector.broadcast %207 : vector<1x128xf32> to vector<32x128xf32>
    %209 = arith.addf %205, %208 : vector<32x128xf32>
    %cst_128 = arith.constant 0.000000e+00 : f32
    %210 = vector.broadcast %cst_128 : f32 to vector<32x128xf32>
    %211 = arith.maximumf %209, %210 : vector<32x128xf32>
    %212 = arith.truncf %211 : vector<32x128xf32> to vector<32x128xbf16>
    %c14 = arith.constant 14 : index
    %c0_129 = arith.constant 0 : index
    %c0_130 = arith.constant 0 : index
    %213 = vector.load %arg4[%c14, %c0_129, %c0_130] : memref<24x128x128xbf16, #tpu.memory_space<vmem>>, vector<1x128x128xbf16>
    %214 = vector.shape_cast %213 : vector<1x128x128xbf16> to vector<128x128xbf16>
    %cst_131 = arith.constant dense<0.000000e+00> : vector<32x128xf32>
    %215 = tpu.matmul %212, %214, %cst_131 {dimension_numbers = #tpu.dot_dimension_numbers<[1], [0], [0], [1], [0, 0, 1, 1], [], []>} : vector<32x128xbf16>, vector<128x128xbf16>, vector<32x128xf32> -> vector<32x128xf32>
    %c11_132 = arith.constant 11 : index
    %c0_133 = arith.constant 0 : index
    %c0_134 = arith.constant 0 : index
    %216 = vector.load %arg5[%c11_132, %c0_133, %c0_134] : memref<18x1x128xf32, #tpu.memory_space<vmem>>, vector<1x1x128xf32>
    %217 = vector.shape_cast %216 : vector<1x1x128xf32> to vector<1x128xf32>
    %218 = vector.broadcast %217 : vector<1x128xf32> to vector<32x128xf32>
    %219 = arith.addf %215, %218 : vector<32x128xf32>
    %cst_135 = arith.constant dense<0.000000e+00> : vector<32xf32>
    %220 = vector.multi_reduction <add>, %219, %cst_135 [1] : vector<32x128xf32> to vector<32xf32>
    %221 = vector.shape_cast %220 : vector<32xf32> to vector<32x1xf32>
    %cst_136 = arith.constant 3.125000e-02 : f32
    %222 = vector.broadcast %cst_136 : f32 to vector<32x1xf32>
    %223 = arith.mulf %221, %222 : vector<32x1xf32>
    %224 = arith.mulf %219, %219 : vector<32x128xf32>
    %cst_137 = arith.constant dense<0.000000e+00> : vector<32xf32>
    %225 = vector.multi_reduction <add>, %224, %cst_137 [1] : vector<32x128xf32> to vector<32xf32>
    %226 = vector.shape_cast %225 : vector<32xf32> to vector<32x1xf32>
    %cst_138 = arith.constant 3.125000e-02 : f32
    %227 = vector.broadcast %cst_138 : f32 to vector<32x1xf32>
    %228 = arith.mulf %226, %227 : vector<32x1xf32>
    %229 = arith.mulf %223, %223 : vector<32x1xf32>
    %230 = arith.subf %228, %229 : vector<32x1xf32>
    %cst_139 = arith.constant 0.000000e+00 : f32
    %231 = vector.broadcast %cst_139 : f32 to vector<32x1xf32>
    %232 = arith.maximumf %230, %231 : vector<32x1xf32>
    %233 = vector.broadcast %223 : vector<32x1xf32> to vector<32x128xf32>
    %234 = arith.subf %219, %233 : vector<32x128xf32>
    %cst_140 = arith.constant 9.99999974E-6 : f32
    %235 = vector.broadcast %cst_140 : f32 to vector<32x1xf32>
    %236 = arith.addf %232, %235 : vector<32x1xf32>
    %237 = math.rsqrt %236 : vector<32x1xf32>
    %238 = vector.broadcast %237 : vector<32x1xf32> to vector<32x128xf32>
    %239 = arith.mulf %234, %238 : vector<32x128xf32>
    %c3_141 = arith.constant 3 : index
    %c0_142 = arith.constant 0 : index
    %c0_143 = arith.constant 0 : index
    %240 = vector.load %arg6[%c3_141, %c0_142, %c0_143] : memref<6x1x128xf32, #tpu.memory_space<vmem>>, vector<1x1x128xf32>
    %241 = vector.shape_cast %240 : vector<1x1x128xf32> to vector<1x128xf32>
    %242 = vector.broadcast %241 : vector<1x128xf32> to vector<32x128xf32>
    %243 = arith.mulf %239, %242 : vector<32x128xf32>
    %c3_144 = arith.constant 3 : index
    %c0_145 = arith.constant 0 : index
    %c0_146 = arith.constant 0 : index
    %244 = vector.load %arg7[%c3_144, %c0_145, %c0_146] : memref<6x1x128xf32, #tpu.memory_space<vmem>>, vector<1x1x128xf32>
    %245 = vector.shape_cast %244 : vector<1x1x128xf32> to vector<1x128xf32>
    %246 = vector.broadcast %245 : vector<1x128xf32> to vector<32x128xf32>
    %247 = arith.addf %243, %246 : vector<32x128xf32>
    %248 = arith.addf %247, %58 : vector<32x128xf32>
    %249 = arith.addf %184, %115 : vector<64x128xf32>
    %250 = arith.truncf %248 : vector<32x128xf32> to vector<32x128xbf16>
    %cst_147 = arith.constant dense<0.000000e+00> : vector<64x128xf32>
    %251 = tpu.matmul %0, %250, %cst_147 {dimension_numbers = #tpu.dot_dimension_numbers<[1], [0], [0], [1], [0, 0, 1, 1], [], []>} : vector<64x32xbf16>, vector<32x128xbf16>, vector<64x128xf32> -> vector<64x128xf32>
    %cst_148 = arith.constant dense<0.000000e+00> : vector<64x128xf32>
    %252 = tpu.matmul %1, %250, %cst_148 {dimension_numbers = #tpu.dot_dimension_numbers<[1], [0], [0], [1], [0, 0, 1, 1], [], []>} : vector<64x32xbf16>, vector<32x128xbf16>, vector<64x128xf32> -> vector<64x128xf32>
    %253 = arith.truncf %249 : vector<64x128xf32> to vector<64x128xbf16>
    %c15 = arith.constant 15 : index
    %c0_149 = arith.constant 0 : index
    %c0_150 = arith.constant 0 : index
    %254 = vector.load %arg4[%c15, %c0_149, %c0_150] : memref<24x128x128xbf16, #tpu.memory_space<vmem>>, vector<1x128x128xbf16>
    %255 = vector.shape_cast %254 : vector<1x128x128xbf16> to vector<128x128xbf16>
    %cst_151 = arith.constant dense<0.000000e+00> : vector<64x128xf32>
    %256 = tpu.matmul %253, %255, %cst_151 {dimension_numbers = #tpu.dot_dimension_numbers<[1], [0], [0], [1], [0, 0, 1, 1], [], []>} : vector<64x128xbf16>, vector<128x128xbf16>, vector<64x128xf32> -> vector<64x128xf32>
    %257 = arith.truncf %251 : vector<64x128xf32> to vector<64x128xbf16>
    %c16 = arith.constant 16 : index
    %c0_152 = arith.constant 0 : index
    %c0_153 = arith.constant 0 : index
    %258 = vector.load %arg4[%c16, %c0_152, %c0_153] : memref<24x128x128xbf16, #tpu.memory_space<vmem>>, vector<1x128x128xbf16>
    %259 = vector.shape_cast %258 : vector<1x128x128xbf16> to vector<128x128xbf16>
    %cst_154 = arith.constant dense<0.000000e+00> : vector<64x128xf32>
    %260 = tpu.matmul %257, %259, %cst_154 {dimension_numbers = #tpu.dot_dimension_numbers<[1], [0], [0], [1], [0, 0, 1, 1], [], []>} : vector<64x128xbf16>, vector<128x128xbf16>, vector<64x128xf32> -> vector<64x128xf32>
    %261 = arith.addf %256, %260 : vector<64x128xf32>
    %262 = arith.truncf %252 : vector<64x128xf32> to vector<64x128xbf16>
    %c17 = arith.constant 17 : index
    %c0_155 = arith.constant 0 : index
    %c0_156 = arith.constant 0 : index
    %263 = vector.load %arg4[%c17, %c0_155, %c0_156] : memref<24x128x128xbf16, #tpu.memory_space<vmem>>, vector<1x128x128xbf16>
    %264 = vector.shape_cast %263 : vector<1x128x128xbf16> to vector<128x128xbf16>
    %cst_157 = arith.constant dense<0.000000e+00> : vector<64x128xf32>
    %265 = tpu.matmul %262, %264, %cst_157 {dimension_numbers = #tpu.dot_dimension_numbers<[1], [0], [0], [1], [0, 0, 1, 1], [], []>} : vector<64x128xbf16>, vector<128x128xbf16>, vector<64x128xf32> -> vector<64x128xf32>
    %266 = arith.addf %261, %265 : vector<64x128xf32>
    %c12_158 = arith.constant 12 : index
    %c0_159 = arith.constant 0 : index
    %c0_160 = arith.constant 0 : index
    %267 = vector.load %arg5[%c12_158, %c0_159, %c0_160] : memref<18x1x128xf32, #tpu.memory_space<vmem>>, vector<1x1x128xf32>
    %268 = vector.shape_cast %267 : vector<1x1x128xf32> to vector<1x128xf32>
    %269 = vector.broadcast %268 : vector<1x128xf32> to vector<64x128xf32>
    %270 = arith.addf %266, %269 : vector<64x128xf32>
    %cst_161 = arith.constant 0.000000e+00 : f32
    %271 = vector.broadcast %cst_161 : f32 to vector<64x128xf32>
    %272 = arith.maximumf %270, %271 : vector<64x128xf32>
    %273 = arith.truncf %272 : vector<64x128xf32> to vector<64x128xbf16>
    %c18 = arith.constant 18 : index
    %c0_162 = arith.constant 0 : index
    %c0_163 = arith.constant 0 : index
    %274 = vector.load %arg4[%c18, %c0_162, %c0_163] : memref<24x128x128xbf16, #tpu.memory_space<vmem>>, vector<1x128x128xbf16>
    %275 = vector.shape_cast %274 : vector<1x128x128xbf16> to vector<128x128xbf16>
    %cst_164 = arith.constant dense<0.000000e+00> : vector<64x128xf32>
    %276 = tpu.matmul %273, %275, %cst_164 {dimension_numbers = #tpu.dot_dimension_numbers<[1], [0], [0], [1], [0, 0, 1, 1], [], []>} : vector<64x128xbf16>, vector<128x128xbf16>, vector<64x128xf32> -> vector<64x128xf32>
    %c13_165 = arith.constant 13 : index
    %c0_166 = arith.constant 0 : index
    %c0_167 = arith.constant 0 : index
    %277 = vector.load %arg5[%c13_165, %c0_166, %c0_167] : memref<18x1x128xf32, #tpu.memory_space<vmem>>, vector<1x1x128xf32>
    %278 = vector.shape_cast %277 : vector<1x1x128xf32> to vector<1x128xf32>
    %279 = vector.broadcast %278 : vector<1x128xf32> to vector<64x128xf32>
    %280 = arith.addf %276, %279 : vector<64x128xf32>
    %cst_168 = arith.constant 0.000000e+00 : f32
    %281 = vector.broadcast %cst_168 : f32 to vector<64x128xf32>
    %282 = arith.maximumf %280, %281 : vector<64x128xf32>
    %283 = arith.truncf %282 : vector<64x128xf32> to vector<64x128xbf16>
    %c19 = arith.constant 19 : index
    %c0_169 = arith.constant 0 : index
    %c0_170 = arith.constant 0 : index
    %284 = vector.load %arg4[%c19, %c0_169, %c0_170] : memref<24x128x128xbf16, #tpu.memory_space<vmem>>, vector<1x128x128xbf16>
    %285 = vector.shape_cast %284 : vector<1x128x128xbf16> to vector<128x128xbf16>
    %cst_171 = arith.constant dense<0.000000e+00> : vector<64x128xf32>
    %286 = tpu.matmul %283, %285, %cst_171 {dimension_numbers = #tpu.dot_dimension_numbers<[1], [0], [0], [1], [0, 0, 1, 1], [], []>} : vector<64x128xbf16>, vector<128x128xbf16>, vector<64x128xf32> -> vector<64x128xf32>
    %c14_172 = arith.constant 14 : index
    %c0_173 = arith.constant 0 : index
    %c0_174 = arith.constant 0 : index
    %287 = vector.load %arg5[%c14_172, %c0_173, %c0_174] : memref<18x1x128xf32, #tpu.memory_space<vmem>>, vector<1x1x128xf32>
    %288 = vector.shape_cast %287 : vector<1x1x128xf32> to vector<1x128xf32>
    %289 = vector.broadcast %288 : vector<1x128xf32> to vector<64x128xf32>
    %290 = arith.addf %286, %289 : vector<64x128xf32>
    %cst_175 = arith.constant dense<0.000000e+00> : vector<64xf32>
    %291 = vector.multi_reduction <add>, %290, %cst_175 [1] : vector<64x128xf32> to vector<64xf32>
    %292 = vector.shape_cast %291 : vector<64xf32> to vector<64x1xf32>
    %cst_176 = arith.constant 3.125000e-02 : f32
    %293 = vector.broadcast %cst_176 : f32 to vector<64x1xf32>
    %294 = arith.mulf %292, %293 : vector<64x1xf32>
    %295 = arith.mulf %290, %290 : vector<64x128xf32>
    %cst_177 = arith.constant dense<0.000000e+00> : vector<64xf32>
    %296 = vector.multi_reduction <add>, %295, %cst_177 [1] : vector<64x128xf32> to vector<64xf32>
    %297 = vector.shape_cast %296 : vector<64xf32> to vector<64x1xf32>
    %cst_178 = arith.constant 3.125000e-02 : f32
    %298 = vector.broadcast %cst_178 : f32 to vector<64x1xf32>
    %299 = arith.mulf %297, %298 : vector<64x1xf32>
    %300 = arith.mulf %294, %294 : vector<64x1xf32>
    %301 = arith.subf %299, %300 : vector<64x1xf32>
    %cst_179 = arith.constant 0.000000e+00 : f32
    %302 = vector.broadcast %cst_179 : f32 to vector<64x1xf32>
    %303 = arith.maximumf %301, %302 : vector<64x1xf32>
    %304 = vector.broadcast %294 : vector<64x1xf32> to vector<64x128xf32>
    %305 = arith.subf %290, %304 : vector<64x128xf32>
    %cst_180 = arith.constant 9.99999974E-6 : f32
    %306 = vector.broadcast %cst_180 : f32 to vector<64x1xf32>
    %307 = arith.addf %303, %306 : vector<64x1xf32>
    %308 = math.rsqrt %307 : vector<64x1xf32>
    %309 = vector.broadcast %308 : vector<64x1xf32> to vector<64x128xf32>
    %310 = arith.mulf %305, %309 : vector<64x128xf32>
    %c4_181 = arith.constant 4 : index
    %c0_182 = arith.constant 0 : index
    %c0_183 = arith.constant 0 : index
    %311 = vector.load %arg6[%c4_181, %c0_182, %c0_183] : memref<6x1x128xf32, #tpu.memory_space<vmem>>, vector<1x1x128xf32>
    %312 = vector.shape_cast %311 : vector<1x1x128xf32> to vector<1x128xf32>
    %313 = vector.broadcast %312 : vector<1x128xf32> to vector<64x128xf32>
    %314 = arith.mulf %310, %313 : vector<64x128xf32>
    %c4_184 = arith.constant 4 : index
    %c0_185 = arith.constant 0 : index
    %c0_186 = arith.constant 0 : index
    %315 = vector.load %arg7[%c4_184, %c0_185, %c0_186] : memref<6x1x128xf32, #tpu.memory_space<vmem>>, vector<1x1x128xf32>
    %316 = vector.shape_cast %315 : vector<1x1x128xf32> to vector<1x128xf32>
    %317 = vector.broadcast %316 : vector<1x128xf32> to vector<64x128xf32>
    %318 = arith.addf %314, %317 : vector<64x128xf32>
    %319 = arith.truncf %318 : vector<64x128xf32> to vector<64x128xbf16>
    %cst_187 = arith.constant dense<0.000000e+00> : vector<32x128xf32>
    %320 = tpu.matmul %0, %319, %cst_187 {dimension_numbers = #tpu.dot_dimension_numbers<[0], [0], [1], [1], [0, 1, 1, 1], [], []>} : vector<64x32xbf16>, vector<64x128xbf16>, vector<32x128xf32> -> vector<32x128xf32>
    %321 = arith.truncf %248 : vector<32x128xf32> to vector<32x128xbf16>
    %c20 = arith.constant 20 : index
    %c0_188 = arith.constant 0 : index
    %c0_189 = arith.constant 0 : index
    %322 = vector.load %arg4[%c20, %c0_188, %c0_189] : memref<24x128x128xbf16, #tpu.memory_space<vmem>>, vector<1x128x128xbf16>
    %323 = vector.shape_cast %322 : vector<1x128x128xbf16> to vector<128x128xbf16>
    %cst_190 = arith.constant dense<0.000000e+00> : vector<32x128xf32>
    %324 = tpu.matmul %321, %323, %cst_190 {dimension_numbers = #tpu.dot_dimension_numbers<[1], [0], [0], [1], [0, 0, 1, 1], [], []>} : vector<32x128xbf16>, vector<128x128xbf16>, vector<32x128xf32> -> vector<32x128xf32>
    %325 = arith.truncf %320 : vector<32x128xf32> to vector<32x128xbf16>
    %c21 = arith.constant 21 : index
    %c0_191 = arith.constant 0 : index
    %c0_192 = arith.constant 0 : index
    %326 = vector.load %arg4[%c21, %c0_191, %c0_192] : memref<24x128x128xbf16, #tpu.memory_space<vmem>>, vector<1x128x128xbf16>
    %327 = vector.shape_cast %326 : vector<1x128x128xbf16> to vector<128x128xbf16>
    %cst_193 = arith.constant dense<0.000000e+00> : vector<32x128xf32>
    %328 = tpu.matmul %325, %327, %cst_193 {dimension_numbers = #tpu.dot_dimension_numbers<[1], [0], [0], [1], [0, 0, 1, 1], [], []>} : vector<32x128xbf16>, vector<128x128xbf16>, vector<32x128xf32> -> vector<32x128xf32>
    %329 = arith.addf %324, %328 : vector<32x128xf32>
    %c15_194 = arith.constant 15 : index
    %c0_195 = arith.constant 0 : index
    %c0_196 = arith.constant 0 : index
    %330 = vector.load %arg5[%c15_194, %c0_195, %c0_196] : memref<18x1x128xf32, #tpu.memory_space<vmem>>, vector<1x1x128xf32>
    %331 = vector.shape_cast %330 : vector<1x1x128xf32> to vector<1x128xf32>
    %332 = vector.broadcast %331 : vector<1x128xf32> to vector<32x128xf32>
    %333 = arith.addf %329, %332 : vector<32x128xf32>
    %cst_197 = arith.constant 0.000000e+00 : f32
    %334 = vector.broadcast %cst_197 : f32 to vector<32x128xf32>
    %335 = arith.maximumf %333, %334 : vector<32x128xf32>
    %336 = arith.truncf %335 : vector<32x128xf32> to vector<32x128xbf16>
    %c22 = arith.constant 22 : index
    %c0_198 = arith.constant 0 : index
    %c0_199 = arith.constant 0 : index
    %337 = vector.load %arg4[%c22, %c0_198, %c0_199] : memref<24x128x128xbf16, #tpu.memory_space<vmem>>, vector<1x128x128xbf16>
    %338 = vector.shape_cast %337 : vector<1x128x128xbf16> to vector<128x128xbf16>
    %cst_200 = arith.constant dense<0.000000e+00> : vector<32x128xf32>
    %339 = tpu.matmul %336, %338, %cst_200 {dimension_numbers = #tpu.dot_dimension_numbers<[1], [0], [0], [1], [0, 0, 1, 1], [], []>} : vector<32x128xbf16>, vector<128x128xbf16>, vector<32x128xf32> -> vector<32x128xf32>
    %c16_201 = arith.constant 16 : index
    %c0_202 = arith.constant 0 : index
    %c0_203 = arith.constant 0 : index
    %340 = vector.load %arg5[%c16_201, %c0_202, %c0_203] : memref<18x1x128xf32, #tpu.memory_space<vmem>>, vector<1x1x128xf32>
    %341 = vector.shape_cast %340 : vector<1x1x128xf32> to vector<1x128xf32>
    %342 = vector.broadcast %341 : vector<1x128xf32> to vector<32x128xf32>
    %343 = arith.addf %339, %342 : vector<32x128xf32>
    %cst_204 = arith.constant 0.000000e+00 : f32
    %344 = vector.broadcast %cst_204 : f32 to vector<32x128xf32>
    %345 = arith.maximumf %343, %344 : vector<32x128xf32>
    %346 = arith.truncf %345 : vector<32x128xf32> to vector<32x128xbf16>
    %c23 = arith.constant 23 : index
    %c0_205 = arith.constant 0 : index
    %c0_206 = arith.constant 0 : index
    %347 = vector.load %arg4[%c23, %c0_205, %c0_206] : memref<24x128x128xbf16, #tpu.memory_space<vmem>>, vector<1x128x128xbf16>
    %348 = vector.shape_cast %347 : vector<1x128x128xbf16> to vector<128x128xbf16>
    %cst_207 = arith.constant dense<0.000000e+00> : vector<32x128xf32>
    %349 = tpu.matmul %346, %348, %cst_207 {dimension_numbers = #tpu.dot_dimension_numbers<[1], [0], [0], [1], [0, 0, 1, 1], [], []>} : vector<32x128xbf16>, vector<128x128xbf16>, vector<32x128xf32> -> vector<32x128xf32>
    %c17_208 = arith.constant 17 : index
    %c0_209 = arith.constant 0 : index
    %c0_210 = arith.constant 0 : index
    %350 = vector.load %arg5[%c17_208, %c0_209, %c0_210] : memref<18x1x128xf32, #tpu.memory_space<vmem>>, vector<1x1x128xf32>
    %351 = vector.shape_cast %350 : vector<1x1x128xf32> to vector<1x128xf32>
    %352 = vector.broadcast %351 : vector<1x128xf32> to vector<32x128xf32>
    %353 = arith.addf %349, %352 : vector<32x128xf32>
    %cst_211 = arith.constant dense<0.000000e+00> : vector<32xf32>
    %354 = vector.multi_reduction <add>, %353, %cst_211 [1] : vector<32x128xf32> to vector<32xf32>
    %355 = vector.shape_cast %354 : vector<32xf32> to vector<32x1xf32>
    %cst_212 = arith.constant 3.125000e-02 : f32
    %356 = vector.broadcast %cst_212 : f32 to vector<32x1xf32>
    %357 = arith.mulf %355, %356 : vector<32x1xf32>
    %358 = arith.mulf %353, %353 : vector<32x128xf32>
    %cst_213 = arith.constant dense<0.000000e+00> : vector<32xf32>
    %359 = vector.multi_reduction <add>, %358, %cst_213 [1] : vector<32x128xf32> to vector<32xf32>
    %360 = vector.shape_cast %359 : vector<32xf32> to vector<32x1xf32>
    %cst_214 = arith.constant 3.125000e-02 : f32
    %361 = vector.broadcast %cst_214 : f32 to vector<32x1xf32>
    %362 = arith.mulf %360, %361 : vector<32x1xf32>
    %363 = arith.mulf %357, %357 : vector<32x1xf32>
    %364 = arith.subf %362, %363 : vector<32x1xf32>
    %cst_215 = arith.constant 0.000000e+00 : f32
    %365 = vector.broadcast %cst_215 : f32 to vector<32x1xf32>
    %366 = arith.maximumf %364, %365 : vector<32x1xf32>
    %367 = vector.broadcast %357 : vector<32x1xf32> to vector<32x128xf32>
    %368 = arith.subf %353, %367 : vector<32x128xf32>
    %cst_216 = arith.constant 9.99999974E-6 : f32
    %369 = vector.broadcast %cst_216 : f32 to vector<32x1xf32>
    %370 = arith.addf %366, %369 : vector<32x1xf32>
    %371 = math.rsqrt %370 : vector<32x1xf32>
    %372 = vector.broadcast %371 : vector<32x1xf32> to vector<32x128xf32>
    %373 = arith.mulf %368, %372 : vector<32x128xf32>
    %c5_217 = arith.constant 5 : index
    %c0_218 = arith.constant 0 : index
    %c0_219 = arith.constant 0 : index
    %374 = vector.load %arg6[%c5_217, %c0_218, %c0_219] : memref<6x1x128xf32, #tpu.memory_space<vmem>>, vector<1x1x128xf32>
    %375 = vector.shape_cast %374 : vector<1x1x128xf32> to vector<1x128xf32>
    %376 = vector.broadcast %375 : vector<1x128xf32> to vector<32x128xf32>
    %377 = arith.mulf %373, %376 : vector<32x128xf32>
    %c5_220 = arith.constant 5 : index
    %c0_221 = arith.constant 0 : index
    %c0_222 = arith.constant 0 : index
    %378 = vector.load %arg7[%c5_220, %c0_221, %c0_222] : memref<6x1x128xf32, #tpu.memory_space<vmem>>, vector<1x1x128xf32>
    %379 = vector.shape_cast %378 : vector<1x1x128xf32> to vector<1x128xf32>
    %380 = vector.broadcast %379 : vector<1x128xf32> to vector<32x128xf32>
    %381 = arith.addf %377, %380 : vector<32x128xf32>
    %382 = arith.addf %381, %248 : vector<32x128xf32>
    %383 = arith.addf %318, %249 : vector<64x128xf32>
    %c0_223 = arith.constant 0 : index
    %c0_224 = arith.constant 0 : index
    %384 = vector.load %arg8[%c0_223, %c0_224] : memref<32x128xf32, #tpu.memory_space<vmem>>, vector<32x128xf32>
    tpu.vector_store %arg8[%c0_223, %c0_224], %382 {strides = array<i32>} : memref<32x128xf32, #tpu.memory_space<vmem>>, vector<32x128xf32>,
    %c0_225 = arith.constant 0 : index
    %c0_226 = arith.constant 0 : index
    %385 = vector.load %arg9[%c0_225, %c0_226] : memref<64x128xf32, #tpu.memory_space<vmem>>, vector<64x128xf32>
    tpu.vector_store %arg9[%c0_225, %c0_226], %383 {strides = array<i32>} : memref<64x128xf32, #tpu.memory_space<vmem>>, vector<64x128xf32>,
    return
  }
}

</mosaic_0001>

<bundles_post_ra>
// kernel: encode_process_pallas.1
= control target key start
LH: loop header
LB: loop body
LE: loop exit
PB: predicated region body
PF: predicated region fallthrough
CT: control target
= control target key end

     0   :  { %vm1124_vm0 = vcmask 261120   ;;  %vm2193_vm1 = vcmask 523264   ;;  %s7782_s4 = inlined_call_operand.vmem [shape: bf16[24,128,128], index: 4, kind: input, shape index: {}]   ;;  %s7783_s0 = inlined_call_operand.vmem [shape: f32[32,128], index: 0, kind: input, shape index: {}]   ;;  %s7784_s5 = inlined_call_operand.vmem [shape: f32[18,1,128], index: 5, kind: input, shape index: {}]   ;;  %s7785_s1 = inlined_call_operand.vmem [shape: f32[64,128], index: 1, kind: input, shape index: {}]   ;;  %s7786_s2 = inlined_call_operand.vmem [shape: bf16[64,32], index: 2, kind: input, shape index: {}]   ;;  %s7787_s3 = inlined_call_operand.vmem [shape: bf16[64,32], index: 3, kind: input, shape index: {}]   ;;  %s7788_s6 = inlined_call_operand.vmem [shape: f32[6,1,128], index: 6, kind: input, shape index: {}]   ;;  %s7789_s7 = inlined_call_operand.vmem [shape: f32[6,1,128], index: 7, kind: input, shape index: {}]   ;;  %s7790_s9 = inlined_call_operand.vmem [shape: f32[64,128], index: 9, kind: output, shape index: {1}]   ;;  %s7791_s8 = inlined_call_operand.vmem [shape: f32[32,128], index: 8, kind: output, shape index: {0}]  }
   0x1   :  { %v6096_v0 = vld [vmem:[%s7782_s4] sm:$0xff]   ;;  %v6097_v1 = vld [vmem:[%s7782_s4 + $0x8] sm:$0xff]   ;;  %v6098_v2 = vld [vmem:[%s7782_s4 + $0x10] sm:$0xff]  }
   0x2   :  { %5451 = vmatprep.subr.bf16.mxu0 %v6096_v0  ;;  %v6099_v3 = vld [vmem:[%s7782_s4 + $0x18] sm:$0xff]   ;;  %v48_v4 = vld [vmem:[%s7783_s0] sm:$0xff]  ;;  %v49_v5 = vld [vmem:[%s7783_s0 + $0x8] sm:$0xff] }
   0x3   :  { %5452 = vmatpush3.bf16.msra.mxu0 %v6096_v0  ;;  %v52_v6 = vpack.c.bf16 %v49_v5, %v48_v4  ;;  %v6104_v7 = vld [vmem:[%s7782_s4 + $0x40] sm:$0xff]   ;;  %v6105_v8 = vld [vmem:[%s7782_s4 + $0x48] sm:$0xff]   ;;  %v6106_v10 = vld [vmem:[%s7782_s4 + $0x50] sm:$0xff]  }
   0x4   :  { %5453 = vmatprep.subr.bf16.mxu0 %v6097_v1  ;;  %v6100_v9 = vld [vmem:[%s7782_s4 + $0x20] sm:$0xff]   ;;  %5471 = vmatprep.subr.bf16.mxu1 %v6104_v7  ;;  %v6101_v11 = vld [vmem:[%s7782_s4 + $0x28] sm:$0xff]   ;;  %v6107_v12 = vld [vmem:[%s7782_s4 + $0x58] sm:$0xff]  }
   0x5   :  { %5467 = vmatprep.mubr.bf16.mxu0 %v52_v6  ;;  %5472 = vmatpush3.bf16.msra.mxu1 %v6104_v7  ;;  %v6102_v13 = vld [vmem:[%s7782_s4 + $0x30] sm:$0xff]   ;;  %v6108_v14 = vld [vmem:[%s7782_s4 + $0x60] sm:$0xff]   ;;  %v6103_v15 = vld [vmem:[%s7782_s4 + $0x38] sm:$0xff]  }
   0x6   :  { %5473 = vmatprep.subr.bf16.mxu1 %v6105_v8  ;;  %v6109_v16 = vld [vmem:[%s7782_s4 + $0x68] sm:$0xff]   ;;  %v50_v17 = vld [vmem:[%s7783_s0 + $0x10] sm:$0xff]  ;;  %v51_v18 = vld [vmem:[%s7783_s0 + $0x18] sm:$0xff] }
   0x7   :  { %5454 = vmatpush3.bf16.msra.mxu0 %v6097_v1  ;;  %v53_v19 = vpack.c.bf16 %v51_v18, %v50_v17  ;;  %v6110_v20 = vld [vmem:[%s7782_s4 + $0x70] sm:$0xff]   ;;  %v6111_v21 = vld [vmem:[%s7782_s4 + $0x78] sm:$0xff]   ;;  %v6112_v22 = vld [vmem:[%s7782_s4 + $0xc0] sm:$0xff]  }
   0x8   :  { %5455 = vmatprep.subr.bf16.mxu0 %v6098_v2  ;;  %v6120_v23 = vld [vmem:[%s7782_s4 + $0x80] sm:$0xff]   ;;  %v6121_v24 = vld [vmem:[%s7782_s4 + $0x88] sm:$0xff]   ;;  %v6122_v25 = vld [vmem:[%s7782_s4 + $0x90] sm:$0xff]  }
   0x9   :  { %5474 = vmatpush3.bf16.msra.mxu1 %v6105_v8  ;;  %v6123_v26 = vld [vmem:[%s7782_s4 + $0x98] sm:$0xff]   ;;  %v6124_v27 = vld [vmem:[%s7782_s4 + $0xa0] sm:$0xff]   ;;  %v6125_v28 = vld [vmem:[%s7782_s4 + $0xa8] sm:$0xff]  }
   0xa   :  { %5475 = vmatprep.subr.bf16.mxu1 %v6106_v10  ;;  %v4504_v29 = vld [vmem:[%s7784_s5] ss:$0 sm:$0xff]  ;;  %v509_v41 = vld [vmem:[%s7785_s1 + $0x8] sm:$0xff]  ;;  %v6114_v48 = vld [vmem:[%s7782_s4 + $0xd0] sm:$0xff]  }
   0xb   :  { %5456 = vmatpush3.bf16.msra.mxu0 %v6098_v2  ;;  %v508_v40 = vld [vmem:[%s7785_s1] sm:$0xff]  ;;  %v6113_v47 = vld [vmem:[%s7782_s4 + $0xc8] sm:$0xff]   ;;  %v6115_v49 = vld [vmem:[%s7782_s4 + $0xd8] sm:$0xff]  }
   0xc   :  { %5457 = vmatprep.subr.bf16.mxu0 %v6099_v3  ;;  %v516_v46 = vpack.c.bf16 %v509_v41, %v508_v40  ;;  %v6116_v50 = vld [vmem:[%s7782_s4 + $0xe0] sm:$0xff]   ;;  %v6117_v51 = vld [vmem:[%s7782_s4 + $0xe8] sm:$0xff]   ;;  %v6118_v52 = vld [vmem:[%s7782_s4 + $0xf0] sm:$0xff]  }
   0xd   :  { %5476 = vmatpush3.bf16.msra.mxu1 %v6106_v10  ;;  %v6119_v53 = vld [vmem:[%s7782_s4 + $0xf8] sm:$0xff]   ;;  %v510_v54 = vld [vmem:[%s7785_s1 + $0x10] sm:$0xff]  ;;  %v512_v56 = vld [vmem:[%s7785_s1 + $0x20] sm:$0xff] }
   0xe   :  { %5477 = vmatprep.subr.bf16.mxu1 %v6107_v12  ;;  %v511_v55 = vld [vmem:[%s7785_s1 + $0x18] sm:$0xff]  ;;  %v513_v57 = vld [vmem:[%s7785_s1 + $0x28] sm:$0xff]  ;;  %v514_v60 = vld [vmem:[%s7785_s1 + $0x30] sm:$0xff] }
   0xf   :  { %5458 = vmatpush3.bf16.msra.mxu0 %v6099_v3  ;;  %v517_v58 = vpack.c.bf16 %v511_v55, %v510_v54  ;;  %v518_v59 = vpack.c.bf16 %v513_v57, %v512_v56  ;;  %v515_v61 = vld [vmem:[%s7785_s1 + $0x38] sm:$0xff]  ;;  %v6126_v63 = vld [vmem:[%s7782_s4 + $0xb0] sm:$0xff]   ;;  %v6128_v1 = vld [vmem:[%s7782_s4 + $0x100] sm:$0xff]  }
  0x10   :  { %5459 = vmatprep.subr.bf16.mxu0 %v6100_v9  ;;  %v519_v62 = vpack.c.bf16 %v515_v61, %v514_v60  ;;  %v6127_v0 = vld [vmem:[%s7782_s4 + $0xb8] sm:$0xff]   ;;  %v4530_v2 = vld [vmem:[%s7784_s5 + $0x1] ss:$0 sm:$0xff]  ;;  %v6129_v17 = vld [vmem:[%s7782_s4 + $0x108] sm:$0xff]  }
  0x11   :  { %5478 = vmatpush3.bf16.msra.mxu1 %v6107_v12  ;;  %v6130_v18 = vld [vmem:[%s7782_s4 + $0x110] sm:$0xff]   ;;  %v6137_v54 = vld [vmem:[%s7782_s4 + $0x148] sm:$0xff]   ;;  %v6139_v56 = vld [vmem:[%s7782_s4 + $0x158] sm:$0xff]  }
  0x12   :  { %5479 = vmatprep.subr.bf16.mxu1 %v6108_v14  ;;  %v6138_v55 = vld [vmem:[%s7782_s4 + $0x150] sm:$0xff]   ;;  %v6140_v57 = vld [vmem:[%s7782_s4 + $0x160] sm:$0xff]   ;;  %v6143_v60 = vld [vmem:[%s7782_s4 + $0x178] sm:$0xff]  }
  0x13   :  { %5460 = vmatpush3.bf16.msra.mxu0 %v6100_v9  ;;  %v4556_v61 = vld [vmem:[%s7784_s5 + $0x2] ss:$0 sm:$0xff] }
  0x14   :  { %5461 = vmatprep.subr.bf16.mxu0 %v6101_v11 }
  0x15   :  { %5480 = vmatpush3.bf16.msra.mxu1 %v6108_v14 }
  0x16   :  { %5481 = vmatprep.subr.bf16.mxu1 %v6109_v16 }
  0x17   :  { %5462 = vmatpush3.bf16.msra.mxu0 %v6101_v11 }
  0x18   :  { %5463 = vmatprep.subr.bf16.mxu0 %v6102_v13 }
  0x19   :  { %5482 = vmatpush3.bf16.msra.mxu1 %v6109_v16 }
  0x1a   :  { %5483 = vmatprep.subr.bf16.mxu1 %v6110_v20 }
  0x1b   :  { %5464 = vmatpush3.bf16.msra.mxu0 %v6102_v13 }
  0x1c   :  { %5465 = vmatprep.subr.bf16.mxu0 %v6103_v15 }
  0x1d   :  { %5484 = vmatpush3.bf16.msra.mxu1 %v6110_v20  ;;  %v6132_v20 = vld [vmem:[%s7782_s4 + $0x120] sm:$0xff]  }
  0x1e   :  { %5485 = vmatprep.subr.bf16.mxu1 %v6111_v21 }
  0x1f   :  { %5466 = vmatpush3.bf16.msra.mxu0 %v6103_v15 }
  0x20   :  { %5491 = vmatprep.subr.bf16.mxu0 %v6120_v23 }
  0x21   :  { %5486 = vmatpush3.bf16.msra.mxu1 %v6111_v21  ;;  %v6133_v21 = vld [vmem:[%s7782_s4 + $0x128] sm:$0xff]  }
  0x22   :  { %5468 = vmatmul.mubr.bf16.vlgmr.msra.gmra.mrb[0].mxu0 %v53_v19  ;;  %5511 = vmatprep.subr.bf16.mxu1 %v6112_v22  ;;  %v6131_v19 = vld [vmem:[%s7782_s4 + $0x118] sm:$0xff]  }
  0x23   :  { %5492 = vmatpush3.bf16.msra.mxu0 %v6120_v23  ;;  %v4584_v23 = vld [vmem:[%s7784_s5 + $0x3] ss:$0 sm:$0xff] }
  0x24   :  { %5493 = vmatprep.subr.bf16.mxu0 %v6121_v24 }
  0x27   :  { %5494 = vmatpush3.bf16.msra.mxu0 %v6121_v24 }
  0x28   :  { %5495 = vmatprep.subr.bf16.mxu0 %v6122_v25 }
  0x2b   :  { %5496 = vmatpush3.bf16.msra.mxu0 %v6122_v25 }
  0x2c   :  { %5497 = vmatprep.subr.bf16.mxu0 %v6123_v26 }
  0x2f   :  { %5498 = vmatpush3.bf16.msra.mxu0 %v6123_v26 }
  0x30   :  { %5499 = vmatprep.subr.bf16.mxu0 %v6124_v27 }
  0x33   :  { %5500 = vmatpush3.bf16.msra.mxu0 %v6124_v27  ;;  %v6135_v27 = vld [vmem:[%s7782_s4 + $0x138] sm:$0xff]  }
  0x34   :  { %5501 = vmatprep.subr.bf16.mxu0 %v6125_v28 }
  0x37   :  { %5502 = vmatpush3.bf16.msra.mxu0 %v6125_v28 }
  0x38   :  { %5503 = vmatprep.subr.bf16.mxu0 %v6126_v63 }
  0x3b   :  { %5504 = vmatpush3.bf16.msra.mxu0 %v6126_v63 }
  0x3c   :  { %5505 = vmatprep.subr.bf16.mxu0 %v6127_v0 }
  0x3f   :  { %5506 = vmatpush3.bf16.msra.mxu0 %v6127_v0 }
  0x40   :  { %5535 = vmatprep.subr.bf16.mxu0 %v6128_v1 }
  0xf5   :  { %v5469_v30 = vpop.f32.mrb[0].mxu0 }
  0xf6   :  { %v168_v31 = vadd.f32 %v5469_v30, %v4504_v29  ;;  %v159_v32 = vpop.f32.mrb[1].mxu0 }
  0xf7   :  { %v160_v33 = vadd.f32 %v4504_v29, %v159_v32  ;;  %v5470_v34 = vpop.f32.mrb[2].mxu0 }
  0xf8   :  { %v171_v35 = vadd.f32 %v5470_v34, %v4504_v29  ;;  %v162_v36 = vpop.f32.mrb[3].mxu0  ;;  %v176_v38 = vmax.f32 %v168_v31, 0.0 }
  0xf9   :  { %v163_v37 = vadd.f32 %v4504_v29, %v162_v36  ;;  %v174_v42 = vmax.f32 %v160_v33, 0.0 }
  0xfa   :  { %v177_v39 = vmax.f32 %v171_v35, 0.0 }
  0xfb   :  { %v175_v43 = vmax.f32 %v163_v37, 0.0 }
  0xfc   :  { %v179_v44 = vpack.c.bf16 %v177_v39, %v176_v38 }
  0xfd   :  { %v178_v45 = vpack.c.bf16 %v175_v43, %v174_v42 }
  0xff   :  { %5487 = vmatprep.mubr.bf16.mxu1 %v178_v45 }
 0x100   :  { %5488 = vmatmul.mubr.bf16.vlgmr.msra.gmra.mrb[0].mxu1 %v179_v44 }
 0x101   :  { %5512 = vmatpush3.bf16.msra.mxu1 %v6112_v22  ;;  %5527 = vmatprep.mubr.bf16.mxu1 %v516_v46  ;;  %v6134_v22 = vld [vmem:[%s7782_s4 + $0x130] sm:$0xff]  }
 0x102   :  { %5513 = vmatprep.subr.bf16.mxu1 %v6113_v47 }
 0x105   :  { %5514 = vmatpush3.bf16.msra.mxu1 %v6113_v47 }
 0x106   :  { %5515 = vmatprep.subr.bf16.mxu1 %v6114_v48 }
 0x109   :  { %5516 = vmatpush3.bf16.msra.mxu1 %v6114_v48 }
 0x10a   :  { %5517 = vmatprep.subr.bf16.mxu1 %v6115_v49 }
 0x10d   :  { %5518 = vmatpush3.bf16.msra.mxu1 %v6115_v49 }
 0x10e   :  { %5519 = vmatprep.subr.bf16.mxu1 %v6116_v50 }
 0x111   :  { %5520 = vmatpush3.bf16.msra.mxu1 %v6116_v50 }
 0x112   :  { %5521 = vmatprep.subr.bf16.mxu1 %v6117_v51 }
 0x115   :  { %5522 = vmatpush3.bf16.msra.mxu1 %v6117_v51 }
 0x116   :  { %5523 = vmatprep.subr.bf16.mxu1 %v6118_v52 }
 0x119   :  { %5524 = vmatpush3.bf16.msra.mxu1 %v6118_v52 }
 0x11a   :  { %5525 = vmatprep.subr.bf16.mxu1 %v6119_v53 }
 0x11d   :  { %5526 = vmatpush3.bf16.msra.mxu1 %v6119_v53  ;;  %v6136_v53 = vld [vmem:[%s7782_s4 + $0x140] sm:$0xff]  }
 0x11e   :  { %5559 = vmatprep.subr.bf16.mxu1 %v6136_v53 }
 0x120   :  { %5528 = vmatmul.mubr.bf16.vlgmr.msra.gmra.mrb[4].mxu1 %v517_v58  ;;  %v6141_v58 = vld [vmem:[%s7782_s4 + $0x168] sm:$0xff]  }
 0x121   :  { %5531 = vmatprep.mubr.bf16.mxu1 %v518_v59  ;;  %5560 = vmatpush3.bf16.msra.mxu1 %v6136_v53  ;;  %v6142_v59 = vld [vmem:[%s7782_s4 + $0x170] sm:$0xff]  }
 0x122   :  { %5561 = vmatprep.subr.bf16.mxu1 %v6137_v54 }
 0x125   :  { %5562 = vmatpush3.bf16.msra.mxu1 %v6137_v54 }
 0x126   :  { %5563 = vmatprep.subr.bf16.mxu1 %v6138_v55 }
 0x128   :  { %5532 = vmatmul.mubr.bf16.gmra.mrb[8].mxu1 %v519_v62 }
 0x129   :  { %5564 = vmatpush3.bf16.msra.mxu1 %v6138_v55 }
 0x12a   :  { %5565 = vmatprep.subr.bf16.mxu1 %v6139_v56 }
 0x12d   :  { %5566 = vmatpush3.bf16.msra.mxu1 %v6139_v56 }
 0x12e   :  { %5567 = vmatprep.subr.bf16.mxu1 %v6140_v57 }
 0x131   :  { %5568 = vmatpush3.bf16.msra.mxu1 %v6140_v57 }
 0x132   :  { %5569 = vmatprep.subr.bf16.mxu1 %v6141_v58 }
 0x135   :  { %5570 = vmatpush3.bf16.msra.mxu1 %v6141_v58 }
 0x136   :  { %5571 = vmatprep.subr.bf16.mxu1 %v6142_v59 }
 0x139   :  { %5572 = vmatpush3.bf16.msra.mxu1 %v6142_v59 }
 0x13a   :  { %5573 = vmatprep.subr.bf16.mxu1 %v6143_v60 }
 0x13d   :  { %5574 = vmatpush3.bf16.msra.mxu1 %v6143_v60 }
 0x1d3   :  { %v5489_v3 = vpop.f32.mrb[0].mxu1 }
 0x1d4   :  { %v296_v4 = vadd.f32 %v5489_v3, %v4530_v2  ;;  %v287_v5 = vpop.f32.mrb[1].mxu1 }
 0x1d5   :  { %v288_v6 = vadd.f32 %v4530_v2, %v287_v5  ;;  %v5490_v7 = vpop.f32.mrb[2].mxu1 }
 0x1d6   :  { %v299_v8 = vadd.f32 %v5490_v7, %v4530_v2  ;;  %v290_v9 = vpop.f32.mrb[3].mxu1  ;;  %v304_v11 = vmax.f32 %v296_v4, 0.0 }
 0x1d7   :  { %v291_v10 = vadd.f32 %v4530_v2, %v290_v9  ;;  %v302_v13 = vmax.f32 %v288_v6, 0.0 }
 0x1d8   :  { %v305_v12 = vmax.f32 %v299_v8, 0.0 }
 0x1d9   :  { %v303_v14 = vmax.f32 %v291_v10, 0.0  ;;  %v4610_v10 = vld [vmem:[%s7784_s5 + $0x4] ss:$0 sm:$0xff] }
 0x1da   :  { %v307_v15 = vpack.c.bf16 %v305_v12, %v304_v11 }
 0x1db   :  { %v306_v16 = vpack.c.bf16 %v303_v14, %v302_v13 }
 0x1dd   :  { %5507 = vmatprep.mubr.bf16.mxu0 %v306_v16 }
 0x1de   :  { %5508 = vmatmul.mubr.bf16.vlgmr.msra.gmra.mrb[4].mxu0 %v307_v15 }
 0x1df   :  { %5536 = vmatpush3.bf16.msra.mxu0 %v6128_v1 }
 0x1e0   :  { %5537 = vmatprep.subr.bf16.mxu0 %v6129_v17 }
 0x1e3   :  { %5538 = vmatpush3.bf16.msra.mxu0 %v6129_v17 }
 0x1e4   :  { %5539 = vmatprep.subr.bf16.mxu0 %v6130_v18 }
 0x1e7   :  { %5540 = vmatpush3.bf16.msra.mxu0 %v6130_v18 }
 0x1e8   :  { %5541 = vmatprep.subr.bf16.mxu0 %v6131_v19 }
 0x1eb   :  { %5542 = vmatpush3.bf16.msra.mxu0 %v6131_v19 }
 0x1ec   :  { %5543 = vmatprep.subr.bf16.mxu0 %v6132_v20 }
 0x1ef   :  { %5544 = vmatpush3.bf16.msra.mxu0 %v6132_v20 }
 0x1f0   :  { %5545 = vmatprep.subr.bf16.mxu0 %v6133_v21 }
 0x1f3   :  { %v5529_v24 = vpop.f32.mrb[4].mxu1  ;;  %5546 = vmatpush3.bf16.msra.mxu0 %v6133_v21 }
 0x1f4   :  { %v636_v25 = vadd.f32 %v5529_v24, %v4584_v23  ;;  %v627_v26 = vpop.f32.mrb[5].mxu1  ;;  %5547 = vmatprep.subr.bf16.mxu0 %v6134_v22 }
 0x1f5   :  { %v628_v28 = vadd.f32 %v4584_v23, %v627_v26  ;;  %v5530_v29 = vpop.f32.mrb[6].mxu1 }
 0x1f6   :  { %v660_v30 = vmax.f32 %v636_v25, 0.0  ;;  %v639_v31 = vadd.f32 %v5530_v29, %v4584_v23  ;;  %v630_v32 = vpop.f32.mrb[7].mxu1 }
 0x1f7   :  { %v631_v33 = vadd.f32 %v4584_v23, %v630_v32  ;;  %5548 = vmatpush3.bf16.msra.mxu0 %v6134_v22  ;;  %v658_v35 = vmax.f32 %v628_v28, 0.0 }
 0x1f8   :  { %v661_v34 = vmax.f32 %v639_v31, 0.0  ;;  %5549 = vmatprep.subr.bf16.mxu0 %v6135_v27 }
 0x1f9   :  { %v659_v36 = vmax.f32 %v631_v33, 0.0 }
 0x1fa   :  { %v667_v37 = vpack.c.bf16 %v661_v34, %v660_v30 }
 0x1fb   :  { %v666_v38 = vpack.c.bf16 %v659_v36, %v658_v35  ;;  %5550 = vmatpush3.bf16.msra.mxu0 %v6135_v27  ;;  %v5533_v39 = vpop.f32.mrb[8].mxu1 }
 0x1fc   :  { %v652_v40 = vadd.f32 %v5533_v39, %v4584_v23  ;;  %v643_v41 = vpop.f32.mrb[9].mxu1  ;;  %v6144_v39 = vld [vmem:[%s7786_s2] sm:$0xff]  }
 0x1fd   :  { %5551 = vmatprep.mubr.bf16.mxu0 %v666_v38  ;;  %v644_v42 = vadd.f32 %v4584_v23, %v643_v41  ;;  %v5534_v43 = vpop.f32.mrb[10].mxu1 }
 0x1fe   :  { %5552 = vmatmul.mubr.bf16.vlgmr.msra.gmra.mrb[8].mxu0 %v667_v37  ;;  %v664_v44 = vmax.f32 %v652_v40, 0.0  ;;  %v655_v45 = vadd.f32 %v5534_v43, %v4584_v23  ;;  %v646_v46 = vpop.f32.mrb[11].mxu1  ;;  %v6148_v40 = vld [vmem:[%s7787_s3] sm:$0xff]  }
 0x1ff   :  { %v662_v47 = vmax.f32 %v644_v42, 0.0  ;;  %v647_v48 = vadd.f32 %v4584_v23, %v646_v46 }
 0x200   :  { %v665_v49 = vmax.f32 %v655_v45, 0.0 }
 0x201   :  { %v663_v50 = vmax.f32 %v647_v48, 0.0 }
 0x202   :  { %v669_v51 = vpack.c.bf16 %v665_v49, %v664_v44 }
 0x203   :  { %v668_v52 = vpack.c.bf16 %v663_v50, %v662_v47 }
 0x205   :  { %5555 = vmatprep.mubr.bf16.mxu0 %v668_v52 }
 0x206   :  { %5556 = vmatmul.mubr.bf16.gmra.mrb[12].mxu0 %v669_v51 }
 0x207   :  { %5587 = vmatprep.mubr.msk.bf16.mxu0 %vm1124_vm0, %v6144_v39  ;;  %v6154_v39 = vld [vmem:[%s7782_s4 + $0x1d0] sm:$0xff]  }
 0x2b1   :  { %v5509_v62 = vpop.f32.mrb[4].mxu0 }
 0x2b2   :  { %v415_v63 = vpop.f32.mrb[5].mxu0  ;;  %v6629_v6 = vadd.f32 %v5509_v62, %v4556_v61 }
 0x2b3   :  { %v6618_v0 = vadd.f32 %v4556_v61, %v415_v63  ;;  %v5510_v1 = vpop.f32.mrb[6].mxu0 }
 0x2b4   :  { %v6620_v2 = vadd.f32 %v5510_v1, %v4556_v61  ;;  %v418_v3 = vpop.f32.mrb[7].mxu0  ;;  %v444_v8 = vmul.f32 %v6629_v6, %v6629_v6 }
 0x2b5   :  { %430 = vadd.xlane.f32.xlu0 %v6618_v0  ;;  %v6624_v4 = vadd.f32 %v4556_v61, %v418_v3  ;;  %v442_v5 = vmul.f32 %v6618_v0, %v6618_v0 }
 0x2b6   :  { %436 = vadd.xlane.f32.xlu1 %v6620_v2  ;;  %v445_v9 = vmul.f32 %v6620_v2, %v6620_v2 }
 0x2b7   :  { %v443_v7 = vmul.f32 %v6624_v4, %v6624_v4 }
 0x2b9   :  { %432 = vadd.xlane.f32.xlu0 %v6624_v4 }
 0x2ba   :  { %446 = vadd.xlane.f32.xlu1 %v442_v5 }
 0x2bd   :  { %434 = vadd.xlane.f32.xlu0 %v6629_v6 }
 0x2be   :  { %448 = vadd.xlane.f32.xlu1 %v443_v7 }
 0x2c1   :  { %450 = vadd.xlane.f32.xlu0 %v444_v8 }
 0x2c2   :  { %452 = vadd.xlane.f32.xlu1 %v445_v9 }
 0x2d1   :  { %v5553_v11 = vpop.f32.mrb[8].mxu0 }
 0x2d2   :  { %v786_v12 = vadd.f32 %v5553_v11, %v4610_v10  ;;  %v777_v13 = vpop.f32.mrb[9].mxu0 }
 0x2d3   :  { %v778_v14 = vadd.f32 %v4610_v10, %v777_v13  ;;  %v5554_v15 = vpop.f32.mrb[10].mxu0 }
 0x2d4   :  { %v789_v16 = vadd.f32 %v5554_v15, %v4610_v10  ;;  %v780_v17 = vpop.f32.mrb[11].mxu0  ;;  %v810_v19 = vmax.f32 %v786_v12, 0.0 }
 0x2d5   :  { %v781_v18 = vadd.f32 %v4610_v10, %v780_v17  ;;  %v808_v21 = vmax.f32 %v778_v14, 0.0 }
 0x2d6   :  { %v811_v20 = vmax.f32 %v789_v16, 0.0  ;;  %v4565_v16 = vld [vmem:[%s7788_s6] ss:$0 sm:$0xff] }
 0x2d7   :  { %v809_v22 = vmax.f32 %v781_v18, 0.0 }
 0x2d8   :  { %v817_v23 = vpack.c.bf16 %v811_v20, %v810_v19 }
 0x2d9   :  { %v816_v24 = vpack.c.bf16 %v809_v22, %v808_v21  ;;  %v5557_v25 = vpop.f32.mrb[12].mxu0  ;;  %v4566_v22 = vld [vmem:[%s7789_s7] ss:$0 sm:$0xff] }
 0x2da   :  { %v802_v26 = vadd.f32 %v5557_v25, %v4610_v10  ;;  %v793_v27 = vpop.f32.mrb[13].mxu0 }
 0x2db   :  { %5575 = vmatprep.mubr.bf16.mxu1 %v816_v24  ;;  %v794_v28 = vadd.f32 %v4610_v10, %v793_v27  ;;  %v5558_v29 = vpop.f32.mrb[14].mxu0 }
 0x2dc   :  { %5576 = vmatmul.mubr.bf16.vlgmr.msra.gmra.mrb[12].mxu1 %v817_v23  ;;  %v814_v30 = vmax.f32 %v802_v26, 0.0  ;;  %v805_v31 = vadd.f32 %v5558_v29, %v4610_v10  ;;  %v796_v32 = vpop.f32.mrb[15].mxu0 }
 0x2dd   :  { %v812_v33 = vmax.f32 %v794_v28, 0.0  ;;  %v797_v34 = vadd.f32 %v4610_v10, %v796_v32 }
 0x2de   :  { %v815_v35 = vmax.f32 %v805_v31, 0.0 }
 0x2df   :  { %v813_v36 = vmax.f32 %v797_v34, 0.0  ;;  %v6687_v34 = vld [vmem:[%s7786_s2 + $0x8] sm:$0xff]  }
 0x2e0   :  { %v819_v37 = vpack.c.bf16 %v815_v35, %v814_v30  ;;  %v6149_v35 = vld [vmem:[%s7787_s3 + $0x8] sm:$0xff]  }
 0x2e1   :  { %v818_v38 = vpack.c.bf16 %v813_v36, %v812_v33  ;;  %v6152_v33 = vld [vmem:[%s7782_s4 + $0x1c0] sm:$0xff]   ;;  %v6697_v36 = vld [vmem:[%s7786_s2 + $0x10] sm:$0xff]  }
 0x2e3   :  { %5579 = vmatprep.mubr.bf16.mxu1 %v818_v38  ;;  %v6153_v38 = vld [vmem:[%s7782_s4 + $0x1c8] sm:$0xff]  }
 0x2e4   :  { %5580 = vmatmul.mubr.bf16.gmra.mrb[16].mxu1 %v819_v37  ;;  %v6150_v37 = vld [vmem:[%s7787_s3 + $0x10] sm:$0xff]  }
 0x2e5   :  { %5599 = vmatprep.mubr.msk.bf16.mxu1 %vm1124_vm0, %v6148_v40  ;;  %v6717_v40 = vld [vmem:[%s7786_s2 + $0x18] sm:$0xff]  }
 0x342   :  { %v431_v41 = vpop.xlane.xlu0 %430 }
 0x343   :  { %v437_v42 = vpop.xlane.xlu1 %436  ;;  %v438_v43 = vmul.f32 0.03125, %v431_v41  ;;  %v6151_v41 = vld [vmem:[%s7787_s3 + $0x18] sm:$0xff]  }
 0x344   :  { %v441_v53 = vmul.f32 0.03125, %v437_v42  ;;  %v6155_v42 = vld [vmem:[%s7782_s4 + $0x1d8] sm:$0xff]  }
 0x345   :  { %v458_v46 = vmul.f32 %v438_v43, %v438_v43  ;;  %v470_v13 = vsub.f32 %v6618_v0, %v438_v43  ;;  %v6156_v43 = vld [vmem:[%s7782_s4 + $0x1e0] sm:$0xff]  }
 0x346   :  { %v433_v44 = vpop.xlane.xlu0 %432  ;;  %v461_v63 = vmul.f32 %v441_v53, %v441_v53  ;;  %v473_v0 = vsub.f32 %v6620_v2, %v441_v53 }
 0x347   :  { %v447_v45 = vpop.xlane.xlu1 %446  ;;  %v439_v47 = vmul.f32 0.03125, %v433_v44  ;;  %v6157_v44 = vld [vmem:[%s7782_s4 + $0x1e8] sm:$0xff]  }
 0x348   :  { %v454_v48 = vmul.f32 0.03125, %v447_v45  ;;  %v4636_v45 = vld [vmem:[%s7784_s5 + $0x5] ss:$0 sm:$0xff] }
 0x349   :  { %v459_v54 = vmul.f32 %v439_v47, %v439_v47  ;;  %v471_v17 = vsub.f32 %v6624_v4, %v439_v47 }
 0x34a   :  { %v462_v49 = vsub.f32 %v454_v48, %v458_v46  ;;  %v435_v50 = vpop.xlane.xlu0 %434 }
 0x34b   :  { %v440_v51 = vmul.f32 0.03125, %v435_v50  ;;  %v449_v52 = vpop.xlane.xlu1 %448 }
 0x34c   :  { %v466_v55 = vmax.f32 %v462_v49, 0.0  ;;  %v455_v56 = vmul.f32 0.03125, %v449_v52 }
 0x34d   :  { %v460_v60 = vmul.f32 %v440_v51, %v440_v51  ;;  %v472_v21 = vsub.f32 %v6629_v6, %v440_v51 }
 0x34e   :  { %v474_v57 = vadd.f32 1e-05, %v466_v55  ;;  %v463_v58 = vsub.f32 %v455_v56, %v459_v54  ;;  %v451_v59 = vpop.xlane.xlu0 %450 }
 0x34f   :  { %v456_v61 = vmul.f32 0.03125, %v451_v59  ;;  %v453_v62 = vpop.xlane.xlu1 %452 }
 0x350   :  { %6296 = vrsqrt.f32 %v474_v57  ;;  %v467_v1 = vmax.f32 %v463_v58, 0.0  ;;  %v457_v3 = vmul.f32 0.03125, %v453_v62 }
 0x351   :  { %v464_v5 = vsub.f32 %v456_v61, %v460_v60 }
 0x352   :  { %v475_v7 = vadd.f32 1e-05, %v467_v1  ;;  %v465_v8 = vsub.f32 %v457_v3, %v461_v63  ;;  %v6158_v63 = vld [vmem:[%s7782_s4 + $0x1f0] sm:$0xff]   ;;  %v6159_v3 = vld [vmem:[%s7782_s4 + $0x1f8] sm:$0xff]  }
 0x353   :  { %v468_v9 = vmax.f32 %v464_v5, 0.0 }
 0x354   :  { %6298 = vrsqrt.f32 %v475_v7  ;;  %v469_v10 = vmax.f32 %v465_v8, 0.0  ;;  %v6160_v8 = vld [vmem:[%s7782_s4 + $0x180] sm:$0xff]  }
 0x355   :  { %v476_v11 = vadd.f32 1e-05, %v468_v9 }
 0x356   :  { %v477_v12 = vadd.f32 1e-05, %v469_v10 }
 0x357   :  { %6300 = vrsqrt.f32 %v476_v11 }
 0x358   :  { %6302 = vrsqrt.f32 %v477_v12 }
 0x35a   :  { %v6297_v14 = vpop.eup %6296 }
 0x35b   :  { %v482_v15 = vmul.f32 %v6297_v14, %v470_v13  ;;  %v6176_v13 = vld [vmem:[%s7782_s4 + $0x240] sm:$0xff]   ;;  %v6177_v14 = vld [vmem:[%s7782_s4 + $0x248] sm:$0xff]  }
 0x35d   :  { %v493_v20 = vmul.f32 %v4565_v16, %v482_v15  ;;  %v6178_v15 = vld [vmem:[%s7782_s4 + $0x250] sm:$0xff]  }
 0x35e   :  { %v6299_v18 = vpop.eup %6298 }
 0x35f   :  { %v483_v19 = vmul.f32 %v6299_v18, %v471_v17  ;;  %v6659_v28 = vadd.f32 %v4566_v22, %v493_v20  ;;  %v6180_v17 = vld [vmem:[%s7782_s4 + $0x260] sm:$0xff]   ;;  %v6181_v18 = vld [vmem:[%s7782_s4 + $0x268] sm:$0xff]  }
 0x361   :  { %v6301_v23 = vpop.eup %6300  ;;  %v494_v24 = vmul.f32 %v4565_v16, %v483_v19 }
 0x362   :  { %v6303_v25 = vpop.eup %6302  ;;  %v484_v26 = vmul.f32 %v6301_v23, %v472_v21 }
 0x363   :  { %v485_v27 = vmul.f32 %v6303_v25, %v473_v0  ;;  %v6661_v29 = vadd.f32 %v4566_v22, %v494_v24 }
 0x364   :  { %v495_v4 = vmul.f32 %v4565_v16, %v484_v26 }
 0x365   :  { %v6665_v30 = vpack.c.bf16 %v6661_v29, %v6659_v28  ;;  %v496_v6 = vmul.f32 %v4565_v16, %v485_v27  ;;  %v6179_v16 = vld [vmem:[%s7782_s4 + $0x258] sm:$0xff]  }
 0x366   :  { %v6667_v31 = vadd.f32 %v4566_v22, %v495_v4 }
 0x367   :  { %5583 = vmatprep.subr.bf16.mxu0 %v6665_v30  ;;  %5595 = vmatprep.subr.bf16.mxu1 %v6665_v30  ;;  %v6671_v2 = vadd.f32 %v4566_v22, %v496_v6 }
 0x368   :  { %5584 = vmatpush3.bf16.msra.mxu0 %v6665_v30  ;;  %5596 = vmatpush3.bf16.msra.mxu1 %v6665_v30 }
 0x369   :  { %v6677_v32 = vpack.c.bf16 %v6671_v2, %v6667_v31 }
 0x36b   :  { %5585 = vmatprep.subr.bf16.mxu0 %v6677_v32  ;;  %5597 = vmatprep.subr.bf16.mxu1 %v6677_v32 }
 0x36c   :  { %5586 = vmatpush3.bf16.msra.mxu0 %v6677_v32  ;;  %5598 = vmatpush3.bf16.msra.mxu1 %v6677_v32 }
 0x36d   :  { %5607 = vmatprep.subr.bf16.mxu0 %v6152_v33  ;;  %5679 = vmatprep.subr.bf16.mxu1 %v6176_v13 }
 0x36f   :  { %5588 = vmatmul.mubr.msk.bf16.vlgmr.msra.gmra.mrb[16].mxu0 %vm1124_vm0, %v6687_v34  ;;  %5600 = vmatmul.mubr.msk.bf16.vlgmr.msra.gmra.mrb[20].mxu1 %vm1124_vm0, %v6149_v35 }
 0x370   :  { %5591 = vmatprep.mubr.msk.bf16.mxu0 %vm1124_vm0, %v6697_v36  ;;  %5603 = vmatprep.mubr.msk.bf16.mxu1 %vm1124_vm0, %v6150_v37 }
 0x371   :  { %5608 = vmatpush3.bf16.msra.mxu0 %v6152_v33  ;;  %5680 = vmatpush3.bf16.msra.mxu1 %v6176_v13 }
 0x372   :  { %5609 = vmatprep.subr.bf16.mxu0 %v6153_v38  ;;  %5681 = vmatprep.subr.bf16.mxu1 %v6177_v14 }
 0x375   :  { %5610 = vmatpush3.bf16.msra.mxu0 %v6153_v38  ;;  %5682 = vmatpush3.bf16.msra.mxu1 %v6177_v14 }
 0x376   :  { %5611 = vmatprep.subr.bf16.mxu0 %v6154_v39  ;;  %5683 = vmatprep.subr.bf16.mxu1 %v6178_v15 }
 0x377   :  { %5592 = vmatmul.mubr.msk.bf16.gmra.mrb[20].mxu0 %vm1124_vm0, %v6717_v40  ;;  %5604 = vmatmul.mubr.msk.bf16.gmra.mrb[24].mxu1 %vm1124_vm0, %v6151_v41 }
 0x379   :  { %5612 = vmatpush3.bf16.msra.mxu0 %v6154_v39  ;;  %5684 = vmatpush3.bf16.msra.mxu1 %v6178_v15  ;;  %v6161_v39 = vld [vmem:[%s7782_s4 + $0x188] sm:$0xff]  }
 0x37a   :  { %5613 = vmatprep.subr.bf16.mxu0 %v6155_v42  ;;  %5685 = vmatprep.subr.bf16.mxu1 %v6179_v16 }
 0x37d   :  { %5614 = vmatpush3.bf16.msra.mxu0 %v6155_v42  ;;  %5686 = vmatpush3.bf16.msra.mxu1 %v6179_v16 }
 0x37e   :  { %5615 = vmatprep.subr.bf16.mxu0 %v6156_v43  ;;  %5687 = vmatprep.subr.bf16.mxu1 %v6180_v17 }
 0x381   :  { %5616 = vmatpush3.bf16.msra.mxu0 %v6156_v43  ;;  %5688 = vmatpush3.bf16.msra.mxu1 %v6180_v17 }
 0x382   :  { %5617 = vmatprep.subr.bf16.mxu0 %v6157_v44  ;;  %5689 = vmatprep.subr.bf16.mxu1 %v6181_v18 }
 0x385   :  { %5618 = vmatpush3.bf16.msra.mxu0 %v6157_v44  ;;  %5690 = vmatpush3.bf16.msra.mxu1 %v6181_v18 }
 0x386   :  { %5619 = vmatprep.subr.bf16.mxu0 %v6158_v63 }
 0x389   :  { %5620 = vmatpush3.bf16.msra.mxu0 %v6158_v63 }
 0x38a   :  { %5621 = vmatprep.subr.bf16.mxu0 %v6159_v3 }
 0x38d   :  { %5622 = vmatpush3.bf16.msra.mxu0 %v6159_v3 }
 0x38e   :  { %5631 = vmatprep.subr.bf16.mxu0 %v6160_v8 }
 0x3af   :  { %v5577_v46 = vpop.f32.mrb[12].mxu1 }
 0x3b0   :  { %v6737_v47 = vadd.f32 %v5577_v46, %v4636_v45  ;;  %v927_v48 = vpop.f32.mrb[13].mxu1 }
 0x3b1   :  { %v5578_v49 = vpop.f32.mrb[14].mxu1  ;;  %v6742_v52 = vadd.f32 %v4636_v45, %v927_v48 }
 0x3b2   :  { %v6739_v50 = vadd.f32 %v5578_v49, %v4636_v45  ;;  %v930_v51 = vpop.f32.mrb[15].mxu1  ;;  %962 = vadd.xlane.f32.xlu0 %v6737_v47  ;;  %v984_v60 = vmul.f32 %v6737_v47, %v6737_v47 }
 0x3b3   :  { %v6745_v53 = vadd.f32 %v4636_v45, %v930_v51  ;;  %v982_v55 = vmul.f32 %v6742_v52, %v6742_v52 }
 0x3b4   :  { %964 = vadd.xlane.f32.xlu1 %v6739_v50  ;;  %v985_v62 = vmul.f32 %v6739_v50, %v6739_v50 }
 0x3b5   :  { %v983_v58 = vmul.f32 %v6745_v53, %v6745_v53 }
 0x3b6   :  { %958 = vadd.xlane.f32.xlu0 %v6742_v52 }
 0x3b7   :  { %v5581_v54 = vpop.f32.mrb[16].mxu1 }
 0x3b8   :  { %960 = vadd.xlane.f32.xlu1 %v6745_v53  ;;  %v943_v56 = vpop.f32.mrb[17].mxu1  ;;  %v6755_v61 = vadd.f32 %v5581_v54, %v4636_v45 }
 0x3b9   :  { %v5582_v57 = vpop.f32.mrb[18].mxu1  ;;  %v6768_v5 = vadd.f32 %v4636_v45, %v943_v56 }
 0x3ba   :  { %990 = vadd.xlane.f32.xlu0 %v982_v55  ;;  %v946_v59 = vpop.f32.mrb[19].mxu1  ;;  %v6762_v1 = vadd.f32 %v5582_v57, %v4636_v45  ;;  %v988_v11 = vmul.f32 %v6755_v61, %v6755_v61 }
 0x3bb   :  { %v6771_v7 = vadd.f32 %v4636_v45, %v946_v59  ;;  %v986_v9 = vmul.f32 %v6768_v5, %v6768_v5  ;;  %v6162_v59 = vld [vmem:[%s7782_s4 + $0x190] sm:$0xff]  }
 0x3bc   :  { %992 = vadd.xlane.f32.xlu1 %v983_v58  ;;  %v989_v12 = vmul.f32 %v6762_v1, %v6762_v1 }
 0x3bd   :  { %v987_v10 = vmul.f32 %v6771_v7, %v6771_v7 }
 0x3be   :  { %994 = vadd.xlane.f32.xlu0 %v984_v60 }
 0x3c0   :  { %996 = vadd.xlane.f32.xlu1 %v985_v62 }
 0x3c2   :  { %970 = vadd.xlane.f32.xlu0 %v6755_v61 }
 0x3c4   :  { %972 = vadd.xlane.f32.xlu1 %v6762_v1 }
 0x3c6   :  { %966 = vadd.xlane.f32.xlu0 %v6768_v5 }
 0x3c8   :  { %968 = vadd.xlane.f32.xlu1 %v6771_v7 }
 0x3ca   :  { %998 = vadd.xlane.f32.xlu0 %v986_v9 }
 0x3cc   :  { %1000 = vadd.xlane.f32.xlu1 %v987_v10 }
 0x3ce   :  { %1002 = vadd.xlane.f32.xlu0 %v988_v11 }
 0x3d0   :  { %1004 = vadd.xlane.f32.xlu1 %v989_v12 }
 0x43f   :  { %v963_v19 = vpop.xlane.xlu0 %962 }
 0x440   :  { %v6821_v43 = vmul.f32 0.03125, %v963_v19 }
 0x441   :  { %v965_v20 = vpop.xlane.xlu1 %964 }
 0x442   :  { %v5589_v21 = vpop.f32.mrb[16].mxu0  ;;  %v6804_v22 = vpop.f32.mrb[20].mxu1  ;;  %v6827_v48 = vmul.f32 0.03125, %v965_v20  ;;  %v1016_v62 = vmul.f32 %v6821_v43, %v6821_v43 }
 0x443   :  { %v959_v23 = vpop.xlane.xlu0 %958  ;;  %v1171_v0 = vpop.f32.mrb[17].mxu0 }
 0x444   :  { %v6806_v24 = vmul.f32 0.03125, %v959_v23  ;;  %v5590_v25 = vpop.f32.mrb[18].mxu0  ;;  %v6808_v26 = vpop.f32.mrb[21].mxu1 }
 0x445   :  { %v1321_v27 = vpack.c.bf16 %v5590_v25, %v5589_v21  ;;  %v961_v4 = vpop.xlane.xlu1 %960  ;;  %v1174_v6 = vpop.f32.mrb[19].mxu0  ;;  %v6163_v21 = vld [vmem:[%s7782_s4 + $0x198] sm:$0xff]  }
 0x446   :  { %v6810_v33 = vmul.f32 0.03125, %v961_v4  ;;  %v1320_v35 = vpack.c.bf16 %v1174_v6, %v1171_v0  ;;  %v6812_v37 = vpop.f32.mrb[22].mxu1  ;;  %v1014_v44 = vmul.f32 %v6806_v24, %v6806_v24 }
 0x447   :  { %v991_v38 = vpop.xlane.xlu0 %990  ;;  %v1568_v41 = vpack.c.bf16 %v6812_v37, %v6804_v22  ;;  %v6819_v42 = vpop.f32.mrb[23].mxu1  ;;  %v6184_v22 = vld [vmem:[%s7782_s4 + $0x280] sm:$0xff]  }
 0x448   :  { %v1006_v45 = vmul.f32 0.03125, %v991_v38  ;;  %5623 = vmatprep.mubr.bf16.mxu0 %v1320_v35  ;;  %v1567_v46 = vpack.c.bf16 %v6819_v42, %v6808_v26  ;;  %v1015_v51 = vmul.f32 %v6810_v33, %v6810_v33  ;;  %v6182_v26 = vld [vmem:[%s7782_s4 + $0x270] sm:$0xff]   ;;  %v6183_v42 = vld [vmem:[%s7782_s4 + $0x278] sm:$0xff]   ;;  %v4738_v37 = vld [vmem:[%s7784_s5 + $0x6] ss:$0 sm:$0xff] }
 0x449   :  { %v993_v49 = vpop.xlane.xlu1 %992  ;;  %5624 = vmatmul.mubr.bf16.vlgmr.msra.gmra.mrb[24].mxu0 %v1321_v27  ;;  %5691 = vmatprep.subr.bf16.mxu1 %v6182_v26 }
 0x44a   :  { %v1022_v54 = vsub.f32 %v1006_v45, %v1014_v44  ;;  %v1007_v55 = vmul.f32 0.03125, %v993_v49  ;;  %5632 = vmatpush3.bf16.msra.mxu0 %v6160_v8  ;;  %v5593_v56 = vpop.f32.mrb[20].mxu0  ;;  %v6831_v57 = vpop.f32.mrb[24].mxu1  ;;  %v1017_v8 = vmul.f32 %v6827_v48, %v6827_v48  ;;  %v6164_v49 = vld [vmem:[%s7782_s4 + $0x1a0] sm:$0xff]   ;;  %5692 = vmatpush3.bf16.msra.mxu1 %v6182_v26 }
 0x44b   :  { %v995_v58 = vpop.xlane.xlu0 %994  ;;  %5633 = vmatprep.subr.bf16.mxu0 %v6161_v39  ;;  %v1187_v60 = vpop.f32.mrb[21].mxu0  ;;  %5693 = vmatprep.subr.bf16.mxu1 %v6183_v42 }
 0x44c   :  { %v1030_v63 = vmax.f32 %v1022_v54, 0.0  ;;  %v1023_v3 = vsub.f32 %v1007_v55, %v1015_v51  ;;  %v1008_v9 = vmul.f32 0.03125, %v995_v58  ;;  %v5594_v10 = vpop.f32.mrb[22].mxu0  ;;  %v6838_v11 = vpop.f32.mrb[25].mxu1 }
 0x44d   :  { %v997_v12 = vpop.xlane.xlu1 %996  ;;  %v1323_v13 = vpack.c.bf16 %v5594_v10, %v5593_v56  ;;  %v1190_v14 = vpop.f32.mrb[23].mxu0 }
 0x44e   :  { %v1046_v15 = vadd.f32 1e-05, %v1030_v63  ;;  %v1031_v16 = vmax.f32 %v1023_v3, 0.0  ;;  %v1024_v17 = vsub.f32 %v1008_v9, %v1016_v62  ;;  %v1009_v18 = vmul.f32 0.03125, %v997_v12  ;;  %5634 = vmatpush3.bf16.msra.mxu0 %v6161_v39  ;;  %v6842_v19 = vpop.f32.mrb[26].mxu1  ;;  %5694 = vmatpush3.bf16.msra.mxu1 %v6183_v42 }
 0x44f   :  { %v971_v20 = vpop.xlane.xlu0 %970  ;;  %5635 = vmatprep.subr.bf16.mxu0 %v6162_v59  ;;  %v1322_v23 = vpack.c.bf16 %v1190_v14, %v1187_v60  ;;  %v1570_v0 = vpack.c.bf16 %v6842_v19, %v6831_v57  ;;  %v6849_v25 = vpop.f32.mrb[27].mxu1  ;;  %v1038_v3 = vsub.f32 %v6742_v52, %v6806_v24  ;;  %v6166_v52 = vld [vmem:[%s7782_s4 + $0x1b0] sm:$0xff]   ;;  %5703 = vmatprep.subr.bf16.mxu1 %v6184_v22 }
 0x450   :  { %6304 = vrsqrt.f32 %v1046_v15  ;;  %v1047_v27 = vadd.f32 1e-05, %v1031_v16  ;;  %v1032_v4 = vmax.f32 %v1024_v17, 0.0  ;;  %v1025_v6 = vsub.f32 %v1009_v18, %v1017_v8  ;;  %v6876_v15 = vld [vmem:[%s7788_s6 + $0x1] ss:$0 sm:$0xff] }
 0x451   :  { %v973_v35 = vpop.xlane.xlu1 %972  ;;  %5627 = vmatprep.mubr.bf16.mxu0 %v1322_v23  ;;  %v1569_v38 = vpack.c.bf16 %v6849_v25, %v6838_v11  ;;  %v6863_v60 = vmul.f32 0.03125, %v971_v20  ;;  %v1039_v16 = vsub.f32 %v6745_v53, %v6810_v33 }
 0x452   :  { %6306 = vrsqrt.f32 %v1047_v27  ;;  %v1048_v39 = vadd.f32 1e-05, %v1032_v4  ;;  %v1033_v44 = vmax.f32 %v1025_v6, 0.0  ;;  %5636 = vmatpush3.bf16.msra.mxu0 %v6162_v59  ;;  %v6165_v59 = vld [vmem:[%s7782_s4 + $0x1a8] sm:$0xff]   ;;  %v6869_v9 = vmul.f32 0.03125, %v973_v35 }
 0x453   :  { %v967_v45 = vpop.xlane.xlu0 %966  ;;  %5637 = vmatprep.subr.bf16.mxu0 %v6163_v21  ;;  %5628 = vmatmul.mubr.bf16.gmra.mrb[28].mxu0 %v1323_v13  ;;  %v1020_v20 = vmul.f32 %v6863_v60, %v6863_v60  ;;  %v1040_v4 = vsub.f32 %v6737_v47, %v6821_v43  ;;  %v1041_v47 = vsub.f32 %v6739_v50, %v6827_v48 }
 0x454   :  { %6308 = vrsqrt.f32 %v1048_v39  ;;  %v1049_v51 = vadd.f32 1e-05, %v1033_v44  ;;  %v6856_v54 = vmul.f32 0.03125, %v967_v45  ;;  %v1021_v53 = vmul.f32 %v6869_v9, %v6869_v9 }
 0x455   :  { %v969_v55 = vpop.xlane.xlu1 %968 }
 0x456   :  { %6310 = vrsqrt.f32 %v1049_v51  ;;  %v6858_v56 = vmul.f32 0.03125, %v969_v55  ;;  %5638 = vmatpush3.bf16.msra.mxu0 %v6163_v21  ;;  %v1018_v62 = vmul.f32 %v6856_v54, %v6856_v54  ;;  %v6893_v55 = vld [vmem:[%s7789_s7 + $0x1] ss:$0 sm:$0xff] }
 0x457   :  { %v999_v58 = vpop.xlane.xlu0 %998  ;;  %5639 = vmatprep.subr.bf16.mxu0 %v6164_v49 }
 0x458   :  { %v1010_v63 = vmul.f32 0.03125, %v999_v58  ;;  %v1019_v12 = vmul.f32 %v6858_v56, %v6858_v56  ;;  %v6167_v58 = vld [vmem:[%s7782_s4 + $0x1b8] sm:$0xff]  }
 0x459   :  { %v1001_v10 = vpop.xlane.xlu1 %1000 }
 0x45a   :  { %v6305_v8 = vpop.eup %6304  ;;  %v1026_v13 = vsub.f32 %v1010_v63, %v1018_v62  ;;  %v1011_v14 = vmul.f32 0.03125, %v1001_v10  ;;  %5640 = vmatpush3.bf16.msra.mxu0 %v6164_v49 }
 0x45b   :  { %v1003_v17 = vpop.xlane.xlu0 %1002  ;;  %5641 = vmatprep.subr.bf16.mxu0 %v6165_v59  ;;  %v1062_v24 = vmul.f32 %v6305_v8, %v1038_v3 }
 0x45c   :  { %v6307_v18 = vpop.eup %6306  ;;  %v1034_v21 = vmax.f32 %v1026_v13, 0.0  ;;  %v1027_v23 = vsub.f32 %v1011_v14, %v1019_v12  ;;  %v1012_v27 = vmul.f32 0.03125, %v1003_v17 }
 0x45d   :  { %v1005_v33 = vpop.xlane.xlu1 %1004  ;;  %v1063_v6 = vmul.f32 %v6307_v18, %v1039_v16  ;;  %v1078_v35 = vmul.f32 %v6876_v15, %v1062_v24  ;;  %v6168_v24 = vld [vmem:[%s7782_s4 + $0x200] sm:$0xff]  }
 0x45e   :  { %v6309_v39 = vpop.eup %6308  ;;  %v1050_v44 = vadd.f32 1e-05, %v1034_v21  ;;  %v1035_v45 = vmax.f32 %v1027_v23, 0.0  ;;  %v1028_v49 = vsub.f32 %v1012_v27, %v1020_v20  ;;  %v1013_v51 = vmul.f32 0.03125, %v1005_v33  ;;  %5642 = vmatpush3.bf16.msra.mxu0 %v6165_v59  ;;  %v6169_v23 = vld [vmem:[%s7782_s4 + $0x208] sm:$0xff]   ;;  %v6170_v33 = vld [vmem:[%s7782_s4 + $0x210] sm:$0xff]  }
 0x45f   :  { %v1064_v43 = vmul.f32 %v6309_v39, %v1040_v4  ;;  %5643 = vmatprep.subr.bf16.mxu0 %v6166_v52  ;;  %v1079_v62 = vmul.f32 %v6876_v15, %v1063_v6  ;;  %v6902_v12 = vadd.f32 %v6893_v55, %v1078_v35  ;;  %v1042_v27 = vsub.f32 %v6768_v5, %v6856_v54 }
 0x460   :  { %v6311_v63 = vpop.eup %6310  ;;  %6312 = vrsqrt.f32 %v1050_v44  ;;  %v1051_v3 = vadd.f32 1e-05, %v1035_v45  ;;  %v1036_v59 = vmax.f32 %v1028_v49, 0.0  ;;  %v1029_v10 = vsub.f32 %v1013_v51, %v1021_v53 }
 0x461   :  { %v1065_v8 = vmul.f32 %v6311_v63, %v1041_v47  ;;  %v6905_v13 = vadd.f32 %v6893_v55, %v1079_v62  ;;  %v1080_v50 = vmul.f32 %v6876_v15, %v1064_v43  ;;  %v1043_v53 = vsub.f32 %v6771_v7, %v6858_v56  ;;  %v6171_v56 = vld [vmem:[%s7782_s4 + $0x218] sm:$0xff]  }
 0x462   :  { %6314 = vrsqrt.f32 %v1051_v3  ;;  %v1052_v48 = vadd.f32 1e-05, %v1036_v59  ;;  %v1037_v14 = vmax.f32 %v1029_v10, 0.0  ;;  %5644 = vmatpush3.bf16.msra.mxu0 %v6166_v52  ;;  %v1044_v39 = vsub.f32 %v6755_v61, %v6863_v60  ;;  %v6175_v59 = vld [vmem:[%s7782_s4 + $0x238] sm:$0xff]  }
 0x463   :  { %5645 = vmatprep.subr.bf16.mxu0 %v6167_v58  ;;  %v1299_v16 = vpack.c.bf16 %v6905_v13, %v6902_v12  ;;  %v1081_v17 = vmul.f32 %v6876_v15, %v1065_v8  ;;  %v6915_v20 = vadd.f32 %v6893_v55, %v1080_v50  ;;  %v1045_v54 = vsub.f32 %v6762_v1, %v6869_v9 }
 0x464   :  { %6316 = vrsqrt.f32 %v1052_v48  ;;  %v1053_v18 = vadd.f32 1e-05, %v1037_v14 }
 0x465   :  { %5647 = vmatprep.mubr.bf16.mxu0 %v1299_v16  ;;  %v6918_v21 = vadd.f32 %v6893_v55, %v1081_v17 }
 0x466   :  { %6318 = vrsqrt.f32 %v1053_v18  ;;  %5646 = vmatpush3.bf16.msra.mxu0 %v6167_v58  ;;  %v6172_v58 = vld [vmem:[%s7782_s4 + $0x220] sm:$0xff]  }
 0x467   :  { %v1300_v52 = vpack.c.bf16 %v6918_v21, %v6915_v20  ;;  %5655 = vmatprep.subr.bf16.mxu0 %v6168_v24 }
 0x469   :  { %5648 = vmatmul.mubr.bf16.vlgmr.msra.gmra.mrb[24].mxu0 %v1300_v52  ;;  %v6185_v52 = vld [vmem:[%s7782_s4 + $0x288] sm:$0xff]  }
 0x46a   :  { %v6313_v4 = vpop.eup %6312  ;;  %5656 = vmatpush3.bf16.msra.mxu0 %v6168_v24 }
 0x46b   :  { %5657 = vmatprep.subr.bf16.mxu0 %v6169_v23  ;;  %v1066_v6 = vmul.f32 %v6313_v4, %v1042_v27 }
 0x46c   :  { %v6315_v35 = vpop.eup %6314 }
 0x46d   :  { %v1067_v44 = vmul.f32 %v6315_v35, %v1043_v53  ;;  %v1082_v45 = vmul.f32 %v6876_v15, %v1066_v6 }
 0x46e   :  { %v6317_v5 = vpop.eup %6316  ;;  %5658 = vmatpush3.bf16.msra.mxu0 %v6169_v23 }
 0x46f   :  { %5659 = vmatprep.subr.bf16.mxu0 %v6170_v33  ;;  %v1083_v7 = vmul.f32 %v6876_v15, %v1067_v44  ;;  %v1068_v49 = vmul.f32 %v6317_v5, %v1044_v39  ;;  %v6942_v47 = vadd.f32 %v6893_v55, %v1082_v45  ;;  %v6186_v39 = vld [vmem:[%s7782_s4 + $0x290] sm:$0xff]  }
 0x470   :  { %v6319_v51 = vpop.eup %6318 }
 0x471   :  { %v6945_v61 = vadd.f32 %v6893_v55, %v1083_v7  ;;  %v1069_v60 = vmul.f32 %v6319_v51, %v1045_v54  ;;  %v1084_v43 = vmul.f32 %v6876_v15, %v1068_v49  ;;  %v6187_v7 = vld [vmem:[%s7782_s4 + $0x298] sm:$0xff]   ;;  %v6189_v49 = vld [vmem:[%s7782_s4 + $0x2a8] sm:$0xff]   ;;  %v6190_v51 = vld [vmem:[%s7782_s4 + $0x2b0] sm:$0xff]  }
 0x472   :  { %5660 = vmatpush3.bf16.msra.mxu0 %v6170_v33 }
 0x473   :  { %v1301_v1 = vpack.c.bf16 %v6945_v61, %v6942_v47  ;;  %5661 = vmatprep.subr.bf16.mxu0 %v6171_v56  ;;  %v1085_v9 = vmul.f32 %v6876_v15, %v1069_v60  ;;  %v6955_v62 = vadd.f32 %v6893_v55, %v1084_v43  ;;  %v6173_v15 = vld [vmem:[%s7782_s4 + $0x228] sm:$0xff]   ;;  %v6191_v60 = vld [vmem:[%s7782_s4 + $0x2b8] sm:$0xff]   ;;  %v4756_v43 = vld [vmem:[%s7784_s5 + $0x7] ss:$0 sm:$0xff] }
 0x475   :  { %5651 = vmatprep.mubr.bf16.mxu0 %v1301_v1  ;;  %v6958_v63 = vadd.f32 %v6893_v55, %v1085_v9  ;;  %v6174_v55 = vld [vmem:[%s7782_s4 + $0x230] sm:$0xff]  }
 0x476   :  { %5662 = vmatpush3.bf16.msra.mxu0 %v6171_v56  ;;  %v6188_v56 = vld [vmem:[%s7782_s4 + $0x2a0] sm:$0xff]  }
 0x477   :  { %v1302_v3 = vpack.c.bf16 %v6958_v63, %v6955_v62  ;;  %5663 = vmatprep.subr.bf16.mxu0 %v6172_v58 }
 0x479   :  { %5652 = vmatmul.mubr.bf16.gmra.mrb[28].mxu0 %v1302_v3 }
 0x47a   :  { %5664 = vmatpush3.bf16.msra.mxu0 %v6172_v58  ;;  %5671 = vmatprep.mubr.bf16.mxu0 %v1567_v46 }
 0x47b   :  { %5665 = vmatprep.subr.bf16.mxu0 %v6173_v15 }
 0x47e   :  { %5666 = vmatpush3.bf16.msra.mxu0 %v6173_v15 }
 0x47f   :  { %5667 = vmatprep.subr.bf16.mxu0 %v6174_v55 }
 0x482   :  { %5668 = vmatpush3.bf16.msra.mxu0 %v6174_v55 }
 0x483   :  { %5669 = vmatprep.subr.bf16.mxu0 %v6175_v59 }
 0x486   :  { %5670 = vmatpush3.bf16.msra.mxu0 %v6175_v59 }
 0x489   :  { %5672 = vmatmul.mubr.bf16.vlgmr.msra.gmra.mrb[24].mxu0 %v1568_v41 }
 0x48a   :  { %5675 = vmatprep.mubr.bf16.mxu0 %v1569_v38 }
 0x491   :  { %5676 = vmatmul.mubr.bf16.gmra.mrb[28].mxu0 %v1570_v0 }
 0x55c   :  { %v5673_v41 = vpop.f32.mrb[24].mxu0 }
 0x55d   :  { %v1719_v46 = vadd.f32 %v5673_v41, %v4738_v37  ;;  %v1670_v57 = vpop.f32.mrb[25].mxu0 }
 0x55e   :  { %v1717_v11 = vadd.f32 %v4738_v37, %v1670_v57  ;;  %v5674_v19 = vpop.f32.mrb[26].mxu0 }
 0x55f   :  { %v1720_v0 = vadd.f32 %v5674_v19, %v4738_v37  ;;  %v1673_v25 = vpop.f32.mrb[27].mxu0  ;;  %v1727_v10 = vmax.f32 %v1719_v46, 0.0 }
 0x560   :  { %v1718_v38 = vadd.f32 %v4738_v37, %v1673_v25  ;;  %v1725_v50 = vmax.f32 %v1717_v11, 0.0 }
 0x561   :  { %v1728_v8 = vmax.f32 %v1720_v0, 0.0 }
 0x562   :  { %v1726_v48 = vmax.f32 %v1718_v38, 0.0 }
 0x563   :  { %v1734_v14 = vpack.c.bf16 %v1728_v8, %v1727_v10 }
 0x564   :  { %v1733_v16 = vpack.c.bf16 %v1726_v48, %v1725_v50  ;;  %v5677_v17 = vpop.f32.mrb[28].mxu0 }
 0x565   :  { %v1723_v24 = vadd.f32 %v5677_v17, %v4738_v37  ;;  %v1686_v18 = vpop.f32.mrb[29].mxu0 }
 0x566   :  { %v1721_v23 = vadd.f32 %v4738_v37, %v1686_v18  ;;  %v5678_v27 = vpop.f32.mrb[30].mxu0  ;;  %5695 = vmatprep.mubr.bf16.mxu1 %v1733_v16 }
 0x567   :  { %v1724_v4 = vadd.f32 %v5678_v27, %v4738_v37  ;;  %v1689_v53 = vpop.f32.mrb[31].mxu0  ;;  %5696 = vmatmul.mubr.bf16.vlgmr.msra.gmra.mrb[28].mxu1 %v1734_v14  ;;  %v1731_v6 = vmax.f32 %v1723_v24, 0.0 }
 0x568   :  { %v1722_v33 = vadd.f32 %v4738_v37, %v1689_v53  ;;  %5704 = vmatpush3.bf16.msra.mxu1 %v6184_v22  ;;  %v1729_v44 = vmax.f32 %v1721_v23, 0.0 }
 0x569   :  { %v1732_v35 = vmax.f32 %v1724_v4, 0.0  ;;  %5705 = vmatprep.subr.bf16.mxu1 %v6185_v52 }
 0x56a   :  { %v1730_v45 = vmax.f32 %v1722_v33, 0.0 }
 0x56b   :  { %v1736_v5 = vpack.c.bf16 %v1732_v35, %v1731_v6 }
 0x56c   :  { %v1735_v54 = vpack.c.bf16 %v1730_v45, %v1729_v44  ;;  %5706 = vmatpush3.bf16.msra.mxu1 %v6185_v52  ;;  %v4782_v52 = vld [vmem:[%s7784_s5 + $0x8] ss:$0 sm:$0xff] }
 0x56d   :  { %5707 = vmatprep.subr.bf16.mxu1 %v6186_v39 }
 0x56e   :  { %5699 = vmatprep.mubr.bf16.mxu1 %v1735_v54 }
 0x56f   :  { %5700 = vmatmul.mubr.bf16.gmra.mrb[32].mxu1 %v1736_v5 }
 0x570   :  { %5708 = vmatpush3.bf16.msra.mxu1 %v6186_v39 }
 0x571   :  { %5709 = vmatprep.subr.bf16.mxu1 %v6187_v7 }
 0x574   :  { %5710 = vmatpush3.bf16.msra.mxu1 %v6187_v7 }
 0x575   :  { %5711 = vmatprep.subr.bf16.mxu1 %v6188_v56 }
 0x578   :  { %5712 = vmatpush3.bf16.msra.mxu1 %v6188_v56 }
 0x579   :  { %5713 = vmatprep.subr.bf16.mxu1 %v6189_v49 }
 0x57c   :  { %5714 = vmatpush3.bf16.msra.mxu1 %v6189_v49 }
 0x57d   :  { %5715 = vmatprep.subr.bf16.mxu1 %v6190_v51 }
 0x580   :  { %5716 = vmatpush3.bf16.msra.mxu1 %v6190_v51 }
 0x581   :  { %5717 = vmatprep.subr.bf16.mxu1 %v6191_v60 }
 0x584   :  { %5718 = vmatpush3.bf16.msra.mxu1 %v6191_v60 }
 0x63a   :  { %v5697_v1 = vpop.f32.mrb[28].mxu1 }
 0x63b   :  { %v1853_v9 = vadd.f32 %v5697_v1, %v4756_v43  ;;  %v1844_v58 = vpop.f32.mrb[29].mxu1 }
 0x63c   :  { %v1845_v3 = vadd.f32 %v4756_v43, %v1844_v58  ;;  %v5698_v15 = vpop.f32.mrb[30].mxu1 }
 0x63d   :  { %v1856_v55 = vadd.f32 %v5698_v15, %v4756_v43  ;;  %v1847_v59 = vpop.f32.mrb[31].mxu1  ;;  %v1877_v42 = vmax.f32 %v1853_v9, 0.0 }
 0x63e   :  { %v1848_v26 = vadd.f32 %v4756_v43, %v1847_v59  ;;  %v1875_v37 = vmax.f32 %v1845_v3, 0.0  ;;  %v7065_v59 = vld [vmem:[%s7786_s2] sm:$0xff]  }
 0x63f   :  { %v1878_v22 = vmax.f32 %v1856_v55, 0.0 }
 0x640   :  { %v1876_v41 = vmax.f32 %v1848_v26, 0.0 }
 0x641   :  { %v1884_v46 = vpack.c.bf16 %v1878_v22, %v1877_v42 }
 0x642   :  { %v1883_v57 = vpack.c.bf16 %v1876_v41, %v1875_v37  ;;  %v5701_v11 = vpop.f32.mrb[32].mxu1 }
 0x643   :  { %v1869_v19 = vadd.f32 %v5701_v11, %v4756_v43  ;;  %v1860_v0 = vpop.f32.mrb[33].mxu1 }
 0x644   :  { %v1861_v25 = vadd.f32 %v4756_v43, %v1860_v0  ;;  %v5702_v38 = vpop.f32.mrb[34].mxu1  ;;  %5719 = vmatprep.mubr.bf16.mxu1 %v1883_v57 }
 0x645   :  { %v1872_v10 = vadd.f32 %v5702_v38, %v4756_v43  ;;  %v1863_v8 = vpop.f32.mrb[35].mxu1  ;;  %5720 = vmatmul.mubr.bf16.vlgmr.msra.gmra.mrb[36].mxu1 %v1884_v46  ;;  %v1881_v48 = vmax.f32 %v1869_v19, 0.0 }
 0x646   :  { %v1864_v50 = vadd.f32 %v4756_v43, %v1863_v8  ;;  %v1879_v16 = vmax.f32 %v1861_v25, 0.0 }
 0x647   :  { %v1882_v14 = vmax.f32 %v1872_v10, 0.0 }
 0x648   :  { %v1880_v17 = vmax.f32 %v1864_v50, 0.0 }
 0x649   :  { %v1886_v24 = vpack.c.bf16 %v1882_v14, %v1881_v48 }
 0x64a   :  { %v1885_v18 = vpack.c.bf16 %v1880_v17, %v1879_v16 }
 0x64c   :  { %5723 = vmatprep.mubr.bf16.mxu1 %v1885_v18 }
 0x64d   :  { %5724 = vmatmul.mubr.bf16.gmra.mrb[40].mxu1 %v1886_v24 }
 0x718   :  { %v5721_v23 = vpop.f32.mrb[36].mxu1 }
 0x719   :  { %v7022_v27 = vadd.f32 %v5721_v23, %v4782_v52  ;;  %v1994_v4 = vpop.f32.mrb[37].mxu1 }
 0x71a   :  { %v5722_v53 = vpop.f32.mrb[38].mxu1  ;;  %v7027_v35 = vadd.f32 %v4782_v52, %v1994_v4 }
 0x71b   :  { %v7024_v33 = vadd.f32 %v5722_v53, %v4782_v52  ;;  %2029 = vadd.xlane.f32.xlu0 %v7022_v27  ;;  %v1997_v6 = vpop.f32.mrb[39].mxu1  ;;  %v2051_v5 = vmul.f32 %v7022_v27, %v7022_v27 }
 0x71c   :  { %v7030_v39 = vadd.f32 %v4782_v52, %v1997_v6  ;;  %v2049_v49 = vmul.f32 %v7027_v35, %v7027_v35 }
 0x71d   :  { %2031 = vadd.xlane.f32.xlu1 %v7024_v33  ;;  %v2052_v56 = vmul.f32 %v7024_v33, %v7024_v33 }
 0x71e   :  { %v2050_v51 = vmul.f32 %v7030_v39, %v7030_v39 }
 0x71f   :  { %2025 = vadd.xlane.f32.xlu0 %v7027_v35 }
 0x720   :  { %v5725_v44 = vpop.f32.mrb[40].mxu1 }
 0x721   :  { %2027 = vadd.xlane.f32.xlu1 %v7030_v39  ;;  %v2010_v45 = vpop.f32.mrb[41].mxu1  ;;  %v7042_v60 = vadd.f32 %v5725_v44, %v4782_v52 }
 0x722   :  { %v5726_v54 = vpop.f32.mrb[42].mxu1  ;;  %v7047_v1 = vadd.f32 %v4782_v52, %v2010_v45 }
 0x723   :  { %2061 = vadd.xlane.f32.xlu0 %v2051_v5  ;;  %v2013_v7 = vpop.f32.mrb[43].mxu1  ;;  %v7044_v43 = vadd.f32 %v5726_v54, %v4782_v52  ;;  %v2055_v15 = vmul.f32 %v7042_v60, %v7042_v60 }
 0x724   :  { %v7050_v9 = vadd.f32 %v4782_v52, %v2013_v7  ;;  %v2053_v58 = vmul.f32 %v7047_v1, %v7047_v1 }
 0x725   :  { %2063 = vadd.xlane.f32.xlu1 %v2052_v56  ;;  %v2056_v55 = vmul.f32 %v7044_v43, %v7044_v43 }
 0x726   :  { %v2054_v3 = vmul.f32 %v7050_v9, %v7050_v9 }
 0x727   :  { %2057 = vadd.xlane.f32.xlu0 %v2049_v49 }
 0x729   :  { %2059 = vadd.xlane.f32.xlu1 %v2050_v51 }
 0x72b   :  { %2037 = vadd.xlane.f32.xlu0 %v7042_v60 }
 0x72d   :  { %2039 = vadd.xlane.f32.xlu1 %v7044_v43 }
 0x72f   :  { %2033 = vadd.xlane.f32.xlu0 %v7047_v1 }
 0x731   :  { %2035 = vadd.xlane.f32.xlu1 %v7050_v9 }
 0x733   :  { %2065 = vadd.xlane.f32.xlu0 %v2053_v58 }
 0x735   :  { %2067 = vadd.xlane.f32.xlu1 %v2054_v3 }
 0x737   :  { %2069 = vadd.xlane.f32.xlu0 %v2055_v15 }
 0x739   :  { %2071 = vadd.xlane.f32.xlu1 %v2056_v55 }
 0x764   :  { %2177 = vxpose.xlu0.c.b16.start [1/4] (short) (narrow) %v7065_v59, 32 }
 0x768   :  { %2178 = vxpose.xlu0.c.b16.cont [2/4] (short) (narrow) %v6687_v34, 32 }
 0x76c   :  { %2179 = vxpose.xlu0.c.b16.cont [3/4] (short) (narrow) %v6697_v36, 32 }
 0x770   :  { %2180 = vxpose.xlu0.c.b16.end [4/4] (short) (narrow) %v6717_v40, 32 }
 0x7a8   :  { %v2030_v26 = vpop.xlane.xlu0 %2029 }
 0x7a9   :  { %v7071_v37 = vmul.f32 0.03125, %v2030_v26 }
 0x7aa   :  { %v2032_v42 = vpop.xlane.xlu1 %2031 }
 0x7ab   :  { %v2044_v46 = vmul.f32 0.03125, %v2032_v42  ;;  %v2083_v11 = vmul.f32 %v7071_v37, %v7071_v37 }
 0x7ac   :  { %v2026_v22 = vpop.xlane.xlu0 %2025 }
 0x7ad   :  { %v7075_v19 = vmul.f32 0.03125, %v2026_v22  ;;  %v2084_v36 = vmul.f32 %v2044_v46, %v2044_v46 }
 0x7ae   :  { %v2028_v41 = vpop.xlane.xlu1 %2027 }
 0x7af   :  { %v7077_v25 = vmul.f32 0.03125, %v2028_v41  ;;  %v2081_v8 = vmul.f32 %v7075_v19, %v7075_v19 }
 0x7b0   :  { %v2062_v57 = vpop.xlane.xlu0 %2061 }
 0x7b1   :  { %v2075_v0 = vmul.f32 0.03125, %v2062_v57  ;;  %v2082_v16 = vmul.f32 %v7077_v25, %v7077_v25 }
 0x7b2   :  { %v2064_v34 = vpop.xlane.xlu1 %2063 }
 0x7b3   :  { %v2091_v38 = vsub.f32 %v2075_v0, %v2083_v11  ;;  %v2076_v40 = vmul.f32 0.03125, %v2064_v34  ;;  %v2108_v34 = vsub.f32 %v7024_v33, %v2044_v46 }
 0x7b4   :  { %v2058_v10 = vpop.xlane.xlu0 %2057 }
 0x7b5   :  { %v2099_v50 = vmax.f32 %v2091_v38, 0.0  ;;  %v2092_v48 = vsub.f32 %v2076_v40, %v2084_v36  ;;  %v2073_v14 = vmul.f32 0.03125, %v2058_v10 }
 0x7b6   :  { %v2060_v17 = vpop.xlane.xlu1 %2059 }
 0x7b7   :  { %v2115_v24 = vadd.f32 1e-05, %v2099_v50  ;;  %v2100_v18 = vmax.f32 %v2092_v48, 0.0  ;;  %v2089_v52 = vsub.f32 %v2073_v14, %v2081_v8  ;;  %v2074_v23 = vmul.f32 0.03125, %v2060_v17 }
 0x7b8   :  { %v2038_v4 = vpop.xlane.xlu0 %2037  ;;  %v2107_v48 = vsub.f32 %v7022_v27, %v7071_v37  ;;  %v2105_v14 = vsub.f32 %v7027_v35, %v7075_v19 }
 0x7b9   :  { %v2116_v53 = vadd.f32 1e-05, %v2100_v18  ;;  %v2097_v6 = vmax.f32 %v2089_v52, 0.0  ;;  %v2090_v44 = vsub.f32 %v2074_v23, %v2082_v16  ;;  %6320 = vrsqrt.f32 %v2115_v24 }
 0x7ba   :  { %v2040_v45 = vpop.xlane.xlu1 %2039  ;;  %v7087_v15 = vmul.f32 0.03125, %v2038_v4  ;;  %v2106_v4 = vsub.f32 %v7030_v39, %v7077_v25 }
 0x7bb   :  { %6322 = vrsqrt.f32 %v2116_v53  ;;  %v2113_v5 = vadd.f32 1e-05, %v2097_v6  ;;  %v2098_v54 = vmax.f32 %v2090_v44, 0.0  ;;  %v7091_v42 = vmul.f32 0.03125, %v2040_v45  ;;  %v4792_v44 = vld [vmem:[%s7788_s6 + $0x2] ss:$0 sm:$0xff] }
 0x7bc   :  { %v2034_v7 = vpop.xlane.xlu0 %2033  ;;  %v2087_v40 = vmul.f32 %v7087_v15, %v7087_v15 }
 0x7bd   :  { %6324 = vrsqrt.f32 %v2113_v5  ;;  %v2114_v56 = vadd.f32 1e-05, %v2098_v54  ;;  %v7083_v49 = vmul.f32 0.03125, %v2034_v7  ;;  %v2088_v16 = vmul.f32 %v7091_v42, %v7091_v42 }
 0x7be   :  { %v2036_v51 = vpop.xlane.xlu1 %2035 }
 0x7bf   :  { %6326 = vrsqrt.f32 %v2114_v56  ;;  %v7085_v58 = vmul.f32 0.03125, %v2036_v51  ;;  %v2085_v55 = vmul.f32 %v7083_v49, %v7083_v49 }
 0x7c0   :  { %v2066_v3 = vpop.xlane.xlu0 %2065 }
 0x7c1   :  { %v2077_v26 = vmul.f32 0.03125, %v2066_v3  ;;  %v2086_v41 = vmul.f32 %v7085_v58, %v7085_v58 }
 0x7c2   :  { %v2068_v22 = vpop.xlane.xlu1 %2067 }
 0x7c3   :  { %v2093_v57 = vsub.f32 %v2077_v26, %v2085_v55  ;;  %v2078_v11 = vmul.f32 0.03125, %v2068_v22  ;;  %v6321_v0 = vpop.eup %6320  ;;  %v4794_v55 = vld [vmem:[%s7789_s7 + $0x2] ss:$0 sm:$0xff] }
 0x7c4   :  { %v2070_v36 = vpop.xlane.xlu0 %2069  ;;  %v2131_v6 = vmul.f32 %v6321_v0, %v2107_v48  ;;  %v2109_v0 = vsub.f32 %v7047_v1, %v7083_v49  ;;  %v2112_v1 = vsub.f32 %v7044_v43, %v7091_v42  ;;  %v6192_v42 = vld [vmem:[%s7782_s4 + $0x300] sm:$0xff]  }
 0x7c5   :  { %v6323_v38 = vpop.eup %6322  ;;  %v2101_v10 = vmax.f32 %v2093_v57, 0.0  ;;  %v2094_v8 = vsub.f32 %v2078_v11, %v2086_v41  ;;  %v2079_v50 = vmul.f32 0.03125, %v2070_v36 }
 0x7c6   :  { %v2072_v17 = vpop.xlane.xlu1 %2071  ;;  %v2132_v24 = vmul.f32 %v6323_v38, %v2108_v34  ;;  %v2147_v51 = vmul.f32 %v4792_v44, %v2131_v6  ;;  %v2110_v38 = vsub.f32 %v7050_v9, %v7085_v58  ;;  %v6196_v6 = vld [vmem:[%s7782_s4 + $0x320] sm:$0xff]  }
 0x7c7   :  { %v6325_v33 = vpop.eup %6324  ;;  %v2117_v46 = vadd.f32 1e-05, %v2101_v10  ;;  %v2102_v18 = vmax.f32 %v2094_v8, 0.0  ;;  %v2095_v52 = vsub.f32 %v2079_v50, %v2087_v40  ;;  %v2080_v23 = vmul.f32 0.03125, %v2072_v17 }
 0x7c8   :  { %v2129_v53 = vmul.f32 %v6325_v33, %v2105_v14  ;;  %v2148_v54 = vmul.f32 %v4792_v44, %v2132_v24  ;;  %v7124_v11 = vadd.f32 %v4794_v55, %v2147_v51  ;;  %v2111_v8 = vsub.f32 %v7042_v60, %v7087_v15 }
 0x7c9   :  { %v6327_v27 = vpop.eup %6326  ;;  %6328 = vrsqrt.f32 %v2117_v46  ;;  %v2118_v37 = vadd.f32 1e-05, %v2102_v18  ;;  %v2103_v35 = vmax.f32 %v2095_v52, 0.0  ;;  %v2096_v19 = vsub.f32 %v2080_v23, %v2088_v16  ;;  %v6193_v23 = vld [vmem:[%s7782_s4 + $0x308] sm:$0xff]  }
 0x7ca   :  { %v2130_v45 = vmul.f32 %v6327_v27, %v2106_v4  ;;  %v2145_v5 = vmul.f32 %v4792_v44, %v2129_v53  ;;  %v7109_v7 = vpop.trf.xlu0  ;;  %v7120_v41 = vadd.f32 %v4794_v55, %v2148_v54  ;;  %v6194_v4 = vld [vmem:[%s7782_s4 + $0x310] sm:$0xff]   ;;  %v6195_v53 = vld [vmem:[%s7782_s4 + $0x318] sm:$0xff]   ;;  %v6197_v27 = vld [vmem:[%s7782_s4 + $0x328] sm:$0xff]  }
 0x7cb   :  { %6330 = vrsqrt.f32 %v2118_v37  ;;  %v2119_v56 = vadd.f32 1e-05, %v2103_v35  ;;  %v2104_v39 = vmax.f32 %v2096_v19, 0.0  ;;  %5735 = vmatprep.mubr.msk.bf16.mxu1 %vm2193_vm1, %v7109_v7  ;;  %v6198_v37 = vld [vmem:[%s7782_s4 + $0x330] sm:$0xff]   ;;  %v6199_v35 = vld [vmem:[%s7782_s4 + $0x338] sm:$0xff]   ;;  %v6200_v19 = vld [vmem:[%s7782_s4 + $0x2c0] sm:$0xff]  }
 0x7cc   :  { %v2146_v25 = vmul.f32 %v4792_v44, %v2130_v45  ;;  %v7116_v26 = vadd.f32 %v4794_v55, %v2145_v5  ;;  %v2170_v34 = vpack.c.bf16 %v7120_v41, %v7124_v11  ;;  %v6209_v45 = vld [vmem:[%s7782_s4 + $0x348] sm:$0xff]   ;;  %v6210_v5 = vld [vmem:[%s7782_s4 + $0x350] sm:$0xff]   ;;  %v6211_v54 = vld [vmem:[%s7782_s4 + $0x358] sm:$0xff]  }
 0x7cd   :  { %6332 = vrsqrt.f32 %v2119_v56  ;;  %v2120_v3 = vadd.f32 1e-05, %v2104_v39  ;;  %v6212_v56 = vld [vmem:[%s7782_s4 + $0x360] sm:$0xff]   ;;  %v6213_v39 = vld [vmem:[%s7782_s4 + $0x368] sm:$0xff]  }
 0x7ce   :  { %v7118_v22 = vadd.f32 %v4794_v55, %v2146_v25  ;;  %v7151_v52 = vpop.trf.xlu0 }
 0x7cf   :  { %6334 = vrsqrt.f32 %v2120_v3 }
 0x7d0   :  { %v2169_v57 = vpack.c.bf16 %v7118_v22, %v7116_v26 }
 0x7d2   :  { %5727 = vmatprep.subr.bf16.mxu1 %v2169_v57 }
 0x7d3   :  { %v6329_v36 = vpop.eup %6328  ;;  %5728 = vmatpush3.bf16.msra.mxu1 %v2169_v57 }
 0x7d4   :  { %5729 = vmatprep.subr.bf16.mxu1 %v2170_v34  ;;  %v2133_v40 = vmul.f32 %v6329_v36, %v2109_v0  ;;  %v6202_v36 = vld [vmem:[%s7782_s4 + $0x2d0] sm:$0xff]  }
 0x7d5   :  { %v6331_v10 = vpop.eup %6330 }
 0x7d6   :  { %v2134_v50 = vmul.f32 %v6331_v10, %v2110_v38  ;;  %v2149_v48 = vmul.f32 %v4792_v44, %v2133_v40  ;;  %v6203_v38 = vld [vmem:[%s7782_s4 + $0x2d8] sm:$0xff]   ;;  %v6204_v40 = vld [vmem:[%s7782_s4 + $0x2e0] sm:$0xff]   ;;  %v6206_v10 = vld [vmem:[%s7782_s4 + $0x2f0] sm:$0xff]  }
 0x7d7   :  { %v6333_v14 = vpop.eup %6332  ;;  %5730 = vmatpush3.bf16.msra.mxu1 %v2170_v34  ;;  %v6201_v34 = vld [vmem:[%s7782_s4 + $0x2c8] sm:$0xff]  }
 0x7d8   :  { %v2150_v49 = vmul.f32 %v4792_v44, %v2134_v50  ;;  %v2135_v16 = vmul.f32 %v6333_v14, %v2111_v8  ;;  %v7136_v24 = vadd.f32 %v4794_v55, %v2149_v48  ;;  %v6207_v8 = vld [vmem:[%s7782_s4 + $0x2f8] sm:$0xff]   ;;  %v6214_v50 = vld [vmem:[%s7782_s4 + $0x370] sm:$0xff]   ;;  %v6216_v14 = vld [vmem:[%s7782_s4 + $0x380] sm:$0xff]  }
 0x7d9   :  { %v6335_v17 = vpop.eup %6334  ;;  %v6215_v48 = vld [vmem:[%s7782_s4 + $0x378] sm:$0xff]  }
 0x7da   :  { %v7138_v33 = vadd.f32 %v4794_v55, %v2150_v49  ;;  %v2136_v9 = vmul.f32 %v6335_v17, %v2112_v1  ;;  %v2151_v58 = vmul.f32 %v4792_v44, %v2135_v16 }
 0x7dc   :  { %v2171_v46 = vpack.c.bf16 %v7138_v33, %v7136_v24  ;;  %v2152_v60 = vmul.f32 %v4792_v44, %v2136_v9  ;;  %v7142_v15 = vadd.f32 %v4794_v55, %v2151_v58  ;;  %v6208_v44 = vld [vmem:[%s7782_s4 + $0x340] sm:$0xff]  }
 0x7dd   :  { %5779 = vmatprep.subr.bf16.mxu0 %v6208_v44 }
 0x7de   :  { %5731 = vmatprep.subr.bf16.mxu1 %v2171_v46  ;;  %v7144_v18 = vadd.f32 %v4794_v55, %v2152_v60  ;;  %5780 = vmatpush3.bf16.msra.mxu0 %v6208_v44  ;;  %v6222_v44 = vld [vmem:[%s7782_s4 + $0x3b0] sm:$0xff]  }
 0x7df   :  { %5732 = vmatpush3.bf16.msra.mxu1 %v2171_v46  ;;  %5781 = vmatprep.subr.bf16.mxu0 %v6209_v45 }
 0x7e0   :  { %v2172_v43 = vpack.c.bf16 %v7144_v18, %v7142_v15 }
 0x7e2   :  { %5733 = vmatprep.subr.bf16.mxu1 %v2172_v43  ;;  %5782 = vmatpush3.bf16.msra.mxu0 %v6209_v45  ;;  %v6223_v45 = vld [vmem:[%s7782_s4 + $0x3b8] sm:$0xff]  }
 0x7e3   :  { %5734 = vmatpush3.bf16.msra.mxu1 %v2172_v43  ;;  %5783 = vmatprep.subr.bf16.mxu0 %v6210_v5 }
 0x7e4   :  { %5739 = vmatprep.subr.bf16.mxu1 %v6192_v42 }
 0x7e6   :  { %5736 = vmatmul.mubr.msk.bf16.vlgmr.msra.gmra.mrb[44].mxu1 %vm2193_vm1, %v7151_v52  ;;  %5784 = vmatpush3.bf16.msra.mxu0 %v6210_v5  ;;  %v4864_v5 = vld [vmem:[%s7784_s5 + $0xa] ss:$0 sm:$0xff] }
 0x7e7   :  { %5740 = vmatpush3.bf16.msra.mxu1 %v6192_v42  ;;  %5785 = vmatprep.subr.bf16.mxu0 %v6211_v54 }
 0x7e8   :  { %5741 = vmatprep.subr.bf16.mxu1 %v6193_v23 }
 0x7ea   :  { %5786 = vmatpush3.bf16.msra.mxu0 %v6211_v54 }
 0x7eb   :  { %5742 = vmatpush3.bf16.msra.mxu1 %v6193_v23  ;;  %5787 = vmatprep.subr.bf16.mxu0 %v6212_v56 }
 0x7ec   :  { %5743 = vmatprep.subr.bf16.mxu1 %v6194_v4 }
 0x7ee   :  { %5788 = vmatpush3.bf16.msra.mxu0 %v6212_v56 }
 0x7ef   :  { %5744 = vmatpush3.bf16.msra.mxu1 %v6194_v4  ;;  %5789 = vmatprep.subr.bf16.mxu0 %v6213_v39 }
 0x7f0   :  { %5745 = vmatprep.subr.bf16.mxu1 %v6195_v53 }
 0x7f2   :  { %5790 = vmatpush3.bf16.msra.mxu0 %v6213_v39 }
 0x7f3   :  { %5746 = vmatpush3.bf16.msra.mxu1 %v6195_v53  ;;  %5791 = vmatprep.subr.bf16.mxu0 %v6214_v50 }
 0x7f4   :  { %5747 = vmatprep.subr.bf16.mxu1 %v6196_v6 }
 0x7f6   :  { %5792 = vmatpush3.bf16.msra.mxu0 %v6214_v50 }
 0x7f7   :  { %5748 = vmatpush3.bf16.msra.mxu1 %v6196_v6  ;;  %5793 = vmatprep.subr.bf16.mxu0 %v6215_v48  ;;  %v6217_v6 = vld [vmem:[%s7782_s4 + $0x388] sm:$0xff]  }
 0x7f8   :  { %5749 = vmatprep.subr.bf16.mxu1 %v6197_v27 }
 0x7fa   :  { %5794 = vmatpush3.bf16.msra.mxu0 %v6215_v48 }
 0x7fb   :  { %5750 = vmatpush3.bf16.msra.mxu1 %v6197_v27  ;;  %5799 = vmatprep.subr.bf16.mxu0 %v6216_v14  ;;  %v6218_v27 = vld [vmem:[%s7782_s4 + $0x390] sm:$0xff]  }
 0x7fc   :  { %5751 = vmatprep.subr.bf16.mxu1 %v6198_v37 }
 0x7ff   :  { %5752 = vmatpush3.bf16.msra.mxu1 %v6198_v37  ;;  %v6219_v37 = vld [vmem:[%s7782_s4 + $0x398] sm:$0xff]  }
 0x800   :  { %5753 = vmatprep.subr.bf16.mxu1 %v6199_v35 }
 0x803   :  { %5754 = vmatpush3.bf16.msra.mxu1 %v6199_v35  ;;  %v6220_v35 = vld [vmem:[%s7782_s4 + $0x3a0] sm:$0xff]  }
 0x804   :  { %5759 = vmatprep.subr.bf16.mxu1 %v6200_v19 }
 0x8b9   :  { %v5737_v25 = vpop.f32.mrb[44].mxu1 }
 0x8ba   :  { %v2234_v51 = vpop.f32.mrb[45].mxu1 }
 0x8bb   :  { %v5738_v3 = vpop.f32.mrb[46].mxu1 }
 0x8bc   :  { %v2267_v55 = vpack.c.bf16 %v5738_v3, %v5737_v25  ;;  %v2237_v57 = vpop.f32.mrb[47].mxu1 }
 0x8bd   :  { %v2266_v0 = vpack.c.bf16 %v2237_v57, %v2234_v51 }
 0x8bf   :  { %5755 = vmatprep.mubr.bf16.mxu1 %v2266_v0 }
 0x8c0   :  { %5756 = vmatmul.mubr.bf16.vlgmr.msra.gmra.mrb[48].mxu1 %v2267_v55 }
 0x8c1   :  { %5760 = vmatpush3.bf16.msra.mxu1 %v6200_v19  ;;  %5775 = vmatprep.mubr.bf16.mxu1 %v6665_v30  ;;  %v6205_v30 = vld [vmem:[%s7782_s4 + $0x2e8] sm:$0xff]  }
 0x8c2   :  { %5761 = vmatprep.subr.bf16.mxu1 %v6201_v34  ;;  %v6221_v19 = vld [vmem:[%s7782_s4 + $0x3a8] sm:$0xff]  }
 0x8c5   :  { %5762 = vmatpush3.bf16.msra.mxu1 %v6201_v34 }
 0x8c6   :  { %5763 = vmatprep.subr.bf16.mxu1 %v6202_v36 }
 0x8c9   :  { %5764 = vmatpush3.bf16.msra.mxu1 %v6202_v36 }
 0x8ca   :  { %5765 = vmatprep.subr.bf16.mxu1 %v6203_v38 }
 0x8cd   :  { %5766 = vmatpush3.bf16.msra.mxu1 %v6203_v38 }
 0x8ce   :  { %5767 = vmatprep.subr.bf16.mxu1 %v6204_v40 }
 0x8d1   :  { %5768 = vmatpush3.bf16.msra.mxu1 %v6204_v40 }
 0x8d2   :  { %5769 = vmatprep.subr.bf16.mxu1 %v6205_v30 }
 0x8d5   :  { %5770 = vmatpush3.bf16.msra.mxu1 %v6205_v30 }
 0x8d6   :  { %5771 = vmatprep.subr.bf16.mxu1 %v6206_v10 }
 0x8d9   :  { %5772 = vmatpush3.bf16.msra.mxu1 %v6206_v10  ;;  %v6369_v10 = vld [vmem:[%s7787_s3] sm:$0xff]  }
 0x8da   :  { %5773 = vmatprep.subr.bf16.mxu1 %v6207_v8 }
 0x8dd   :  { %5774 = vmatpush3.bf16.msra.mxu1 %v6207_v8  ;;  %v4890_v8 = vld [vmem:[%s7784_s5 + $0xb] ss:$0 sm:$0xff] }
 0x8e0   :  { %5776 = vmatmul.mubr.bf16.vlgmr.msra.gmra.mrb[48].mxu1 %v6677_v32  ;;  %v4846_v32 = vld [vmem:[%s7784_s5 + $0x9] ss:$0 sm:$0xff] }
 0x8e1   :  { %5823 = vmatprep.mubr.msk.bf16.mxu1 %vm1124_vm0, %v7065_v59 }
 0x9b3   :  { %v5777_v59 = vpop.f32.mrb[48].mxu1 }
 0x9b4   :  { %v2489_v1 = vadd.f32 %v5777_v59, %v4846_v32  ;;  %v2464_v49 = vpop.f32.mrb[49].mxu1 }
 0x9b5   :  { %v2487_v16 = vadd.f32 %v4846_v32, %v2464_v49  ;;  %v5778_v17 = vpop.f32.mrb[50].mxu1 }
 0x9b6   :  { %v2490_v9 = vadd.f32 %v5778_v17, %v4846_v32  ;;  %v2467_v58 = vpop.f32.mrb[51].mxu1  ;;  %v2493_v60 = vmax.f32 %v2489_v1, 0.0 }
 0x9b7   :  { %v2488_v46 = vadd.f32 %v4846_v32, %v2467_v58  ;;  %v2491_v42 = vmax.f32 %v2487_v16, 0.0 }
 0x9b8   :  { %v2494_v43 = vmax.f32 %v2490_v9, 0.0 }
 0x9b9   :  { %v2492_v23 = vmax.f32 %v2488_v46, 0.0 }
 0x9ba   :  { %v2496_v4 = vpack.c.bf16 %v2494_v43, %v2493_v60 }
 0x9bb   :  { %v2495_v53 = vpack.c.bf16 %v2492_v23, %v2491_v42 }
 0x9bd   :  { %5795 = vmatprep.mubr.bf16.mxu0 %v2495_v53 }
 0x9be   :  { %5796 = vmatmul.mubr.bf16.vlgmr.msra.gmra.mrb[32].mxu0 %v2496_v4 }
 0x9bf   :  { %5800 = vmatpush3.bf16.msra.mxu0 %v6216_v14 }
 0x9c0   :  { %5801 = vmatprep.subr.bf16.mxu0 %v6217_v6 }
 0x9c3   :  { %5802 = vmatpush3.bf16.msra.mxu0 %v6217_v6 }
 0x9c4   :  { %5803 = vmatprep.subr.bf16.mxu0 %v6218_v27 }
 0x9c7   :  { %5804 = vmatpush3.bf16.msra.mxu0 %v6218_v27 }
 0x9c8   :  { %5805 = vmatprep.subr.bf16.mxu0 %v6219_v37 }
 0x9cb   :  { %5806 = vmatpush3.bf16.msra.mxu0 %v6219_v37 }
 0x9cc   :  { %5807 = vmatprep.subr.bf16.mxu0 %v6220_v35 }
 0x9cf   :  { %5808 = vmatpush3.bf16.msra.mxu0 %v6220_v35 }
 0x9d0   :  { %5809 = vmatprep.subr.bf16.mxu0 %v6221_v19 }
 0x9d3   :  { %5810 = vmatpush3.bf16.msra.mxu0 %v6221_v19 }
 0x9d4   :  { %5811 = vmatprep.subr.bf16.mxu0 %v6222_v44 }
 0x9d7   :  { %5812 = vmatpush3.bf16.msra.mxu0 %v6222_v44 }
 0x9d8   :  { %5813 = vmatprep.subr.bf16.mxu0 %v6223_v45 }
 0x9db   :  { %5814 = vmatpush3.bf16.msra.mxu0 %v6223_v45 }
 0xa91   :  { %v5797_v54 = vpop.f32.mrb[32].mxu0 }
 0xa92   :  { %v2613_v56 = vadd.f32 %v5797_v54, %v4864_v5  ;;  %v2604_v39 = vpop.f32.mrb[33].mxu0 }
 0xa93   :  { %v2605_v25 = vadd.f32 %v4864_v5, %v2604_v39  ;;  %v5798_v51 = vpop.f32.mrb[34].mxu0 }
 0xa94   :  { %v2616_v3 = vadd.f32 %v5798_v51, %v4864_v5  ;;  %v2607_v55 = vpop.f32.mrb[35].mxu0  ;;  %v2621_v0 = vmax.f32 %v2613_v56, 0.0 }
 0xa95   :  { %v2608_v57 = vadd.f32 %v4864_v5, %v2607_v55  ;;  %v2619_v36 = vmax.f32 %v2605_v25, 0.0 }
 0xa96   :  { %v2622_v34 = vmax.f32 %v2616_v3, 0.0 }
 0xa97   :  { %v2620_v38 = vmax.f32 %v2608_v57, 0.0 }
 0xa98   :  { %v2624_v40 = vpack.c.bf16 %v2622_v34, %v2621_v0 }
 0xa99   :  { %v2623_v30 = vpack.c.bf16 %v2620_v38, %v2619_v36 }
 0xa9b   :  { %5815 = vmatprep.mubr.bf16.mxu0 %v2623_v30 }
 0xa9c   :  { %5816 = vmatmul.mubr.bf16.vlgmr.msra.gmra.mrb[36].mxu0 %v2624_v40 }
 0xa9d   :  { %5835 = vmatprep.mubr.msk.bf16.mxu0 %vm1124_vm0, %v6369_v10 }
 0xb6f   :  { %v5817_v50 = vpop.f32.mrb[36].mxu0 }
 0xb70   :  { %v2741_v48 = vadd.f32 %v5817_v50, %v4890_v8  ;;  %v2732_v14 = vpop.f32.mrb[37].mxu0 }
 0xb71   :  { %v5818_v32 = vpop.f32.mrb[38].mxu0  ;;  %v2733_v1 = vadd.f32 %v4890_v8, %v2732_v14 }
 0xb72   :  { %2751 = vadd.xlane.f32.xlu1 %v2741_v48  ;;  %v2735_v59 = vpop.f32.mrb[39].mxu0  ;;  %v7265_v49 = vadd.f32 %v5818_v32, %v4890_v8  ;;  %v2761_v16 = vmul.f32 %v2741_v48, %v2741_v48 }
 0xb73   :  { %v2736_v17 = vadd.f32 %v4890_v8, %v2735_v59  ;;  %v2759_v9 = vmul.f32 %v2733_v1, %v2733_v1 }
 0xb74   :  { %v2762_v46 = vmul.f32 %v7265_v49, %v7265_v49 }
 0xb75   :  { %v2760_v58 = vmul.f32 %v2736_v17, %v2736_v17 }
 0xb76   :  { %2747 = vadd.xlane.f32.xlu1 %v2733_v1 }
 0xb7a   :  { %2753 = vadd.xlane.f32.xlu1 %v7265_v49 }
 0xb7e   :  { %2767 = vadd.xlane.f32.xlu1 %v2761_v16 }
 0xb82   :  { %2749 = vadd.xlane.f32.xlu1 %v2736_v17 }
 0xb86   :  { %2763 = vadd.xlane.f32.xlu1 %v2759_v9 }
 0xb8a   :  { %2765 = vadd.xlane.f32.xlu1 %v2760_v58 }
 0xb8e   :  { %2769 = vadd.xlane.f32.xlu1 %v2762_v46  ;;  %v4900_v46 = vld [vmem:[%s7788_s6 + $0x3] ss:$0 sm:$0xff] }
 0xbff   :  { %v2752_v60 = vpop.xlane.xlu1 %2751 }
 0xc00   :  { %v2757_v23 = vmul.f32 0.03125, %v2752_v60 }
 0xc02   :  { %v2777_v6 = vmul.f32 %v2757_v23, %v2757_v23  ;;  %v2789_v9 = vsub.f32 %v2741_v48, %v2757_v23 }
 0xc03   :  { %v2748_v43 = vpop.xlane.xlu1 %2747 }
 0xc04   :  { %v2755_v35 = vmul.f32 0.03125, %v2748_v43 }
 0xc06   :  { %v2775_v45 = vmul.f32 %v2755_v35, %v2755_v35  ;;  %v2787_v59 = vsub.f32 %v2733_v1, %v2755_v35 }
 0xc07   :  { %v2754_v42 = vpop.xlane.xlu1 %2753 }
 0xc08   :  { %v2758_v51 = vmul.f32 0.03125, %v2754_v42 }
 0xc0a   :  { %v2778_v38 = vmul.f32 %v2758_v51, %v2758_v51 }
 0xc0b   :  { %v2768_v4 = vpop.xlane.xlu1 %2767 }
 0xc0c   :  { %v2773_v53 = vmul.f32 0.03125, %v2768_v4 }
 0xc0e   :  { %v2781_v27 = vsub.f32 %v2773_v53, %v2777_v6  ;;  %v4902_v6 = vld [vmem:[%s7789_s7 + $0x3] ss:$0 sm:$0xff] }
 0xc0f   :  { %v2750_v37 = vpop.xlane.xlu1 %2749 }
 0xc10   :  { %v2785_v19 = vmax.f32 %v2781_v27, 0.0  ;;  %v2756_v5 = vmul.f32 0.03125, %v2750_v37  ;;  %v2790_v27 = vsub.f32 %v7265_v49, %v2758_v51  ;;  %v6372_v51 = vld [vmem:[%s7786_s2 + $0x10] sm:$0xff]  }
 0xc12   :  { %v2793_v39 = vadd.f32 1e-05, %v2785_v19  ;;  %v2776_v3 = vmul.f32 %v2756_v5, %v2756_v5  ;;  %v2788_v43 = vsub.f32 %v2736_v17, %v2756_v5 }
 0xc13   :  { %v2764_v44 = vpop.xlane.xlu1 %2763 }
 0xc14   :  { %v2771_v54 = vmul.f32 0.03125, %v2764_v44  ;;  %6336 = vrsqrt.f32 %v2793_v39 }
 0xc16   :  { %v2779_v56 = vsub.f32 %v2771_v54, %v2775_v45 }
 0xc17   :  { %v2766_v25 = vpop.xlane.xlu1 %2765 }
 0xc18   :  { %v2783_v55 = vmax.f32 %v2779_v56, 0.0  ;;  %v2772_v57 = vmul.f32 0.03125, %v2766_v25  ;;  %v6371_v25 = vld [vmem:[%s7787_s3 + $0x8] sm:$0xff]  }
 0xc1a   :  { %v2791_v0 = vadd.f32 1e-05, %v2783_v55  ;;  %v2780_v34 = vsub.f32 %v2772_v57, %v2776_v3  ;;  %v6373_v3 = vld [vmem:[%s7787_s3 + $0x10] sm:$0xff]   ;;  %v6227_v57 = vld [vmem:[%s7782_s4 + $0x418] sm:$0xff]  }
 0xc1b   :  { %v2770_v36 = vpop.xlane.xlu1 %2769  ;;  %v6226_v55 = vld [vmem:[%s7782_s4 + $0x410] sm:$0xff]  }
 0xc1c   :  { %6338 = vrsqrt.f32 %v2791_v0  ;;  %v2784_v40 = vmax.f32 %v2780_v34, 0.0  ;;  %v2774_v30 = vmul.f32 0.03125, %v2770_v36  ;;  %v6374_v0 = vld [vmem:[%s7786_s2 + $0x18] sm:$0xff]   ;;  %v6228_v36 = vld [vmem:[%s7782_s4 + $0x420] sm:$0xff]  }
 0xc1d   :  { %v6375_v34 = vld [vmem:[%s7787_s3 + $0x18] sm:$0xff]  }
 0xc1e   :  { %v2792_v10 = vadd.f32 1e-05, %v2784_v40  ;;  %v2782_v8 = vsub.f32 %v2774_v30, %v2778_v38  ;;  %v6337_v32 = vpop.eup %6336  ;;  %v6229_v38 = vld [vmem:[%s7782_s4 + $0x428] sm:$0xff]   ;;  %v6230_v40 = vld [vmem:[%s7782_s4 + $0x430] sm:$0xff]   ;;  %v6231_v30 = vld [vmem:[%s7782_s4 + $0x438] sm:$0xff]  }
 0xc1f   :  { %v2801_v60 = vmul.f32 %v6337_v32, %v2789_v9  ;;  %v6251_v32 = vld [vmem:[%s7782_s4 + $0x498] sm:$0xff]  }
 0xc20   :  { %6340 = vrsqrt.f32 %v2792_v10  ;;  %v2786_v50 = vmax.f32 %v2782_v8, 0.0  ;;  %v6232_v10 = vld [vmem:[%s7782_s4 + $0x3c0] sm:$0xff]  }
 0xc21   :  { %v2813_v37 = vmul.f32 %v4900_v46, %v2801_v60  ;;  %v6248_v8 = vld [vmem:[%s7782_s4 + $0x480] sm:$0xff]  }
 0xc22   :  { %v2794_v14 = vadd.f32 1e-05, %v2786_v50  ;;  %v6249_v50 = vld [vmem:[%s7782_s4 + $0x488] sm:$0xff]  }
 0xc23   :  { %v2825_v5 = vadd.f32 %v4902_v6, %v2813_v37 }
 0xc24   :  { %6342 = vrsqrt.f32 %v2794_v14  ;;  %v6250_v14 = vld [vmem:[%s7782_s4 + $0x490] sm:$0xff]  }
 0xc25   :  { %v7290_v49 = vadd.f32 %v2825_v5, %v6667_v31  ;;  %v6225_v31 = vld [vmem:[%s7782_s4 + $0x408] sm:$0xff]  }
 0xc26   :  { %v6339_v16 = vpop.eup %6338 }
 0xc27   :  { %v2799_v58 = vmul.f32 %v6339_v16, %v2787_v59  ;;  %v6252_v59 = vld [vmem:[%s7782_s4 + $0x4a0] sm:$0xff]   ;;  %v6253_v16 = vld [vmem:[%s7782_s4 + $0x4a8] sm:$0xff]  }
 0xc29   :  { %v2811_v42 = vmul.f32 %v4900_v46, %v2799_v58 }
 0xc2a   :  { %v6341_v4 = vpop.eup %6340 }
 0xc2b   :  { %v2800_v53 = vmul.f32 %v6341_v4, %v2788_v43  ;;  %v2823_v35 = vadd.f32 %v4902_v6, %v2811_v42 }
 0xc2d   :  { %v2812_v1 = vmul.f32 %v4900_v46, %v2800_v53  ;;  %v7278_v45 = vadd.f32 %v2823_v35, %v6659_v28  ;;  %v6233_v35 = vld [vmem:[%s7782_s4 + $0x3c8] sm:$0xff]  }
 0xc2e   :  { %v6343_v48 = vpop.eup %6342 }
 0xc2f   :  { %v2802_v23 = vmul.f32 %v6343_v48, %v2790_v27  ;;  %v2824_v19 = vadd.f32 %v4902_v6, %v2812_v1 }
 0xc31   :  { %v2814_v44 = vmul.f32 %v4900_v46, %v2802_v23  ;;  %v7281_v17 = vadd.f32 %v2824_v19, %v6661_v29  ;;  %v6224_v29 = vld [vmem:[%s7782_s4 + $0x400] sm:$0xff]  }
 0xc33   :  { %v7285_v54 = vpack.c.bf16 %v7281_v17, %v7278_v45  ;;  %v2826_v56 = vadd.f32 %v4902_v6, %v2814_v44  ;;  %v6234_v44 = vld [vmem:[%s7782_s4 + $0x3d0] sm:$0xff]  }
 0xc35   :  { %5819 = vmatprep.subr.bf16.mxu1 %v7285_v54  ;;  %5831 = vmatprep.subr.bf16.mxu0 %v7285_v54  ;;  %v7293_v39 = vadd.f32 %v2826_v56, %v6671_v2  ;;  %v6370_v2 = vld [vmem:[%s7786_s2 + $0x8] sm:$0xff]  }
 0xc36   :  { %5820 = vmatpush3.bf16.msra.mxu1 %v7285_v54  ;;  %5832 = vmatpush3.bf16.msra.mxu0 %v7285_v54 }
 0xc37   :  { %v7299_v28 = vpack.c.bf16 %v7293_v39, %v7290_v49 }
 0xc39   :  { %5821 = vmatprep.subr.bf16.mxu1 %v7299_v28  ;;  %5833 = vmatprep.subr.bf16.mxu0 %v7299_v28 }
 0xc3a   :  { %5822 = vmatpush3.bf16.msra.mxu1 %v7299_v28  ;;  %5834 = vmatpush3.bf16.msra.mxu0 %v7299_v28 }
 0xc3b   :  { %5843 = vmatprep.subr.bf16.mxu1 %v6224_v29  ;;  %5915 = vmatprep.subr.bf16.mxu0 %v6248_v8 }
 0xc3d   :  { %5824 = vmatmul.mubr.msk.bf16.vlgmr.msra.gmra.mrb[52].mxu1 %vm1124_vm0, %v6370_v2  ;;  %5836 = vmatmul.mubr.msk.bf16.vlgmr.msra.gmra.mrb[40].mxu0 %vm1124_vm0, %v6371_v25 }
 0xc3e   :  { %5827 = vmatprep.mubr.msk.bf16.mxu1 %vm1124_vm0, %v6372_v51  ;;  %5839 = vmatprep.mubr.msk.bf16.mxu0 %vm1124_vm0, %v6373_v3 }
 0xc3f   :  { %5844 = vmatpush3.bf16.msra.mxu1 %v6224_v29  ;;  %5916 = vmatpush3.bf16.msra.mxu0 %v6248_v8  ;;  %v7398_v29 = vadd.f32 %v7118_v22, %v6905_v13  ;;  %v6235_v13 = vld [vmem:[%s7782_s4 + $0x3d8] sm:$0xff]   ;;  %v7446_v8 = vadd.f32 %v7136_v24, %v6942_v47  ;;  %v6242_v47 = vld [vmem:[%s7782_s4 + $0x450] sm:$0xff]  }
 0xc40   :  { %5845 = vmatprep.subr.bf16.mxu1 %v6225_v31  ;;  %5917 = vmatprep.subr.bf16.mxu0 %v6249_v50 }
 0xc43   :  { %5846 = vmatpush3.bf16.msra.mxu1 %v6225_v31  ;;  %5918 = vmatpush3.bf16.msra.mxu0 %v6249_v50  ;;  %v6254_v50 = vld [vmem:[%s7782_s4 + $0x4b0] sm:$0xff]  }
 0xc44   :  { %5847 = vmatprep.subr.bf16.mxu1 %v6226_v55  ;;  %5919 = vmatprep.subr.bf16.mxu0 %v6250_v14 }
 0xc45   :  { %5828 = vmatmul.mubr.msk.bf16.gmra.mrb[56].mxu1 %vm1124_vm0, %v6374_v0  ;;  %5840 = vmatmul.mubr.msk.bf16.gmra.mrb[44].mxu0 %vm1124_vm0, %v6375_v34  ;;  %v6238_v34 = vld [vmem:[%s7782_s4 + $0x3f0] sm:$0xff]  }
 0xc47   :  { %5848 = vmatpush3.bf16.msra.mxu1 %v6226_v55  ;;  %5920 = vmatpush3.bf16.msra.mxu0 %v6250_v14  ;;  %v6255_v14 = vld [vmem:[%s7782_s4 + $0x4b8] sm:$0xff]  }
 0xc48   :  { %5849 = vmatprep.subr.bf16.mxu1 %v6227_v57  ;;  %5921 = vmatprep.subr.bf16.mxu0 %v6251_v32 }
 0xc4b   :  { %5850 = vmatpush3.bf16.msra.mxu1 %v6227_v57  ;;  %5922 = vmatpush3.bf16.msra.mxu0 %v6251_v32  ;;  %v7408_v57 = vadd.f32 %v7116_v26, %v6902_v12  ;;  %v6236_v12 = vld [vmem:[%s7782_s4 + $0x3e0] sm:$0xff]   ;;  %v6237_v26 = vld [vmem:[%s7782_s4 + $0x3e8] sm:$0xff]  }
 0xc4c   :  { %5851 = vmatprep.subr.bf16.mxu1 %v6228_v36  ;;  %5923 = vmatprep.subr.bf16.mxu0 %v6252_v59  ;;  %v6256_v32 = vld [vmem:[%s7782_s4 + $0x4c0] sm:$0xff]  }
 0xc4d   :  { %v2971_v22 = vpack.c.bf16 %v7398_v29, %v7408_v57 }
 0xc4f   :  { %5852 = vmatpush3.bf16.msra.mxu1 %v6228_v36  ;;  %5924 = vmatpush3.bf16.msra.mxu0 %v6252_v59  ;;  %v6239_v36 = vld [vmem:[%s7782_s4 + $0x3f8] sm:$0xff]   ;;  %v4984_v59 = vld [vmem:[%s7784_s5 + $0xc] ss:$0 sm:$0xff] }
 0xc50   :  { %5853 = vmatprep.subr.bf16.mxu1 %v6229_v38  ;;  %5925 = vmatprep.subr.bf16.mxu0 %v6253_v16 }
 0xc53   :  { %5854 = vmatpush3.bf16.msra.mxu1 %v6229_v38  ;;  %5926 = vmatpush3.bf16.msra.mxu0 %v6253_v16  ;;  %v7431_v38 = vadd.f32 %v7120_v41, %v6918_v21  ;;  %v6241_v41 = vld [vmem:[%s7782_s4 + $0x448] sm:$0xff]  }
 0xc54   :  { %5855 = vmatprep.subr.bf16.mxu1 %v6230_v40  ;;  %5927 = vmatprep.subr.bf16.mxu0 %v6254_v50 }
 0xc57   :  { %5856 = vmatpush3.bf16.msra.mxu1 %v6230_v40  ;;  %v6240_v40 = vld [vmem:[%s7782_s4 + $0x440] sm:$0xff]   ;;  %5928 = vmatpush3.bf16.msra.mxu0 %v6254_v50 }
 0xc58   :  { %5857 = vmatprep.subr.bf16.mxu1 %v6231_v30  ;;  %5929 = vmatprep.subr.bf16.mxu0 %v6255_v14 }
 0xc5b   :  { %5858 = vmatpush3.bf16.msra.mxu1 %v6231_v30  ;;  %v7438_v30 = vadd.f32 %v7138_v33, %v6945_v61  ;;  %v6243_v33 = vld [vmem:[%s7782_s4 + $0x458] sm:$0xff]   ;;  %5930 = vmatpush3.bf16.msra.mxu0 %v6255_v14 }
 0xc5c   :  { %5867 = vmatprep.subr.bf16.mxu1 %v6232_v10  ;;  %5939 = vmatprep.subr.bf16.mxu0 %v6256_v32 }
 0xc5d   :  { %v2973_v61 = vpack.c.bf16 %v7438_v30, %v7446_v8 }
 0xd10   :  { %v5825_v9 = vpop.f32.mrb[52].mxu1  ;;  %v7374_v58 = vpop.f32.mrb[40].mxu0 }
 0xd11   :  { %v2875_v46 = vpop.f32.mrb[53].mxu1  ;;  %v7376_v60 = vpop.f32.mrb[41].mxu0 }
 0xd12   :  { %v5826_v43 = vpop.f32.mrb[54].mxu1  ;;  %v7378_v42 = vpop.f32.mrb[42].mxu0 }
 0xd13   :  { %v2993_v4 = vpack.c.bf16 %v5826_v43, %v5825_v9  ;;  %v2878_v53 = vpop.f32.mrb[55].mxu1  ;;  %v3240_v6 = vpack.c.bf16 %v7378_v42, %v7374_v58  ;;  %v7382_v27 = vpop.f32.mrb[43].mxu0 }
 0xd14   :  { %v2992_v37 = vpack.c.bf16 %v2878_v53, %v2875_v46  ;;  %v3239_v1 = vpack.c.bf16 %v7382_v27, %v7376_v60 }
 0xd16   :  { %5859 = vmatprep.mubr.bf16.mxu1 %v2992_v37 }
 0xd17   :  { %5860 = vmatmul.mubr.bf16.vlgmr.msra.gmra.mrb[60].mxu1 %v2993_v4 }
 0xd18   :  { %5868 = vmatpush3.bf16.msra.mxu1 %v6232_v10  ;;  %v5829_v48 = vpop.f32.mrb[56].mxu1  ;;  %v7389_v23 = vpop.f32.mrb[44].mxu0  ;;  %v7442_v10 = vadd.f32 %v7124_v11, %v6915_v20  ;;  %v7457_v20 = vadd.f32 %v7144_v18, %v6958_v63  ;;  %v7464_v11 = vadd.f32 %v7142_v15, %v6955_v62  ;;  %v6244_v62 = vld [vmem:[%s7782_s4 + $0x460] sm:$0xff]   ;;  %v6245_v63 = vld [vmem:[%s7782_s4 + $0x468] sm:$0xff]   ;;  %v6246_v15 = vld [vmem:[%s7782_s4 + $0x470] sm:$0xff]  }
 0xd19   :  { %v2891_v19 = vpop.f32.mrb[57].mxu1  ;;  %5869 = vmatprep.subr.bf16.mxu1 %v6233_v35  ;;  %v7394_v5 = vpop.f32.mrb[45].mxu0  ;;  %v6247_v18 = vld [vmem:[%s7782_s4 + $0x478] sm:$0xff]  }
 0xd1a   :  { %v5830_v56 = vpop.f32.mrb[58].mxu1  ;;  %v7400_v31 = vpop.f32.mrb[46].mxu0  ;;  %v2972_v21 = vpack.c.bf16 %v7431_v38, %v7442_v10  ;;  %v2974_v24 = vpack.c.bf16 %v7457_v20, %v7464_v11 }
 0xd1b   :  { %v2995_v2 = vpack.c.bf16 %v5830_v56, %v5829_v48  ;;  %v2894_v25 = vpop.f32.mrb[59].mxu1  ;;  %v3242_v51 = vpack.c.bf16 %v7400_v31, %v7389_v23  ;;  %v7404_v3 = vpop.f32.mrb[47].mxu0 }
 0xd1c   :  { %v2994_v55 = vpack.c.bf16 %v2894_v25, %v2891_v19  ;;  %5870 = vmatpush3.bf16.msra.mxu1 %v6233_v35  ;;  %v3241_v0 = vpack.c.bf16 %v7404_v3, %v7394_v5 }
 0xd1d   :  { %5871 = vmatprep.subr.bf16.mxu1 %v6234_v44 }
 0xd1e   :  { %5863 = vmatprep.mubr.bf16.mxu1 %v2994_v55  ;;  %v6258_v55 = vld [vmem:[%s7782_s4 + $0x4d0] sm:$0xff]  }
 0xd1f   :  { %5864 = vmatmul.mubr.bf16.gmra.mrb[64].mxu1 %v2995_v2 }
 0xd20   :  { %5872 = vmatpush3.bf16.msra.mxu1 %v6234_v44  ;;  %5883 = vmatprep.mubr.bf16.mxu1 %v2971_v22  ;;  %v6257_v44 = vld [vmem:[%s7782_s4 + $0x4c8] sm:$0xff]  }
 0xd21   :  { %5873 = vmatprep.subr.bf16.mxu1 %v6235_v13 }
 0xd24   :  { %5874 = vmatpush3.bf16.msra.mxu1 %v6235_v13 }
 0xd25   :  { %5875 = vmatprep.subr.bf16.mxu1 %v6236_v12 }
 0xd28   :  { %5876 = vmatpush3.bf16.msra.mxu1 %v6236_v12 }
 0xd29   :  { %5877 = vmatprep.subr.bf16.mxu1 %v6237_v26 }
 0xd2c   :  { %5878 = vmatpush3.bf16.msra.mxu1 %v6237_v26  ;;  %v6259_v26 = vld [vmem:[%s7782_s4 + $0x4d8] sm:$0xff]  }
 0xd2d   :  { %5879 = vmatprep.subr.bf16.mxu1 %v6238_v34 }
 0xd30   :  { %5880 = vmatpush3.bf16.msra.mxu1 %v6238_v34  ;;  %v6260_v34 = vld [vmem:[%s7782_s4 + $0x4e0] sm:$0xff]  }
 0xd31   :  { %5881 = vmatprep.subr.bf16.mxu1 %v6239_v36 }
 0xd34   :  { %5882 = vmatpush3.bf16.msra.mxu1 %v6239_v36  ;;  %v6261_v36 = vld [vmem:[%s7782_s4 + $0x4e8] sm:$0xff]  }
 0xd35   :  { %5891 = vmatprep.subr.bf16.mxu1 %v6240_v40 }
 0xd37   :  { %5884 = vmatmul.mubr.bf16.vlgmr.msra.gmra.mrb[60].mxu1 %v2972_v21  ;;  %v6263_v21 = vld [vmem:[%s7782_s4 + $0x4f8] sm:$0xff]  }
 0xd38   :  { %5887 = vmatprep.mubr.bf16.mxu1 %v2973_v61  ;;  %5892 = vmatpush3.bf16.msra.mxu1 %v6240_v40  ;;  %v6262_v40 = vld [vmem:[%s7782_s4 + $0x4f0] sm:$0xff]  }
 0xd39   :  { %5893 = vmatprep.subr.bf16.mxu1 %v6241_v41 }
 0xd3c   :  { %5894 = vmatpush3.bf16.msra.mxu1 %v6241_v41  ;;  %v5002_v41 = vld [vmem:[%s7784_s5 + $0xd] ss:$0 sm:$0xff] }
 0xd3d   :  { %5895 = vmatprep.subr.bf16.mxu1 %v6242_v47 }
 0xd3f   :  { %5888 = vmatmul.mubr.bf16.gmra.mrb[64].mxu1 %v2974_v24 }
 0xd40   :  { %5896 = vmatpush3.bf16.msra.mxu1 %v6242_v47  ;;  %5907 = vmatprep.mubr.bf16.mxu1 %v3239_v1 }
 0xd41   :  { %5897 = vmatprep.subr.bf16.mxu1 %v6243_v33 }
 0xd44   :  { %5898 = vmatpush3.bf16.msra.mxu1 %v6243_v33 }
 0xd45   :  { %5899 = vmatprep.subr.bf16.mxu1 %v6244_v62 }
 0xd48   :  { %5900 = vmatpush3.bf16.msra.mxu1 %v6244_v62 }
 0xd49   :  { %5901 = vmatprep.subr.bf16.mxu1 %v6245_v63 }
 0xd4c   :  { %5902 = vmatpush3.bf16.msra.mxu1 %v6245_v63 }
 0xd4d   :  { %5903 = vmatprep.subr.bf16.mxu1 %v6246_v15 }
 0xd50   :  { %5904 = vmatpush3.bf16.msra.mxu1 %v6246_v15 }
 0xd51   :  { %5905 = vmatprep.subr.bf16.mxu1 %v6247_v18 }
 0xd54   :  { %5906 = vmatpush3.bf16.msra.mxu1 %v6247_v18 }
 0xd57   :  { %5908 = vmatmul.mubr.bf16.vlgmr.msra.gmra.mrb[60].mxu1 %v3240_v6 }
 0xd58   :  { %5911 = vmatprep.mubr.bf16.mxu1 %v3241_v0 }
 0xd5f   :  { %5912 = vmatmul.mubr.bf16.gmra.mrb[64].mxu1 %v3242_v51 }
 0xe2a   :  { %v5909_v16 = vpop.f32.mrb[60].mxu1 }
 0xe2b   :  { %v3391_v9 = vadd.f32 %v5909_v16, %v4984_v59  ;;  %v3342_v58 = vpop.f32.mrb[61].mxu1 }
 0xe2c   :  { %v3389_v46 = vadd.f32 %v4984_v59, %v3342_v58  ;;  %v5910_v60 = vpop.f32.mrb[62].mxu1 }
 0xe2d   :  { %v3392_v43 = vadd.f32 %v5910_v60, %v4984_v59  ;;  %v3345_v42 = vpop.f32.mrb[63].mxu1  ;;  %v3399_v53 = vmax.f32 %v3391_v9, 0.0 }
 0xe2e   :  { %v3390_v4 = vadd.f32 %v4984_v59, %v3345_v42  ;;  %v3397_v27 = vmax.f32 %v3389_v46, 0.0 }
 0xe2f   :  { %v3400_v6 = vmax.f32 %v3392_v43, 0.0 }
 0xe30   :  { %v3398_v37 = vmax.f32 %v3390_v4, 0.0 }
 0xe31   :  { %v3406_v1 = vpack.c.bf16 %v3400_v6, %v3399_v53 }
 0xe32   :  { %v3405_v35 = vpack.c.bf16 %v3398_v37, %v3397_v27  ;;  %v5913_v48 = vpop.f32.mrb[64].mxu1 }
 0xe33   :  { %v3395_v23 = vadd.f32 %v5913_v48, %v4984_v59  ;;  %v3358_v19 = vpop.f32.mrb[65].mxu1 }
 0xe34   :  { %v3393_v5 = vadd.f32 %v4984_v59, %v3358_v19  ;;  %v5914_v56 = vpop.f32.mrb[66].mxu1  ;;  %5931 = vmatprep.mubr.bf16.mxu0 %v3405_v35  ;;  %v5028_v19 = vld [vmem:[%s7784_s5 + $0xe] ss:$0 sm:$0xff] }
 0xe35   :  { %v3396_v31 = vadd.f32 %v5914_v56, %v4984_v59  ;;  %v3361_v2 = vpop.f32.mrb[67].mxu1  ;;  %5932 = vmatmul.mubr.bf16.vlgmr.msra.gmra.mrb[48].mxu0 %v3406_v1  ;;  %v3403_v51 = vmax.f32 %v3395_v23, 0.0 }
 0xe36   :  { %v3394_v25 = vadd.f32 %v4984_v59, %v3361_v2  ;;  %5940 = vmatpush3.bf16.msra.mxu0 %v6256_v32  ;;  %v3401_v0 = vmax.f32 %v3393_v5, 0.0 }
 0xe37   :  { %v3404_v3 = vmax.f32 %v3396_v31, 0.0  ;;  %5941 = vmatprep.subr.bf16.mxu0 %v6257_v44 }
 0xe38   :  { %v3402_v13 = vmax.f32 %v3394_v25, 0.0 }
 0xe39   :  { %v3408_v22 = vpack.c.bf16 %v3404_v3, %v3403_v51 }
 0xe3a   :  { %v3407_v12 = vpack.c.bf16 %v3402_v13, %v3401_v0  ;;  %5942 = vmatpush3.bf16.msra.mxu0 %v6257_v44 }
 0xe3b   :  { %5943 = vmatprep.subr.bf16.mxu0 %v6258_v55 }
 0xe3c   :  { %5935 = vmatprep.mubr.bf16.mxu0 %v3407_v12 }
 0xe3d   :  { %5936 = vmatmul.mubr.bf16.gmra.mrb[52].mxu0 %v3408_v22 }
 0xe3e   :  { %5944 = vmatpush3.bf16.msra.mxu0 %v6258_v55 }
 0xe3f   :  { %5945 = vmatprep.subr.bf16.mxu0 %v6259_v26 }
 0xe42   :  { %5946 = vmatpush3.bf16.msra.mxu0 %v6259_v26 }
 0xe43   :  { %5947 = vmatprep.subr.bf16.mxu0 %v6260_v34 }
 0xe46   :  { %5948 = vmatpush3.bf16.msra.mxu0 %v6260_v34 }
 0xe47   :  { %5949 = vmatprep.subr.bf16.mxu0 %v6261_v36 }
 0xe4a   :  { %5950 = vmatpush3.bf16.msra.mxu0 %v6261_v36 }
 0xe4b   :  { %5951 = vmatprep.subr.bf16.mxu0 %v6262_v40 }
 0xe4e   :  { %5952 = vmatpush3.bf16.msra.mxu0 %v6262_v40 }
 0xe4f   :  { %5953 = vmatprep.subr.bf16.mxu0 %v6263_v21 }
 0xe52   :  { %5954 = vmatpush3.bf16.msra.mxu0 %v6263_v21 }
 0xf08   :  { %v5933_v61 = vpop.f32.mrb[48].mxu0 }
 0xf09   :  { %v3525_v47 = vadd.f32 %v5933_v61, %v5002_v41  ;;  %v3516_v24 = vpop.f32.mrb[49].mxu0 }
 0xf0a   :  { %v3517_v33 = vadd.f32 %v5002_v41, %v3516_v24  ;;  %v5934_v62 = vpop.f32.mrb[50].mxu0 }
 0xf0b   :  { %v3528_v63 = vadd.f32 %v5934_v62, %v5002_v41  ;;  %v3519_v15 = vpop.f32.mrb[51].mxu0  ;;  %v3549_v50 = vmax.f32 %v3525_v47, 0.0 }
 0xf0c   :  { %v3520_v18 = vadd.f32 %v5002_v41, %v3519_v15  ;;  %v3547_v32 = vmax.f32 %v3517_v33, 0.0 }
 0xf0d   :  { %v3550_v14 = vmax.f32 %v3528_v63, 0.0 }
 0xf0e   :  { %v3548_v59 = vmax.f32 %v3520_v18, 0.0 }
 0xf0f   :  { %v3556_v16 = vpack.c.bf16 %v3550_v14, %v3549_v50 }
 0xf10   :  { %v3555_v9 = vpack.c.bf16 %v3548_v59, %v3547_v32  ;;  %v5937_v58 = vpop.f32.mrb[52].mxu0 }
 0xf11   :  { %v3541_v46 = vadd.f32 %v5937_v58, %v5002_v41  ;;  %v3532_v60 = vpop.f32.mrb[53].mxu0 }
 0xf12   :  { %v3533_v43 = vadd.f32 %v5002_v41, %v3532_v60  ;;  %v5938_v42 = vpop.f32.mrb[54].mxu0  ;;  %5955 = vmatprep.mubr.bf16.mxu0 %v3555_v9 }
 0xf13   :  { %v3544_v4 = vadd.f32 %v5938_v42, %v5002_v41  ;;  %v3535_v53 = vpop.f32.mrb[55].mxu0  ;;  %5956 = vmatmul.mubr.bf16.vlgmr.msra.gmra.mrb[56].mxu0 %v3556_v16  ;;  %v3553_v27 = vmax.f32 %v3541_v46, 0.0 }
 0xf14   :  { %v3536_v6 = vadd.f32 %v5002_v41, %v3535_v53  ;;  %v3551_v1 = vmax.f32 %v3533_v43, 0.0 }
 0xf15   :  { %v3554_v37 = vmax.f32 %v3544_v4, 0.0 }
 0xf16   :  { %v3552_v35 = vmax.f32 %v3536_v6, 0.0 }
 0xf17   :  { %v3558_v48 = vpack.c.bf16 %v3554_v37, %v3553_v27 }
 0xf18   :  { %v3557_v23 = vpack.c.bf16 %v3552_v35, %v3551_v1 }
 0xf1a   :  { %5959 = vmatprep.mubr.bf16.mxu0 %v3557_v23 }
 0xf1b   :  { %5960 = vmatmul.mubr.bf16.gmra.mrb[60].mxu0 %v3558_v48 }
 0xf1c   :  { %5971 = vmatprep.mubr.msk.bf16.mxu0 %vm2193_vm1, %v7109_v7 }
 0xfe6   :  { %v5957_v44 = vpop.f32.mrb[56].mxu0 }
 0xfe7   :  { %v7533_v5 = vadd.f32 %v5957_v44, %v5028_v19  ;;  %v3666_v56 = vpop.f32.mrb[57].mxu0 }
 0xfe8   :  { %v5958_v31 = vpop.f32.mrb[58].mxu0  ;;  %v7538_v51 = vadd.f32 %v5028_v19, %v3666_v56 }
 0xfe9   :  { %v7535_v2 = vadd.f32 %v5958_v31, %v5028_v19  ;;  %3701 = vadd.xlane.f32.xlu1 %v7533_v5  ;;  %v3669_v25 = vpop.f32.mrb[59].mxu0  ;;  %v3723_v26 = vmul.f32 %v7533_v5, %v7533_v5 }
 0xfea   :  { %v7553_v36 = vadd.f32 %v5028_v19, %v3669_v25  ;;  %v3721_v21 = vmul.f32 %v7538_v51, %v7538_v51 }
 0xfeb   :  { %v3724_v3 = vmul.f32 %v7535_v2, %v7535_v2 }
 0xfec   :  { %v3722_v41 = vmul.f32 %v7553_v36, %v7553_v36 }
 0xfed   :  { %3735 = vadd.xlane.f32.xlu0 %v3724_v3  ;;  %3697 = vadd.xlane.f32.xlu1 %v7538_v51 }
 0xfee   :  { %v5961_v7 = vpop.f32.mrb[60].mxu0 }
 0xfef   :  { %v3682_v55 = vpop.f32.mrb[61].mxu0  ;;  %v7562_v61 = vadd.f32 %v5961_v7, %v5028_v19 }
 0xff0   :  { %v5962_v0 = vpop.f32.mrb[62].mxu0  ;;  %v7565_v47 = vadd.f32 %v5028_v19, %v3682_v55 }
 0xff1   :  { %v7543_v13 = vadd.f32 %v5962_v0, %v5028_v19  ;;  %3703 = vadd.xlane.f32.xlu1 %v7535_v2  ;;  %v3685_v22 = vpop.f32.mrb[63].mxu0  ;;  %v3727_v33 = vmul.f32 %v7562_v61, %v7562_v61 }
 0xff2   :  { %v7546_v12 = vadd.f32 %v5028_v19, %v3685_v22  ;;  %v3725_v24 = vmul.f32 %v7565_v47, %v7565_v47 }
 0xff3   :  { %3711 = vadd.xlane.f32.xlu0 %v7543_v13  ;;  %v3728_v40 = vmul.f32 %v7543_v13, %v7543_v13 }
 0xff4   :  { %v3726_v34 = vmul.f32 %v7546_v12, %v7546_v12 }
 0xff5   :  { %3733 = vadd.xlane.f32.xlu1 %v3723_v26 }
 0xff7   :  { %3739 = vadd.xlane.f32.xlu0 %v3726_v34 }
 0xff9   :  { %3699 = vadd.xlane.f32.xlu1 %v7553_v36 }
 0xffb   :  { %3743 = vadd.xlane.f32.xlu0 %v3728_v40 }
 0xffd   :  { %3729 = vadd.xlane.f32.xlu1 %v3721_v21 }
0x1001   :  { %3731 = vadd.xlane.f32.xlu1 %v3722_v41 }
0x1005   :  { %3709 = vadd.xlane.f32.xlu1 %v7562_v61 }
0x1009   :  { %3705 = vadd.xlane.f32.xlu1 %v7565_v47 }
0x100d   :  { %3707 = vadd.xlane.f32.xlu1 %v7546_v12 }
0x1011   :  { %3737 = vadd.xlane.f32.xlu1 %v3725_v24 }
0x1015   :  { %3741 = vadd.xlane.f32.xlu1 %v3727_v33 }
0x1076   :  { %v3702_v62 = vpop.xlane.xlu1 %3701 }
0x1077   :  { %v3715_v50 = vmul.f32 0.03125, %v3702_v62 }
0x1079   :  { %v3755_v58 = vmul.f32 %v3715_v50, %v3715_v50 }
0x107a   :  { %v3698_v63 = vpop.xlane.xlu1 %3697  ;;  %v3736_v15 = vpop.xlane.xlu0 %3735 }
0x107b   :  { %v3748_v59 = vmul.f32 0.03125, %v3736_v15  ;;  %v3713_v27 = vmul.f32 0.03125, %v3698_v63  ;;  %v7577_v63 = vld [vmem:[%s7788_s6 + $0x4] ss:$0 sm:$0xff] }
0x107d   :  { %v3753_v56 = vmul.f32 %v3713_v27, %v3713_v27 }
0x107e   :  { %v3704_v18 = vpop.xlane.xlu1 %3703 }
0x107f   :  { %v3716_v14 = vmul.f32 0.03125, %v3704_v18  ;;  %v3779_v18 = vsub.f32 %v7533_v5, %v3715_v50 }
0x1080   :  { %v3712_v32 = vpop.xlane.xlu0 %3711 }
0x1081   :  { %v3756_v16 = vmul.f32 %v3716_v14, %v3716_v14  ;;  %v3720_v53 = vmul.f32 0.03125, %v3712_v32  ;;  %v3780_v24 = vsub.f32 %v7535_v2, %v3716_v14 }
0x1082   :  { %v3734_v9 = vpop.xlane.xlu1 %3733 }
0x1083   :  { %v3764_v46 = vsub.f32 %v3748_v59, %v3756_v16  ;;  %v3747_v60 = vmul.f32 0.03125, %v3734_v9  ;;  %v3760_v23 = vmul.f32 %v3720_v53, %v3720_v53  ;;  %v7583_v9 = vld [vmem:[%s7789_s7 + $0x4] ss:$0 sm:$0xff] }
0x1084   :  { %v3740_v43 = vpop.xlane.xlu0 %3739 }
0x1085   :  { %v3772_v42 = vmax.f32 %v3764_v46, 0.0  ;;  %v3763_v4 = vsub.f32 %v3747_v60, %v3755_v58 }
0x1086   :  { %v3700_v6 = vpop.xlane.xlu1 %3699 }
0x1087   :  { %v3788_v37 = vadd.f32 1e-05, %v3772_v42  ;;  %v3771_v1 = vmax.f32 %v3763_v4, 0.0  ;;  %v3714_v31 = vmul.f32 0.03125, %v3700_v6  ;;  %v3784_v4 = vsub.f32 %v7543_v13, %v3720_v53 }
0x1088   :  { %v3744_v35 = vpop.xlane.xlu0 %3743 }
0x1089   :  { %6344 = vrsqrt.f32 %v3788_v37  ;;  %v3787_v48 = vadd.f32 1e-05, %v3771_v1  ;;  %v3752_v19 = vmul.f32 0.03125, %v3744_v35  ;;  %v3754_v22 = vmul.f32 %v3714_v31, %v3714_v31 }
0x108a   :  { %v3730_v44 = vpop.xlane.xlu1 %3729  ;;  %v3777_v35 = vsub.f32 %v7538_v51, %v3713_v27  ;;  %v3778_v27 = vsub.f32 %v7553_v36, %v3714_v31 }
0x108b   :  { %6346 = vrsqrt.f32 %v3787_v48  ;;  %v3745_v25 = vmul.f32 0.03125, %v3730_v44  ;;  %v3768_v3 = vsub.f32 %v3752_v19, %v3760_v23  ;;  %v3750_v19 = vmul.f32 0.03125, %v3740_v43 }
0x108d   :  { %v3761_v7 = vsub.f32 %v3745_v25, %v3753_v56  ;;  %v3776_v55 = vmax.f32 %v3768_v3, 0.0 }
0x108e   :  { %v3732_v0 = vpop.xlane.xlu1 %3731 }
0x108f   :  { %v3769_v26 = vmax.f32 %v3761_v7, 0.0  ;;  %v3746_v34 = vmul.f32 0.03125, %v3732_v0  ;;  %v3792_v40 = vadd.f32 1e-05, %v3776_v55 }
0x1091   :  { %v3785_v21 = vadd.f32 1e-05, %v3769_v26  ;;  %v3762_v41 = vsub.f32 %v3746_v34, %v3754_v22  ;;  %6348 = vrsqrt.f32 %v3792_v40 }
0x1092   :  { %v3710_v33 = vpop.xlane.xlu1 %3709 }
0x1093   :  { %v6345_v62 = vpop.eup %6344  ;;  %6350 = vrsqrt.f32 %v3785_v21  ;;  %v3770_v15 = vmax.f32 %v3762_v41, 0.0  ;;  %v3719_v25 = vmul.f32 0.03125, %v3710_v33 }
0x1094   :  { %v3804_v32 = vmul.f32 %v6345_v62, %v3780_v24 }
0x1095   :  { %v6347_v59 = vpop.eup %6346  ;;  %v3786_v16 = vadd.f32 1e-05, %v3770_v15  ;;  %v3759_v26 = vmul.f32 %v3719_v25, %v3719_v25 }
0x1096   :  { %v3820_v2 = vmul.f32 %v7577_v63, %v3804_v32  ;;  %v3706_v14 = vpop.xlane.xlu1 %3705  ;;  %v3803_v58 = vmul.f32 %v6347_v59, %v3779_v18 }
0x1097   :  { %6352 = vrsqrt.f32 %v3786_v16  ;;  %v3717_v6 = vmul.f32 0.03125, %v3706_v14 }
0x1098   :  { %v3819_v46 = vmul.f32 %v7577_v63, %v3803_v58  ;;  %v3836_v60 = vadd.f32 %v7583_v9, %v3820_v2 }
0x1099   :  { %v3757_v13 = vmul.f32 %v3717_v6, %v3717_v6 }
0x109a   :  { %v3708_v42 = vpop.xlane.xlu1 %3707  ;;  %v3835_v5 = vadd.f32 %v7583_v9, %v3819_v46  ;;  %v4479_v50 = vadd.f32 %v3836_v60, %v7431_v38  ;;  %v3781_v46 = vsub.f32 %v7565_v47, %v3717_v6 }
0x109b   :  { %v3718_v37 = vmul.f32 0.03125, %v3708_v42  ;;  %v6349_v1 = vpop.eup %6348 }
0x109c   :  { %v4478_v48 = vadd.f32 %v3835_v5, %v7442_v10  ;;  %4491 = vst [vmem:[%s7790_s9 + $0x18] sm:$0xff] %v4479_v50  ;;  %v3808_v56 = vmul.f32 %v6349_v1, %v3784_v4  ;;  %v3783_v1 = vsub.f32 %v7562_v61, %v3719_v25  ;;  %v6271_v25 = vld [vmem:[%s7782_s4 + $0x578] sm:$0xff]  }
0x109d   :  { %v6351_v23 = vpop.eup %6350  ;;  %v3758_v44 = vmul.f32 %v3718_v37, %v3718_v37  ;;  %v3782_v14 = vsub.f32 %v7546_v12, %v3718_v37 }
0x109e   :  { %v3738_v3 = vpop.xlane.xlu1 %3737  ;;  %v3801_v38 = vmul.f32 %v6351_v23, %v3777_v35  ;;  %4490 = vst [vmem:[%s7790_s9 + $0x10] sm:$0xff] %v4478_v48  ;;  %v3824_v10 = vmul.f32 %v7577_v63, %v3808_v56  ;;  %v6270_v56 = vld [vmem:[%s7782_s4 + $0x570] sm:$0xff]  }
0x109f   :  { %v3766_v53 = vsub.f32 %v3750_v19, %v3758_v44  ;;  %v3749_v51 = vmul.f32 0.03125, %v3738_v3  ;;  %v6268_v44 = vld [vmem:[%s7782_s4 + $0x560] sm:$0xff]  }
0x10a0   :  { %v3817_v7 = vmul.f32 %v7577_v63, %v3801_v38  ;;  %v3840_v22 = vadd.f32 %v7583_v9, %v3824_v10  ;;  %v6272_v3 = vld [vmem:[%s7782_s4 + $0x500] sm:$0xff]  }
0x10a1   :  { %v6353_v55 = vpop.eup %6352  ;;  %v3774_v43 = vmax.f32 %v3766_v53, 0.0  ;;  %v3765_v0 = vsub.f32 %v3749_v51, %v3757_v13  ;;  %v6280_v38 = vld [vmem:[%s7782_s4 + $0x580] sm:$0xff]   ;;  %v6281_v13 = vld [vmem:[%s7782_s4 + $0x588] sm:$0xff]   ;;  %v6282_v53 = vld [vmem:[%s7782_s4 + $0x590] sm:$0xff]  }
0x10a2   :  { %v3742_v34 = vpop.xlane.xlu1 %3741  ;;  %v3802_v40 = vmul.f32 %v6353_v55, %v3778_v27  ;;  %v3833_v21 = vadd.f32 %v7583_v9, %v3817_v7  ;;  %v4483_v62 = vadd.f32 %v3840_v22, %v7457_v20  ;;  %6015 = vmatprep.subr.bf16.mxu1 %v6280_v38  ;;  %v6283_v51 = vld [vmem:[%s7782_s4 + $0x598] sm:$0xff]   ;;  %v6284_v10 = vld [vmem:[%s7782_s4 + $0x5a0] sm:$0xff]   ;;  %v6285_v27 = vld [vmem:[%s7782_s4 + $0x5a8] sm:$0xff]  }
0x10a3   :  { %v3790_v41 = vadd.f32 1e-05, %v3774_v43  ;;  %v3773_v24 = vmax.f32 %v3765_v0, 0.0  ;;  %v3751_v33 = vmul.f32 0.03125, %v3742_v34  ;;  %6016 = vmatpush3.bf16.msra.mxu1 %v6280_v38  ;;  %v6273_v34 = vld [vmem:[%s7782_s4 + $0x508] sm:$0xff]  }
0x10a4   :  { %v3818_v15 = vmul.f32 %v7577_v63, %v3802_v40  ;;  %v4476_v36 = vadd.f32 %v3833_v21, %v7408_v57  ;;  %4495 = vst [vmem:[%s7790_s9 + $0x38] sm:$0xff] %v4483_v62  ;;  %v3842_v57 = vpack.c.bf16 %v3836_v60, %v3835_v5  ;;  %6017 = vmatprep.subr.bf16.mxu1 %v6281_v13  ;;  %v6274_v40 = vld [vmem:[%s7782_s4 + $0x510] sm:$0xff]  }
0x10a5   :  { %6354 = vrsqrt.f32 %v3790_v41  ;;  %v3789_v31 = vadd.f32 1e-05, %v3773_v24  ;;  %v3767_v18 = vsub.f32 %v3751_v33, %v3759_v26  ;;  %v6276_v41 = vld [vmem:[%s7782_s4 + $0x520] sm:$0xff]   ;;  %v6278_v24 = vld [vmem:[%s7782_s4 + $0x530] sm:$0xff]   ;;  %v6279_v33 = vld [vmem:[%s7782_s4 + $0x538] sm:$0xff]  }
0x10a6   :  { %v3834_v32 = vadd.f32 %v7583_v9, %v3818_v15  ;;  %4488 = vst [vmem:[%s7790_s9] sm:$0xff] %v4476_v36  ;;  %v6286_v62 = vld [vmem:[%s7782_s4 + $0x5b0] sm:$0xff]   ;;  %v6287_v15 = vld [vmem:[%s7782_s4 + $0x5b8] sm:$0xff]   ;;  %v6288_v36 = vld [vmem:[%s7782_s4 + $0x5c0] sm:$0xff]  }
0x10a7   :  { %6356 = vrsqrt.f32 %v3789_v31  ;;  %v3775_v59 = vmax.f32 %v3767_v18, 0.0  ;;  %6018 = vmatpush3.bf16.msra.mxu1 %v6281_v13 }
0x10a8   :  { %v3841_v20 = vpack.c.bf16 %v3834_v32, %v3833_v21  ;;  %v4477_v16 = vadd.f32 %v3834_v32, %v7398_v29  ;;  %6019 = vmatprep.subr.bf16.mxu1 %v6282_v53  ;;  %v6275_v21 = vld [vmem:[%s7782_s4 + $0x518] sm:$0xff]  }
0x10a9   :  { %v3791_v2 = vadd.f32 1e-05, %v3775_v59 }
0x10aa   :  { %5963 = vmatprep.subr.bf16.mxu0 %v3841_v20  ;;  %4489 = vst [vmem:[%s7790_s9 + $0x8] sm:$0xff] %v4477_v16 }
0x10ab   :  { %6358 = vrsqrt.f32 %v3791_v2  ;;  %5964 = vmatpush3.bf16.msra.mxu0 %v3841_v20  ;;  %6020 = vmatpush3.bf16.msra.mxu1 %v6282_v53 }
0x10ac   :  { %5965 = vmatprep.subr.bf16.mxu0 %v3842_v57  ;;  %6021 = vmatprep.subr.bf16.mxu1 %v6283_v51 }
0x10af   :  { %v6355_v58 = vpop.eup %6354  ;;  %5966 = vmatpush3.bf16.msra.mxu0 %v3842_v57  ;;  %6022 = vmatpush3.bf16.msra.mxu1 %v6283_v51 }
0x10b0   :  { %v3806_v42 = vmul.f32 %v6355_v58, %v3782_v14  ;;  %6023 = vmatprep.subr.bf16.mxu1 %v6284_v10 }
0x10b1   :  { %v6357_v50 = vpop.eup %6356 }
0x10b2   :  { %v3822_v29 = vmul.f32 %v7577_v63, %v3806_v42  ;;  %v3805_v4 = vmul.f32 %v6357_v50, %v3781_v46 }
0x10b3   :  { %6024 = vmatpush3.bf16.msra.mxu1 %v6284_v10 }
0x10b4   :  { %v3821_v35 = vmul.f32 %v7577_v63, %v3805_v4  ;;  %v3838_v60 = vadd.f32 %v7583_v9, %v3822_v29  ;;  %6025 = vmatprep.subr.bf16.mxu1 %v6285_v27  ;;  %v6289_v4 = vld [vmem:[%s7782_s4 + $0x5c8] sm:$0xff]  }
0x10b5   :  { %v6359_v5 = vpop.eup %6358 }
0x10b6   :  { %v3837_v48 = vadd.f32 %v7583_v9, %v3821_v35  ;;  %v4481_v12 = vadd.f32 %v3838_v60, %v7438_v30  ;;  %v3807_v37 = vmul.f32 %v6359_v5, %v3783_v1  ;;  %v6290_v1 = vld [vmem:[%s7782_s4 + $0x5d0] sm:$0xff]   ;;  %v6291_v35 = vld [vmem:[%s7782_s4 + $0x5d8] sm:$0xff]   ;;  %v6293_v5 = vld [vmem:[%s7782_s4 + $0x5e8] sm:$0xff]  }
0x10b7   :  { %6026 = vmatpush3.bf16.msra.mxu1 %v6285_v27 }
0x10b8   :  { %v3843_v23 = vpack.c.bf16 %v3838_v60, %v3837_v48  ;;  %v4480_v47 = vadd.f32 %v3837_v48, %v7446_v8  ;;  %4493 = vst [vmem:[%s7790_s9 + $0x28] sm:$0xff] %v4481_v12  ;;  %v3823_v6 = vmul.f32 %v7577_v63, %v3807_v37  ;;  %v6264_v8 = vld [vmem:[%s7782_s4 + $0x540] sm:$0xff]   ;;  %v6265_v63 = vld [vmem:[%s7782_s4 + $0x548] sm:$0xff]   ;;  %6027 = vmatprep.subr.bf16.mxu1 %v6286_v62  ;;  %v6294_v48 = vld [vmem:[%s7782_s4 + $0x5f0] sm:$0xff]  }
0x10b9   :  { %v6292_v60 = vld [vmem:[%s7782_s4 + $0x5e0] sm:$0xff]   ;;  %v6295_v12 = vld [vmem:[%s7782_s4 + $0x5f8] sm:$0xff]   ;;  %v5110_v37 = vld [vmem:[%s7784_s5 + $0x10] ss:$0 sm:$0xff] }
0x10ba   :  { %5967 = vmatprep.subr.bf16.mxu0 %v3843_v23  ;;  %4492 = vst [vmem:[%s7790_s9 + $0x20] sm:$0xff] %v4480_v47  ;;  %v3839_v61 = vadd.f32 %v7583_v9, %v3823_v6  ;;  %v6267_v9 = vld [vmem:[%s7782_s4 + $0x558] sm:$0xff]  }
0x10bb   :  { %5968 = vmatpush3.bf16.msra.mxu0 %v3843_v23  ;;  %6028 = vmatpush3.bf16.msra.mxu1 %v6286_v62 }
0x10bc   :  { %v3844_v19 = vpack.c.bf16 %v3840_v22, %v3839_v61  ;;  %v4482_v30 = vadd.f32 %v3839_v61, %v7464_v11  ;;  %v6266_v11 = vld [vmem:[%s7782_s4 + $0x550] sm:$0xff]   ;;  %6029 = vmatprep.subr.bf16.mxu1 %v6287_v15 }
0x10be   :  { %5969 = vmatprep.subr.bf16.mxu0 %v3844_v19  ;;  %4494 = vst [vmem:[%s7790_s9 + $0x30] sm:$0xff] %v4482_v30 }
0x10bf   :  { %5970 = vmatpush3.bf16.msra.mxu0 %v3844_v19  ;;  %6030 = vmatpush3.bf16.msra.mxu1 %v6287_v15 }
0x10c0   :  { %5975 = vmatprep.subr.bf16.mxu0 %v6264_v8  ;;  %6035 = vmatprep.subr.bf16.mxu1 %v6288_v36 }
0x10c2   :  { %5972 = vmatmul.mubr.msk.bf16.vlgmr.msra.gmra.mrb[64].mxu0 %vm2193_vm1, %v7151_v52  ;;  %v6269_v52 = vld [vmem:[%s7782_s4 + $0x568] sm:$0xff]  }
0x10c3   :  { %5976 = vmatpush3.bf16.msra.mxu0 %v6264_v8 }
0x10c4   :  { %5977 = vmatprep.subr.bf16.mxu0 %v6265_v63 }
0x10c7   :  { %5978 = vmatpush3.bf16.msra.mxu0 %v6265_v63 }
0x10c8   :  { %5979 = vmatprep.subr.bf16.mxu0 %v6266_v11 }
0x10cb   :  { %5980 = vmatpush3.bf16.msra.mxu0 %v6266_v11 }
0x10cc   :  { %5981 = vmatprep.subr.bf16.mxu0 %v6267_v9 }
0x10cf   :  { %5982 = vmatpush3.bf16.msra.mxu0 %v6267_v9 }
0x10d0   :  { %5983 = vmatprep.subr.bf16.mxu0 %v6268_v44 }
0x10d3   :  { %5984 = vmatpush3.bf16.msra.mxu0 %v6268_v44 }
0x10d4   :  { %5985 = vmatprep.subr.bf16.mxu0 %v6269_v52 }
0x10d7   :  { %5986 = vmatpush3.bf16.msra.mxu0 %v6269_v52 }
0x10d8   :  { %5987 = vmatprep.subr.bf16.mxu0 %v6270_v56 }
0x10db   :  { %5988 = vmatpush3.bf16.msra.mxu0 %v6270_v56 }
0x10dc   :  { %5989 = vmatprep.subr.bf16.mxu0 %v6271_v25 }
0x10df   :  { %5990 = vmatpush3.bf16.msra.mxu0 %v6271_v25 }
0x10e0   :  { %5995 = vmatprep.subr.bf16.mxu0 %v6272_v3 }
0x1195   :  { %v5973_v7 = vpop.f32.mrb[64].mxu0 }
0x1196   :  { %v3879_v55 = vpop.f32.mrb[65].mxu0 }
0x1197   :  { %v5974_v43 = vpop.f32.mrb[66].mxu0 }
0x1198   :  { %v3912_v0 = vpack.c.bf16 %v5974_v43, %v5973_v7  ;;  %v3882_v22 = vpop.f32.mrb[67].mxu0 }
0x1199   :  { %v3911_v26 = vpack.c.bf16 %v3882_v22, %v3879_v55 }
0x119b   :  { %5991 = vmatprep.mubr.bf16.mxu0 %v3911_v26 }
0x119c   :  { %5992 = vmatmul.mubr.bf16.vlgmr.msra.gmra.mrb[68].mxu0 %v3912_v0 }
0x119d   :  { %5996 = vmatpush3.bf16.msra.mxu0 %v6272_v3  ;;  %6011 = vmatprep.mubr.bf16.mxu0 %v7285_v54  ;;  %v6277_v54 = vld [vmem:[%s7782_s4 + $0x528] sm:$0xff]   ;;  %v5136_v3 = vld [vmem:[%s7784_s5 + $0x11] ss:$0 sm:$0xff] }
0x119e   :  { %5997 = vmatprep.subr.bf16.mxu0 %v6273_v34 }
0x11a1   :  { %5998 = vmatpush3.bf16.msra.mxu0 %v6273_v34 }
0x11a2   :  { %5999 = vmatprep.subr.bf16.mxu0 %v6274_v40 }
0x11a5   :  { %6000 = vmatpush3.bf16.msra.mxu0 %v6274_v40 }
0x11a6   :  { %6001 = vmatprep.subr.bf16.mxu0 %v6275_v21 }
0x11a9   :  { %6002 = vmatpush3.bf16.msra.mxu0 %v6275_v21 }
0x11aa   :  { %6003 = vmatprep.subr.bf16.mxu0 %v6276_v41 }
0x11ad   :  { %6004 = vmatpush3.bf16.msra.mxu0 %v6276_v41 }
0x11ae   :  { %6005 = vmatprep.subr.bf16.mxu0 %v6277_v54 }
0x11b1   :  { %6006 = vmatpush3.bf16.msra.mxu0 %v6277_v54 }
0x11b2   :  { %6007 = vmatprep.subr.bf16.mxu0 %v6278_v24 }
0x11b5   :  { %6008 = vmatpush3.bf16.msra.mxu0 %v6278_v24 }
0x11b6   :  { %6009 = vmatprep.subr.bf16.mxu0 %v6279_v33 }
0x11b9   :  { %6010 = vmatpush3.bf16.msra.mxu0 %v6279_v33 }
0x11bc   :  { %6012 = vmatmul.mubr.bf16.vlgmr.msra.gmra.mrb[68].mxu0 %v7299_v28  ;;  %v5092_v28 = vld [vmem:[%s7784_s5 + $0xf] ss:$0 sm:$0xff] }
0x128f   :  { %v6013_v31 = vpop.f32.mrb[68].mxu0 }
0x1290   :  { %v4134_v18 = vadd.f32 %v6013_v31, %v5092_v28  ;;  %v4109_v32 = vpop.f32.mrb[69].mxu0 }
0x1291   :  { %v4132_v59 = vadd.f32 %v5092_v28, %v4109_v32  ;;  %v6014_v20 = vpop.f32.mrb[70].mxu0 }
0x1292   :  { %v4135_v16 = vadd.f32 %v6014_v20, %v5092_v28  ;;  %v4112_v2 = vpop.f32.mrb[71].mxu0  ;;  %v4138_v14 = vmax.f32 %v4134_v18, 0.0 }
0x1293   :  { %v4133_v57 = vadd.f32 %v5092_v28, %v4112_v2  ;;  %v4136_v46 = vmax.f32 %v4132_v59, 0.0 }
0x1294   :  { %v4139_v58 = vmax.f32 %v4135_v16, 0.0 }
0x1295   :  { %v4137_v42 = vmax.f32 %v4133_v57, 0.0 }
0x1296   :  { %v4141_v50 = vpack.c.bf16 %v4139_v58, %v4138_v14 }
0x1297   :  { %v4140_v29 = vpack.c.bf16 %v4137_v42, %v4136_v46 }
0x1299   :  { %6031 = vmatprep.mubr.bf16.mxu1 %v4140_v29 }
0x129a   :  { %6032 = vmatmul.mubr.bf16.vlgmr.msra.gmra.mrb[68].mxu1 %v4141_v50 }
0x129b   :  { %6036 = vmatpush3.bf16.msra.mxu1 %v6288_v36 }
0x129c   :  { %6037 = vmatprep.subr.bf16.mxu1 %v6289_v4 }
0x129f   :  { %6038 = vmatpush3.bf16.msra.mxu1 %v6289_v4 }
0x12a0   :  { %6039 = vmatprep.subr.bf16.mxu1 %v6290_v1 }
0x12a3   :  { %6040 = vmatpush3.bf16.msra.mxu1 %v6290_v1 }
0x12a4   :  { %6041 = vmatprep.subr.bf16.mxu1 %v6291_v35 }
0x12a7   :  { %6042 = vmatpush3.bf16.msra.mxu1 %v6291_v35 }
0x12a8   :  { %6043 = vmatprep.subr.bf16.mxu1 %v6292_v60 }
0x12ab   :  { %6044 = vmatpush3.bf16.msra.mxu1 %v6292_v60 }
0x12ac   :  { %6045 = vmatprep.subr.bf16.mxu1 %v6293_v5 }
0x12af   :  { %6046 = vmatpush3.bf16.msra.mxu1 %v6293_v5 }
0x12b0   :  { %6047 = vmatprep.subr.bf16.mxu1 %v6294_v48 }
0x12b3   :  { %6048 = vmatpush3.bf16.msra.mxu1 %v6294_v48 }
0x12b4   :  { %6049 = vmatprep.subr.bf16.mxu1 %v6295_v12 }
0x12b7   :  { %6050 = vmatpush3.bf16.msra.mxu1 %v6295_v12 }
0x136d   :  { %v6033_v23 = vpop.f32.mrb[68].mxu1 }
0x136e   :  { %v4258_v47 = vadd.f32 %v6033_v23, %v5110_v37  ;;  %v4249_v6 = vpop.f32.mrb[69].mxu1 }
0x136f   :  { %v4250_v61 = vadd.f32 %v5110_v37, %v4249_v6  ;;  %v6034_v19 = vpop.f32.mrb[70].mxu1 }
0x1370   :  { %v4261_v30 = vadd.f32 %v6034_v19, %v5110_v37  ;;  %v4252_v8 = vpop.f32.mrb[71].mxu1  ;;  %v4266_v11 = vmax.f32 %v4258_v47, 0.0  ;;  %v5146_v47 = vld [vmem:[%s7788_s6 + $0x5] ss:$0 sm:$0xff] }
0x1371   :  { %v4253_v63 = vadd.f32 %v5110_v37, %v4252_v8  ;;  %v4264_v44 = vmax.f32 %v4250_v61, 0.0 }
0x1372   :  { %v4267_v9 = vmax.f32 %v4261_v30, 0.0  ;;  %v5148_v30 = vld [vmem:[%s7789_s7 + $0x5] ss:$0 sm:$0xff] }
0x1373   :  { %v4265_v52 = vmax.f32 %v4253_v63, 0.0 }
0x1374   :  { %v4269_v56 = vpack.c.bf16 %v4267_v9, %v4266_v11 }
0x1375   :  { %v4268_v25 = vpack.c.bf16 %v4265_v52, %v4264_v44 }
0x1377   :  { %6051 = vmatprep.mubr.bf16.mxu1 %v4268_v25 }
0x1378   :  { %6052 = vmatmul.mubr.bf16.vlgmr.msra.gmra.mrb[72].mxu1 %v4269_v56 }
0x144b   :  { %v6053_v38 = vpop.f32.mrb[72].mxu1 }
0x144c   :  { %v7748_v13 = vadd.f32 %v6053_v38, %v5136_v3  ;;  %v4377_v53 = vpop.f32.mrb[73].mxu1 }
0x144d   :  { %v6054_v51 = vpop.f32.mrb[74].mxu1  ;;  %v4378_v7 = vadd.f32 %v5136_v3, %v4377_v53 }
0x144e   :  { %v7750_v10 = vadd.f32 %v6054_v51, %v5136_v3  ;;  %4396 = vadd.xlane.f32.xlu1 %v7748_v13  ;;  %v4380_v27 = vpop.f32.mrb[75].mxu1  ;;  %v4406_v22 = vmul.f32 %v7748_v13, %v7748_v13 }
0x144f   :  { %v4381_v55 = vadd.f32 %v5136_v3, %v4380_v27  ;;  %v4404_v43 = vmul.f32 %v4378_v7, %v4378_v7 }
0x1450   :  { %4398 = vadd.xlane.f32.xlu0 %v7750_v10  ;;  %v4407_v26 = vmul.f32 %v7750_v10, %v7750_v10 }
0x1451   :  { %v4405_v0 = vmul.f32 %v4381_v55, %v4381_v55 }
0x1452   :  { %4392 = vadd.xlane.f32.xlu1 %v4378_v7 }
0x1454   :  { %4394 = vadd.xlane.f32.xlu0 %v4381_v55 }
0x1456   :  { %4408 = vadd.xlane.f32.xlu1 %v4404_v43 }
0x1458   :  { %4410 = vadd.xlane.f32.xlu0 %v4405_v0 }
0x145a   :  { %4412 = vadd.xlane.f32.xlu1 %v4406_v22 }
0x145c   :  { %4414 = vadd.xlane.f32.xlu0 %v4407_v26 }
0x14db   :  { %v4397_v34 = vpop.xlane.xlu1 %4396 }
0x14dc   :  { %v4402_v62 = vmul.f32 0.03125, %v4397_v34 }
0x14dd   :  { %v4399_v40 = vpop.xlane.xlu0 %4398 }
0x14de   :  { %v4403_v28 = vmul.f32 0.03125, %v4399_v40  ;;  %v4422_v16 = vmul.f32 %v4402_v62, %v4402_v62  ;;  %v4434_v8 = vsub.f32 %v7748_v13, %v4402_v62 }
0x14df   :  { %v4393_v21 = vpop.xlane.xlu1 %4392 }
0x14e0   :  { %v4400_v41 = vmul.f32 0.03125, %v4393_v21  ;;  %v4423_v58 = vmul.f32 %v4403_v28, %v4403_v28  ;;  %v4435_v44 = vsub.f32 %v7750_v10, %v4403_v28 }
0x14e1   :  { %v4395_v54 = vpop.xlane.xlu0 %4394 }
0x14e2   :  { %v4401_v24 = vmul.f32 0.03125, %v4395_v54  ;;  %v4420_v15 = vmul.f32 %v4400_v41, %v4400_v41  ;;  %v4432_v37 = vsub.f32 %v4378_v7, %v4400_v41 }
0x14e3   :  { %v4409_v33 = vpop.xlane.xlu1 %4408 }
0x14e4   :  { %v4416_v36 = vmul.f32 0.03125, %v4409_v33  ;;  %v4421_v18 = vmul.f32 %v4401_v24, %v4401_v24  ;;  %v4433_v6 = vsub.f32 %v4381_v55, %v4401_v24 }
0x14e5   :  { %v4411_v31 = vpop.xlane.xlu0 %4410 }
0x14e6   :  { %v4424_v32 = vsub.f32 %v4416_v36, %v4420_v15  ;;  %v4417_v59 = vmul.f32 0.03125, %v4411_v31 }
0x14e7   :  { %v4413_v20 = vpop.xlane.xlu1 %4412 }
0x14e8   :  { %v4428_v2 = vmax.f32 %v4424_v32, 0.0  ;;  %v4425_v57 = vsub.f32 %v4417_v59, %v4421_v18  ;;  %v4418_v14 = vmul.f32 0.03125, %v4413_v20 }
0x14e9   :  { %v4415_v46 = vpop.xlane.xlu0 %4414 }
0x14ea   :  { %v4436_v42 = vadd.f32 1e-05, %v4428_v2  ;;  %v4429_v50 = vmax.f32 %v4425_v57, 0.0  ;;  %v4426_v29 = vsub.f32 %v4418_v14, %v4422_v16  ;;  %v4419_v4 = vmul.f32 0.03125, %v4415_v46 }
0x14ec   :  { %6360 = vrsqrt.f32 %v4436_v42  ;;  %v4437_v1 = vadd.f32 1e-05, %v4429_v50  ;;  %v4430_v35 = vmax.f32 %v4426_v29, 0.0  ;;  %v4427_v60 = vsub.f32 %v4419_v4, %v4423_v58 }
0x14ee   :  { %6362 = vrsqrt.f32 %v4437_v1  ;;  %v4438_v5 = vadd.f32 1e-05, %v4430_v35  ;;  %v4431_v48 = vmax.f32 %v4427_v60, 0.0 }
0x14f0   :  { %6364 = vrsqrt.f32 %v4438_v5  ;;  %v4439_v12 = vadd.f32 1e-05, %v4431_v48 }
0x14f2   :  { %6366 = vrsqrt.f32 %v4439_v12 }
0x14f6   :  { %v6361_v23 = vpop.eup %6360 }
0x14f7   :  { %v4444_v61 = vmul.f32 %v6361_v23, %v4432_v37 }
0x14f8   :  { %v6363_v19 = vpop.eup %6362 }
0x14f9   :  { %v4456_v63 = vmul.f32 %v5146_v47, %v4444_v61  ;;  %v4445_v11 = vmul.f32 %v6363_v19, %v4433_v6 }
0x14fa   :  { %v6365_v9 = vpop.eup %6364 }
0x14fb   :  { %v4468_v52 = vadd.f32 %v5148_v30, %v4456_v63  ;;  %v4457_v56 = vmul.f32 %v5146_v47, %v4445_v11  ;;  %v4446_v25 = vmul.f32 %v6365_v9, %v4434_v8 }
0x14fc   :  { %v6367_v3 = vpop.eup %6366 }
0x14fd   :  { %v4472_v38 = vadd.f32 %v4468_v52, %v7278_v45  ;;  %v4469_v53 = vadd.f32 %v5148_v30, %v4457_v56  ;;  %v4458_v51 = vmul.f32 %v5146_v47, %v4446_v25  ;;  %v4447_v27 = vmul.f32 %v6367_v3, %v4435_v44 }
0x14ff   :  { %4484 = vst [vmem:[%s7791_s8] sm:$0xff] %v4472_v38  ;;  %v4473_v13 = vadd.f32 %v4469_v53, %v7281_v17  ;;  %v4470_v7 = vadd.f32 %v5148_v30, %v4458_v51  ;;  %v4459_v55 = vmul.f32 %v5146_v47, %v4447_v27 }
0x1501   :  { %4485 = vst [vmem:[%s7791_s8 + $0x8] sm:$0xff] %v4473_v13  ;;  %v4474_v10 = vadd.f32 %v4470_v7, %v7290_v49  ;;  %v4471_v43 = vadd.f32 %v5148_v30, %v4459_v55 }
0x1503   :  { %4486 = vst [vmem:[%s7791_s8 + $0x10] sm:$0xff] %v4474_v10  ;;  %v4475_v45 = vadd.f32 %v4471_v43, %v7293_v39 }
0x1505   :  { %4487 = vst [vmem:[%s7791_s8 + $0x18] sm:$0xff] %v4475_v45 }

</bundles_post_ra>
